<compile_context>
chip_gen: v7x
topology: tpu7x:2x2x1
jax: 0.10.0
libtpu: 0.0.40
codegen_flags: <defaults>
</compile_context>

<pallas_src>
import functools

import jax
import jax.numpy as jnp
from jax.experimental import pallas as pl
from jax.experimental.pallas import tpu as pltpu


def _round_up(x, m):
    return ((x + m - 1) // m) * m


def _transition_kernel(z_ref, gamma_ref, beta_ref,
                       w1_ref, b1_ref, w2_ref, b2_ref,
                       o_ref, *, eps):
    """One row-tile: LayerNorm -> Linear1 -> ReLU -> Linear2."""
    # ---- LayerNorm over the embedding (lane) axis, f32 VPU math ----
    x = z_ref[...].astype(jnp.float32)                          # (TM, E)
    mean = jnp.mean(x, axis=-1, keepdims=True)                  # (TM, 1)
    xc = x - mean
    var = jnp.mean(xc * xc, axis=-1, keepdims=True)             # biased (torch)
    inv = jax.lax.rsqrt(var + eps)                              # EUP
    xn = xc * inv
    xn = xn * gamma_ref[...].astype(jnp.float32) + beta_ref[...].astype(jnp.float32)

    # ---- Linear1 + ReLU: bf16 operands on the MXU, f32 accumulation ----
    h = jnp.dot(xn.astype(w1_ref.dtype), w1_ref[...],
                preferred_element_type=jnp.float32)             # (TM, H)
    h = jnp.maximum(h + b1_ref[...].astype(jnp.float32), 0.0)

    # ---- Linear2 ----
    y = jnp.dot(h.astype(w2_ref.dtype), w2_ref[...],
                preferred_element_type=jnp.float32)             # (TM, E)
    y = y + b2_ref[...].astype(jnp.float32)

    o_ref[...] = y.astype(o_ref.dtype)


def _build_transition_call(*, M_pad, E, H, row_tile, out_dtype, eps,
                           single_buffer_consts, vmem_limit_bytes, cost):
    # Grid-invariant operands never change across the grid; single-buffer them
    # so they don't get a pointless 2-deep pipeline buffer.
    pm_const = pl.Buffered(1) if single_buffer_consts else None

    def const_spec(shape):
        idx = lambda i: (0,) * len(shape)
        if pm_const is not None:
            return pl.BlockSpec(shape, idx, pipeline_mode=pm_const)
        return pl.BlockSpec(shape, idx)

    kernel = functools.partial(_transition_kernel, eps=eps)

    return pl.pallas_call(
        kernel,
        out_shape=jax.ShapeDtypeStruct((M_pad, E), out_dtype),
        grid_spec=pltpu.PrefetchScalarGridSpec(
            num_scalar_prefetch=0,
            grid=(M_pad // row_tile,),
            in_specs=[
                pl.BlockSpec((row_tile, E), lambda i: (i, 0)),   # z row tile
                const_spec((1, E)),                              # gamma
                const_spec((1, E)),                              # beta
                const_spec((E, H)),                              # W1 (bf16)
                const_spec((1, H)),                              # b1
                const_spec((H, E)),                              # W2 (bf16)
                const_spec((1, E)),                              # b2
            ],
            out_specs=pl.BlockSpec((row_tile, E), lambda i: (i, 0)),
        ),
        compiler_params=pltpu.CompilerParams(
            dimension_semantics=("parallel",),
            vmem_limit_bytes=vmem_limit_bytes),
        cost_estimate=cost,
    )


def transition_forward(z, params, *, eps=1e-5, row_tile=512,
                       matmul_dtype=jnp.bfloat16):
    """z: [batch, seq, E] -> [batch, seq, E] (fused LN -> MLP)."""
    gamma, beta, w1, b1, w2, b2 = params
    batch, seq, E = z.shape
    H = w1.shape[1]
    M = batch * seq

    # Moderate fixed row tile (NOT M) -> many grid blocks for pipelining and
    # both TensorCores on v7x; aligned to the sublane packing of the io dtype.
    row_align = 16 if z.dtype == jnp.bfloat16 else 8
    row_tile = max(row_align, min(_round_up(int(row_tile), row_align),
                                  _round_up(M, row_align)))
    M_pad = _round_up(M, row_tile)

    z2d = z.reshape(M, E)
    if M_pad != M:
        # Pad ragged token counts; padded rows are computed and discarded.
        z2d = jnp.pad(z2d, ((0, M_pad - M), (0, 0)))

    # Feed the MXU bf16 operands: weights are stored / DMA'd / resident in
    # VMEM as bf16 (native MXU rate, half the bytes); accumulation stays f32.
    w1c = w1.astype(matmul_dtype)
    w2c = w2.astype(matmul_dtype)

    w_bytes = jnp.dtype(matmul_dtype).itemsize
    io_bytes = jnp.dtype(z.dtype).itemsize

    # Advisory cost for XLA's scheduler around the custom call.
    cost = pl.CostEstimate(
        flops=4 * M_pad * E * H,                       # two (M,E,H) matmuls
        transcendentals=M_pad,                         # one rsqrt per row
        bytes_accessed=(2 * M_pad * E * io_bytes       # z in + out
                        + 2 * E * H * w_bytes          # W1 + W2
                        + (3 * E + H) * 4),            # gamma/beta/b1/b2
    )

    # Size the scoped VMEM limit from the actual footprint (+ headroom)
    # instead of the 16/32 MiB default; cap well below v7x's 64 MiB physical.
    est = (4 * row_tile * E * io_bytes        # z + out tiles, double-buffered
           + 2 * E * H * w_bytes              # W1 + W2 (single-buffered)
           + (3 * E + H) * 4 * 2              # gamma/beta/biases
           + row_tile * E * 4                 # xn (f32)
           + 2 * row_tile * H * 4)            # h (f32) + bf16-copy slack
    vmem_limit = int(min(max(2 * est, 16 * 2 ** 20), 48 * 2 ** 20))
    # NOTE: for very large E (bf16 weights > ~40 MiB) an extra 'arbitrary'
    # H grid axis with a VMEM f32 accumulator would be needed to fit v7x VMEM;
    # not required at the shapes exercised here.

    args = (z2d, gamma, beta, w1c, b1, w2c, b2)
    common = dict(M_pad=M_pad, E=E, H=H, row_tile=row_tile,
                  out_dtype=z.dtype, eps=eps,
                  vmem_limit_bytes=vmem_limit, cost=cost)
    try:
        out2d = _build_transition_call(
            single_buffer_consts=hasattr(pl, "Buffered"), **common)(*args)
    except Exception:
        # Conservative fallback (double-buffered constants) for older Pallas.
        out2d = _build_transition_call(
            single_buffer_consts=False, **common)(*args)

    if M_pad != M:
        out2d = out2d[:M]
    return out2d.reshape(batch, seq, E)


def init_params(key, embedding_channels, n):
    """Deterministic init mimicking PyTorch defaults (LayerNorm: ones/zeros,
    Linear: U(-1/sqrt(fan_in), 1/sqrt(fan_in)))."""
    E = embedding_channels
    H = n * E
    k1, k2, k3, k4 = jax.random.split(key, 4)

    gamma = jnp.ones((1, E), jnp.float32)
    beta = jnp.zeros((1, E), jnp.float32)

    bound1 = 1.0 / float(E) ** 0.5
    # Stored transposed relative to PyTorch (E, H) so the kernel does x @ W1.
    w1 = jax.random.uniform(k1, (E, H), jnp.float32, -bound1, bound1)
    b1 = jax.random.uniform(k2, (1, H), jnp.float32, -bound1, bound1)

    bound2 = 1.0 / float(H) ** 0.5
    w2 = jax.random.uniform(k3, (H, E), jnp.float32, -bound2, bound2)
    b2 = jax.random.uniform(k4, (1, E), jnp.float32, -bound2, bound2)

    return gamma, beta, w1, b1, w2, b2


def _layernorm_f32(z, gamma, beta, eps):
    mean = jnp.mean(z, axis=-1, keepdims=True)
    xc = z - mean
    var = jnp.mean(xc * xc, axis=-1, keepdims=True)
    return (xc * jax.lax.rsqrt(var + eps)) * gamma[0] + beta[0]


def reference_forward_f32(z, params, eps=1e-5):
    gamma, beta, w1, b1, w2, b2 = params
    xn = _layernorm_f32(z, gamma, beta, eps)
    h = jnp.maximum(xn @ w1 + b1[0], 0.0)
    return h @ w2 + b2[0]


def reference_forward_mixed(z, params, eps=1e-5, matmul_dtype=jnp.bfloat16):
    """Reference mimicking the kernel's bf16 MXU operands (f32 accumulate)."""
    gamma, beta, w1, b1, w2, b2 = params
    xn = _layernorm_f32(z, gamma, beta, eps)
    h = jnp.dot(xn.astype(matmul_dtype), w1.astype(matmul_dtype),
                preferred_element_type=jnp.float32) + b1[0]
    h = jnp.maximum(h, 0.0)
    return jnp.dot(h.astype(matmul_dtype), w2.astype(matmul_dtype),
                   preferred_element_type=jnp.float32) + b2[0]


if __name__ == "__main__":
    # Small shapes consistent with the module defaults (embedding_channels=256,
    # n=4); E=256 keeps the output lane axis dense (multiple of 128).
    batch, seq, E, n = 2, 8, 256, 4

    key = jax.random.PRNGKey(0)
    kz, kp = jax.random.split(key)
    z = jax.random.normal(kz, (batch, seq, E), jnp.float32)
    params = init_params(kp, E, n)

    out = transition_forward(z, params)
    out = jax.block_until_ready(out)
    assert out.shape == (batch, seq, E)
    assert bool(jnp.all(jnp.isfinite(out)))

    # Tight check vs a reference using the same bf16 matmul operands.
    ref_mixed = reference_forward_mixed(z, params)
    assert jnp.allclose(out, ref_mixed, atol=2e-3, rtol=2e-3), "mismatch (mixed ref)"

    # Loose sanity check vs the full-f32 reference (bf16 operand rounding).
    ref_f32 = reference_forward_f32(z, params)
    assert jnp.allclose(out, ref_f32, atol=5e-2, rtol=5e-2), "mismatch (f32 ref)"

    print("KERNEL_OK")
</pallas_src>

<mosaic_0001>
module attributes {stable_mosaic.version = 11 : i64} {
  func.func @_transition_kernel(%arg0: i32, %arg1: memref<16x256xf32, #tpu.memory_space<vmem>>, %arg2: memref<1x256xf32, #tpu.memory_space<vmem>>, %arg3: memref<1x256xf32, #tpu.memory_space<vmem>>, %arg4: memref<256x1024xbf16, #tpu.memory_space<vmem>>, %arg5: memref<1x1024xf32, #tpu.memory_space<vmem>>, %arg6: memref<1024x256xbf16, #tpu.memory_space<vmem>>, %arg7: memref<1x256xf32, #tpu.memory_space<vmem>>, %arg8: memref<16x256xf32, #tpu.memory_space<vmem>>) attributes {dimension_semantics = [#tpu.dimension_semantics<parallel>], iteration_bounds = array<i64: 1>, scalar_prefetch = 0 : i64, scratch_operands = 0 : i64, tpu.core_type = #tpu.core_type<tc>, window_params = [{transform_indices = @transform_0, window_bounds = array<i64: 16, 256>}, {pipeline_mode = #tpu.pipeline_mode<synchronous>, transform_indices = @transform_1, window_bounds = array<i64: 1, 256>}, {pipeline_mode = #tpu.pipeline_mode<synchronous>, transform_indices = @transform_2, window_bounds = array<i64: 1, 256>}, {pipeline_mode = #tpu.pipeline_mode<synchronous>, transform_indices = @transform_3, window_bounds = array<i64: 256, 1024>}, {pipeline_mode = #tpu.pipeline_mode<synchronous>, transform_indices = @transform_4, window_bounds = array<i64: 1, 1024>}, {pipeline_mode = #tpu.pipeline_mode<synchronous>, transform_indices = @transform_5, window_bounds = array<i64: 1024, 256>}, {pipeline_mode = #tpu.pipeline_mode<synchronous>, transform_indices = @transform_6, window_bounds = array<i64: 1, 256>}, {transform_indices = @transform_7, window_bounds = array<i64: 16, 256>}]} {
    %c0 = arith.constant 0 : index
    %c0_0 = arith.constant 0 : index
    %0 = vector.load %arg1[%c0, %c0_0] : memref<16x256xf32, #tpu.memory_space<vmem>>, vector<16x256xf32>
    %cst = arith.constant dense<0.000000e+00> : vector<16xf32>
    %1 = vector.multi_reduction <add>, %0, %cst [1] : vector<16x256xf32> to vector<16xf32>
    %2 = vector.shape_cast %1 : vector<16xf32> to vector<16x1xf32>
    %cst_1 = arith.constant 2.560000e+02 : f32
    %3 = vector.broadcast %cst_1 : f32 to vector<16x1xf32>
    %4 = arith.divf %2, %3 : vector<16x1xf32>
    %5 = vector.broadcast %4 : vector<16x1xf32> to vector<16x256xf32>
    %6 = arith.subf %0, %5 : vector<16x256xf32>
    %7 = arith.mulf %6, %6 : vector<16x256xf32>
    %cst_2 = arith.constant dense<0.000000e+00> : vector<16xf32>
    %8 = vector.multi_reduction <add>, %7, %cst_2 [1] : vector<16x256xf32> to vector<16xf32>
    %9 = vector.shape_cast %8 : vector<16xf32> to vector<16x1xf32>
    %cst_3 = arith.constant 2.560000e+02 : f32
    %10 = vector.broadcast %cst_3 : f32 to vector<16x1xf32>
    %11 = arith.divf %9, %10 : vector<16x1xf32>
    %cst_4 = arith.constant 9.99999974E-6 : f32
    %12 = vector.broadcast %cst_4 : f32 to vector<16x1xf32>
    %13 = arith.addf %11, %12 : vector<16x1xf32>
    %14 = math.rsqrt %13 : vector<16x1xf32>
    %15 = vector.broadcast %14 : vector<16x1xf32> to vector<16x256xf32>
    %16 = arith.mulf %6, %15 : vector<16x256xf32>
    %c0_5 = arith.constant 0 : index
    %c0_6 = arith.constant 0 : index
    %17 = vector.load %arg2[%c0_5, %c0_6] : memref<1x256xf32, #tpu.memory_space<vmem>>, vector<1x256xf32>
    %18 = vector.broadcast %17 : vector<1x256xf32> to vector<16x256xf32>
    %19 = arith.mulf %16, %18 : vector<16x256xf32>
    %c0_7 = arith.constant 0 : index
    %c0_8 = arith.constant 0 : index
    %20 = vector.load %arg3[%c0_7, %c0_8] : memref<1x256xf32, #tpu.memory_space<vmem>>, vector<1x256xf32>
    %21 = vector.broadcast %20 : vector<1x256xf32> to vector<16x256xf32>
    %22 = arith.addf %19, %21 : vector<16x256xf32>
    %23 = arith.truncf %22 : vector<16x256xf32> to vector<16x256xbf16>
    %c0_9 = arith.constant 0 : index
    %c0_10 = arith.constant 0 : index
    %24 = vector.load %arg4[%c0_9, %c0_10] : memref<256x1024xbf16, #tpu.memory_space<vmem>>, vector<256x1024xbf16>
    %cst_11 = arith.constant dense<0.000000e+00> : vector<16x1024xf32>
    %25 = tpu.matmul %23, %24, %cst_11 {dimension_numbers = #tpu.dot_dimension_numbers<[1], [0], [0], [1], [0, 0, 1, 1], [], []>} : vector<16x256xbf16>, vector<256x1024xbf16>, vector<16x1024xf32> -> vector<16x1024xf32>
    %c0_12 = arith.constant 0 : index
    %c0_13 = arith.constant 0 : index
    %26 = vector.load %arg5[%c0_12, %c0_13] : memref<1x1024xf32, #tpu.memory_space<vmem>>, vector<1x1024xf32>
    %27 = vector.broadcast %26 : vector<1x1024xf32> to vector<16x1024xf32>
    %28 = arith.addf %25, %27 : vector<16x1024xf32>
    %cst_14 = arith.constant 0.000000e+00 : f32
    %29 = vector.broadcast %cst_14 : f32 to vector<16x1024xf32>
    %30 = arith.maximumf %28, %29 : vector<16x1024xf32>
    %31 = arith.truncf %30 : vector<16x1024xf32> to vector<16x1024xbf16>
    %c0_15 = arith.constant 0 : index
    %c0_16 = arith.constant 0 : index
    %32 = vector.load %arg6[%c0_15, %c0_16] : memref<1024x256xbf16, #tpu.memory_space<vmem>>, vector<1024x256xbf16>
    %cst_17 = arith.constant dense<0.000000e+00> : vector<16x256xf32>
    %33 = tpu.matmul %31, %32, %cst_17 {dimension_numbers = #tpu.dot_dimension_numbers<[1], [0], [0], [1], [0, 0, 1, 1], [], []>} : vector<16x1024xbf16>, vector<1024x256xbf16>, vector<16x256xf32> -> vector<16x256xf32>
    %c0_18 = arith.constant 0 : index
    %c0_19 = arith.constant 0 : index
    %34 = vector.load %arg7[%c0_18, %c0_19] : memref<1x256xf32, #tpu.memory_space<vmem>>, vector<1x256xf32>
    %35 = vector.broadcast %34 : vector<1x256xf32> to vector<16x256xf32>
    %36 = arith.addf %33, %35 : vector<16x256xf32>
    %c0_20 = arith.constant 0 : index
    %c0_21 = arith.constant 0 : index
    %37 = vector.load %arg8[%c0_20, %c0_21] : memref<16x256xf32, #tpu.memory_space<vmem>>, vector<16x256xf32>
    tpu.vector_store %arg8[%c0_20, %c0_21], %36 {strides = array<i32>} : memref<16x256xf32, #tpu.memory_space<vmem>>, vector<16x256xf32>,
    return
  }
  func.func @transform_0(%arg0: i32) -> (i32, i32) {
    %c0_i32 = arith.constant 0 : i32
    %c0_i32_0 = arith.constant 0 : i32
    return %arg0, %c0_i32 : i32, i32
  }
  func.func @transform_1(%arg0: i32) -> (i32, i32) {
    %c0_i32 = arith.constant 0 : i32
    %c0_i32_0 = arith.constant 0 : i32
    %c0_i32_1 = arith.constant 0 : i32
    return %c0_i32, %c0_i32_0 : i32, i32
  }
  func.func @transform_2(%arg0: i32) -> (i32, i32) {
    %c0_i32 = arith.constant 0 : i32
    %c0_i32_0 = arith.constant 0 : i32
    %c0_i32_1 = arith.constant 0 : i32
    return %c0_i32, %c0_i32_0 : i32, i32
  }
  func.func @transform_3(%arg0: i32) -> (i32, i32) {
    %c0_i32 = arith.constant 0 : i32
    %c0_i32_0 = arith.constant 0 : i32
    %c0_i32_1 = arith.constant 0 : i32
    return %c0_i32, %c0_i32_0 : i32, i32
  }
  func.func @transform_4(%arg0: i32) -> (i32, i32) {
    %c0_i32 = arith.constant 0 : i32
    %c0_i32_0 = arith.constant 0 : i32
    %c0_i32_1 = arith.constant 0 : i32
    return %c0_i32, %c0_i32_0 : i32, i32
  }
  func.func @transform_5(%arg0: i32) -> (i32, i32) {
    %c0_i32 = arith.constant 0 : i32
    %c0_i32_0 = arith.constant 0 : i32
    %c0_i32_1 = arith.constant 0 : i32
    return %c0_i32, %c0_i32_0 : i32, i32
  }
  func.func @transform_6(%arg0: i32) -> (i32, i32) {
    %c0_i32 = arith.constant 0 : i32
    %c0_i32_0 = arith.constant 0 : i32
    %c0_i32_1 = arith.constant 0 : i32
    return %c0_i32, %c0_i32_0 : i32, i32
  }
  func.func @transform_7(%arg0: i32) -> (i32, i32) {
    %c0_i32 = arith.constant 0 : i32
    %c0_i32_0 = arith.constant 0 : i32
    return %arg0, %c0_i32 : i32, i32
  }
}

module attributes {stable_mosaic.version = 11 : i64} {
  func.func @_transition_kernel(%arg0: i32, %arg1: memref<16x256xf32, #tpu.memory_space<vmem>>, %arg2: memref<1x256xf32, #tpu.memory_space<vmem>>, %arg3: memref<1x256xf32, #tpu.memory_space<vmem>>, %arg4: memref<256x1024xbf16, #tpu.memory_space<vmem>>, %arg5: memref<1x1024xf32, #tpu.memory_space<vmem>>, %arg6: memref<1024x256xbf16, #tpu.memory_space<vmem>>, %arg7: memref<1x256xf32, #tpu.memory_space<vmem>>, %arg8: memref<16x256xf32, #tpu.memory_space<vmem>>) attributes {dimension_semantics = [#tpu.dimension_semantics<parallel>], iteration_bounds = array<i64: 1>, scalar_prefetch = 0 : i64, scratch_operands = 0 : i64, tpu.core_type = #tpu.core_type<tc>, window_params = [{transform_indices = @transform_0, window_bounds = array<i64: 16, 256>}, {pipeline_mode = #tpu.pipeline_mode<synchronous>, transform_indices = @transform_1, window_bounds = array<i64: 1, 256>}, {pipeline_mode = #tpu.pipeline_mode<synchronous>, transform_indices = @transform_2, window_bounds = array<i64: 1, 256>}, {pipeline_mode = #tpu.pipeline_mode<synchronous>, transform_indices = @transform_3, window_bounds = array<i64: 256, 1024>}, {pipeline_mode = #tpu.pipeline_mode<synchronous>, transform_indices = @transform_4, window_bounds = array<i64: 1, 1024>}, {pipeline_mode = #tpu.pipeline_mode<synchronous>, transform_indices = @transform_5, window_bounds = array<i64: 1024, 256>}, {pipeline_mode = #tpu.pipeline_mode<synchronous>, transform_indices = @transform_6, window_bounds = array<i64: 1, 256>}, {transform_indices = @transform_7, window_bounds = array<i64: 16, 256>}]} {
    %c0 = arith.constant 0 : index
    %c0_0 = arith.constant 0 : index
    %0 = vector.load %arg1[%c0, %c0_0] : memref<16x256xf32, #tpu.memory_space<vmem>>, vector<16x256xf32>
    %cst = arith.constant dense<0.000000e+00> : vector<16xf32>
    %1 = vector.multi_reduction <add>, %0, %cst [1] : vector<16x256xf32> to vector<16xf32>
    %2 = vector.shape_cast %1 : vector<16xf32> to vector<16x1xf32>
    %cst_1 = arith.constant 2.560000e+02 : f32
    %3 = vector.broadcast %cst_1 : f32 to vector<16x1xf32>
    %4 = arith.divf %2, %3 : vector<16x1xf32>
    %5 = vector.broadcast %4 : vector<16x1xf32> to vector<16x256xf32>
    %6 = arith.subf %0, %5 : vector<16x256xf32>
    %7 = arith.mulf %6, %6 : vector<16x256xf32>
    %cst_2 = arith.constant dense<0.000000e+00> : vector<16xf32>
    %8 = vector.multi_reduction <add>, %7, %cst_2 [1] : vector<16x256xf32> to vector<16xf32>
    %9 = vector.shape_cast %8 : vector<16xf32> to vector<16x1xf32>
    %cst_3 = arith.constant 2.560000e+02 : f32
    %10 = vector.broadcast %cst_3 : f32 to vector<16x1xf32>
    %11 = arith.divf %9, %10 : vector<16x1xf32>
    %cst_4 = arith.constant 9.99999974E-6 : f32
    %12 = vector.broadcast %cst_4 : f32 to vector<16x1xf32>
    %13 = arith.addf %11, %12 : vector<16x1xf32>
    %14 = math.rsqrt %13 : vector<16x1xf32>
    %15 = vector.broadcast %14 : vector<16x1xf32> to vector<16x256xf32>
    %16 = arith.mulf %6, %15 : vector<16x256xf32>
    %c0_5 = arith.constant 0 : index
    %c0_6 = arith.constant 0 : index
    %17 = vector.load %arg2[%c0_5, %c0_6] : memref<1x256xf32, #tpu.memory_space<vmem>>, vector<1x256xf32>
    %18 = vector.broadcast %17 : vector<1x256xf32> to vector<16x256xf32>
    %19 = arith.mulf %16, %18 : vector<16x256xf32>
    %c0_7 = arith.constant 0 : index
    %c0_8 = arith.constant 0 : index
    %20 = vector.load %arg3[%c0_7, %c0_8] : memref<1x256xf32, #tpu.memory_space<vmem>>, vector<1x256xf32>
    %21 = vector.broadcast %20 : vector<1x256xf32> to vector<16x256xf32>
    %22 = arith.addf %19, %21 : vector<16x256xf32>
    %23 = arith.truncf %22 : vector<16x256xf32> to vector<16x256xbf16>
    %c0_9 = arith.constant 0 : index
    %c0_10 = arith.constant 0 : index
    %24 = vector.load %arg4[%c0_9, %c0_10] : memref<256x1024xbf16, #tpu.memory_space<vmem>>, vector<256x1024xbf16>
    %cst_11 = arith.constant dense<0.000000e+00> : vector<16x1024xf32>
    %25 = tpu.matmul %23, %24, %cst_11 {dimension_numbers = #tpu.dot_dimension_numbers<[1], [0], [0], [1], [0, 0, 1, 1], [], []>} : vector<16x256xbf16>, vector<256x1024xbf16>, vector<16x1024xf32> -> vector<16x1024xf32>
    %c0_12 = arith.constant 0 : index
    %c0_13 = arith.constant 0 : index
    %26 = vector.load %arg5[%c0_12, %c0_13] : memref<1x1024xf32, #tpu.memory_space<vmem>>, vector<1x1024xf32>
    %27 = vector.broadcast %26 : vector<1x1024xf32> to vector<16x1024xf32>
    %28 = arith.addf %25, %27 : vector<16x1024xf32>
    %cst_14 = arith.constant 0.000000e+00 : f32
    %29 = vector.broadcast %cst_14 : f32 to vector<16x1024xf32>
    %30 = arith.maximumf %28, %29 : vector<16x1024xf32>
    %31 = arith.truncf %30 : vector<16x1024xf32> to vector<16x1024xbf16>
    %c0_15 = arith.constant 0 : index
    %c0_16 = arith.constant 0 : index
    %32 = vector.load %arg6[%c0_15, %c0_16] : memref<1024x256xbf16, #tpu.memory_space<vmem>>, vector<1024x256xbf16>
    %cst_17 = arith.constant dense<0.000000e+00> : vector<16x256xf32>
    %33 = tpu.matmul %31, %32, %cst_17 {dimension_numbers = #tpu.dot_dimension_numbers<[1], [0], [0], [1], [0, 0, 1, 1], [], []>} : vector<16x1024xbf16>, vector<1024x256xbf16>, vector<16x256xf32> -> vector<16x256xf32>
    %c0_18 = arith.constant 0 : index
    %c0_19 = arith.constant 0 : index
    %34 = vector.load %arg7[%c0_18, %c0_19] : memref<1x256xf32, #tpu.memory_space<vmem>>, vector<1x256xf32>
    %35 = vector.broadcast %34 : vector<1x256xf32> to vector<16x256xf32>
    %36 = arith.addf %33, %35 : vector<16x256xf32>
    %c0_20 = arith.constant 0 : index
    %c0_21 = arith.constant 0 : index
    %37 = vector.load %arg8[%c0_20, %c0_21] : memref<16x256xf32, #tpu.memory_space<vmem>>, vector<16x256xf32>
    tpu.vector_store %arg8[%c0_20, %c0_21], %36 {strides = array<i32>} : memref<16x256xf32, #tpu.memory_space<vmem>>, vector<16x256xf32>,
    return
  }
  func.func @transform_0(%arg0: i32) -> (i32, i32) {
    %c0_i32 = arith.constant 0 : i32
    %c0_i32_0 = arith.constant 0 : i32
    return %arg0, %c0_i32 : i32, i32
  }
  func.func @transform_1(%arg0: i32) -> (i32, i32) {
    %c0_i32 = arith.constant 0 : i32
    %c0_i32_0 = arith.constant 0 : i32
    %c0_i32_1 = arith.constant 0 : i32
    return %c0_i32, %c0_i32_0 : i32, i32
  }
  func.func @transform_2(%arg0: i32) -> (i32, i32) {
    %c0_i32 = arith.constant 0 : i32
    %c0_i32_0 = arith.constant 0 : i32
    %c0_i32_1 = arith.constant 0 : i32
    return %c0_i32, %c0_i32_0 : i32, i32
  }
  func.func @transform_3(%arg0: i32) -> (i32, i32) {
    %c0_i32 = arith.constant 0 : i32
    %c0_i32_0 = arith.constant 0 : i32
    %c0_i32_1 = arith.constant 0 : i32
    return %c0_i32, %c0_i32_0 : i32, i32
  }
  func.func @transform_4(%arg0: i32) -> (i32, i32) {
    %c0_i32 = arith.constant 0 : i32
    %c0_i32_0 = arith.constant 0 : i32
    %c0_i32_1 = arith.constant 0 : i32
    return %c0_i32, %c0_i32_0 : i32, i32
  }
  func.func @transform_5(%arg0: i32) -> (i32, i32) {
    %c0_i32 = arith.constant 0 : i32
    %c0_i32_0 = arith.constant 0 : i32
    %c0_i32_1 = arith.constant 0 : i32
    return %c0_i32, %c0_i32_0 : i32, i32
  }
  func.func @transform_6(%arg0: i32) -> (i32, i32) {
    %c0_i32 = arith.constant 0 : i32
    %c0_i32_0 = arith.constant 0 : i32
    %c0_i32_1 = arith.constant 0 : i32
    return %c0_i32, %c0_i32_0 : i32, i32
  }
  func.func @transform_7(%arg0: i32) -> (i32, i32) {
    %c0_i32 = arith.constant 0 : i32
    %c0_i32_0 = arith.constant 0 : i32
    return %arg0, %c0_i32 : i32, i32
  }
}

</mosaic_0001>

<bundles_post_ra>
// kernel: tpu_custom_call.1
= control target key start
LH: loop header
LB: loop body
LE: loop exit
PB: predicated region body
PF: predicated region fallthrough
CT: control target
= control target key end

     0   :  { %12 = vsyncpa [#allocation3], 0  ;;  %s2887_s0 = inlined_call_operand.hbm [shape: f32[16,256], index: 0, kind: input, shape index: {}]   ;;  %s2888_s1 = inlined_call_operand.vmem [shape: f32[1,256], index: 1, kind: input, shape index: {}]   ;;  %s2889_s2 = inlined_call_operand.vmem [shape: f32[1,256], index: 2, kind: input, shape index: {}]   ;;  %s2890_s3 = inlined_call_operand.hbm [shape: bf16[256,1024], index: 3, kind: input, shape index: {}]   ;;  %s2891_s4 = inlined_call_operand.vmem [shape: f32[1,1024], index: 4, kind: input, shape index: {}]   ;;  %s2892_s5 = inlined_call_operand.hbm [shape: bf16[1024,256], index: 5, kind: input, shape index: {}]   ;;  %s2893_s6 = inlined_call_operand.vmem [shape: f32[1,256], index: 6, kind: input, shape index: {}]   ;;  %s2894_s7 = inlined_call_operand.hbm [shape: f32[16,256], index: 7, kind: output, shape index: {}]  }
   0x1   :  { %13 = vsyncpa [#allocation6], 0 }
   0x2   :  { %14 = vsyncpa [#allocation4], 0  ;;  %s2691_s24 = smov [#allocation5]   ;;  %s2597_s28 = scalar_lea.hbm %s2890_s3, 16384 }
   0x3   :  { %s36_s25 = sshll.u32 %s2691_s24, 4  ;;  %p2598_p0 = scmp.ne.s32.totalorder %s2890_s3, %s2597_s28  ;;  %s37_s25 = int_to_ptr.vmem [resolvable:$true] %s36_s25 }
   0x4   :  { %p2601_p1 = scmp.lt.u32.totalorder %s2597_s28, %s2890_s3 }
   0x6   :  { %p2603_p2 = pnand %p2601_p1, %p2598_p0 }
   0x8   :  { %2606 = shalt.err (!%p2603_p2)
}
   0x9   :  { %s2607_s10 = scalar_lea.vmem %s37_s25, 16384  ;;  %p2612_p4 = scmp.lt.s32.totalorder %s37_s25, %s37_s25 }
   0xa   :  { %p2608_p3 = scmp.ne.s32.totalorder %s37_s25, %s2607_s10  ;;  %p2613_p5 = scmp.lt.s32.totalorder %s2607_s10, %s2607_s10 }
   0xc   :  { %p2614_p6 = por %p2613_p5, %p2612_p4 }
   0xe   :  { %p2615_p7 = pnand %p2614_p6, %p2608_p3 }
  0x10   :  { %2618 = shalt.err (!%p2615_p7)
}
  0x11   :  { %s2692_s11 = smov 512   ;;  %s2693_s12 = smov 32  }
  0x12   :  { %42 = dma.hbm_to_vmem [thread:$0]  %s2890_s3, 16384, %s37_s25, [#allocation6], %s2692_s11, %s2692_s11, %s2693_s12  }
  0x13   :  { %s2694_s15 = smov [#allocation2]   ;;  %s2619_s19 = scalar_lea.hbm %s2887_s0, 512 }
  0x14   :  { %s20_s16 = sshll.u32 %s2694_s15, 4  ;;  %p2620_p8 = scmp.ne.s32.totalorder %s2887_s0, %s2619_s19  ;;  %s21_s16 = int_to_ptr.vmem [resolvable:$true] %s20_s16 }
  0x15   :  { %p2623_p9 = scmp.lt.u32.totalorder %s2619_s19, %s2887_s0 }
  0x17   :  { %p2625_p10 = pnand %p2623_p9, %p2620_p8 }
  0x19   :  { %2628 = shalt.err (!%p2625_p10)
}
  0x1a   :  { %s2629_s24 = scalar_lea.vmem %s21_s16, 512  ;;  %p2634_p12 = scmp.lt.s32.totalorder %s21_s16, %s21_s16 }
  0x1b   :  { %p2630_p11 = scmp.ne.s32.totalorder %s21_s16, %s2629_s24  ;;  %p2635_p13 = scmp.lt.s32.totalorder %s2629_s24, %s2629_s24 }
  0x1d   :  { %p2636_p0 = por %p2635_p13, %p2634_p12 }
  0x1f   :  { %p2637_p1 = pnand %p2636_p0, %p2630_p11 }
  0x21   :  { %2640 = shalt.err (!%p2637_p1)
}
  0x22   :  { %s2695_s3 = smov 256   ;;  %s2696_s25 = smov 16  }
  0x23   :  { %26 = dma.hbm_to_vmem [thread:$0]  %s2887_s0, 512, %s21_s16, [#allocation3], %s2695_s3, %s2695_s3, %s2696_s25  }
  0x24   :  { %s2697_s28 = smov [#allocation7]   ;;  %s2641_s9 = scalar_lea.hbm %s2892_s5, 16384 }
  0x25   :  { %s50_s29 = sshll.u32 %s2697_s28, 4  ;;  %p2642_p2 = scmp.ne.s32.totalorder %s2892_s5, %s2641_s9  ;;  %s51_s29 = int_to_ptr.vmem [resolvable:$true] %s50_s29 }
  0x26   :  { %p2645_p3 = scmp.lt.u32.totalorder %s2641_s9, %s2892_s5 }
  0x28   :  { %p2647_p4 = pnand %p2645_p3, %p2642_p2 }
  0x2a   :  { %2650 = shalt.err (!%p2647_p4)
}
  0x2b   :  { %s2651_s14 = scalar_lea.vmem %s51_s29, 16384  ;;  %p2656_p6 = scmp.lt.s32.totalorder %s51_s29, %s51_s29 }
  0x2c   :  { %p2652_p5 = scmp.ne.s32.totalorder %s51_s29, %s2651_s14  ;;  %p2657_p7 = scmp.lt.s32.totalorder %s2651_s14, %s2651_s14 }
  0x2e   :  { %p2658_p8 = por %p2657_p7, %p2656_p6 }
  0x30   :  { %p2659_p9 = pnand %p2658_p8, %p2652_p5 }
  0x32   :  { %2662 = shalt.err (!%p2659_p9)
}
  0x33   :  { %s2698_s0 = smov 128   ;;  %s2699_s15 = smov 8  }
  0x34   :  { %56 = dma.hbm_to_vmem [thread:$0]  %s2892_s5, 16384, %s51_s29, [#allocation6], %s2698_s0, %s2698_s0, %s2699_s15  }
  0x35   :  { %2685 = dma.done.wait [#allocation3], 512  }
  0x36   :  { %2686 = vsyncadd [#allocation3], 4294966784 }
  0x37   :  { %2687 = dma.done.wait [#allocation6], 32768  }
  0x38   :  { %2688 = vsyncadd [#allocation6], 4294934528  ;;  %v2780_v0 = vld [vmem:[#allocation2] sm:$0xff]  ;;  %v2782_v1 = vld [vmem:[#allocation2 + $0x8] sm:$0xff]  ;;  %s2700_s22 = smov [#allocation8]  }
  0x39   :  { %v2784_v2 = vld [vmem:[#allocation2 + $0x10] sm:$0xff]  ;;  %v72_v3 = vadd.f32 %v2782_v1, %v2780_v0  ;;  %v2788_v4 = vld [vmem:[#allocation2 + $0x18] sm:$0xff]  ;;  %v139_v6 = vld [vmem:[#allocation5] sm:$0xff]  ;;  %s2106_s23 = sshll.u32 %s2700_s22, 4  ;;  %s2107_s23 = int_to_ptr.vmem [resolvable:$true] %s2106_s23 }
  0x3a   :  { %v75_v5 = vadd.f32 %v2788_v4, %v2784_v2  ;;  %v143_v7 = vld [vmem:[#allocation5 + $0x20] sm:$0xff]  ;;  %p2668_p11 = scmp.lt.s32.totalorder %s2107_s23, %s2107_s23 }
  0x3b   :  { %73 = vadd.xlane.f32.xlu0 %v72_v3  ;;  %v147_v8 = vld [vmem:[#allocation5 + $0x40] sm:$0xff]  ;;  %v2120_v9 = vcombine.high %v139_v6, %v143_v7  ;;  %v2119_v10 = vcombine.low %v139_v6, %v143_v7 }
  0x3c   :  { %v151_v11 = vld [vmem:[#allocation5 + $0x60] sm:$0xff] }
  0x3d   :  { %v2128_v12 = vcombine.high %v147_v8, %v151_v11  ;;  %v155_v13 = vld [vmem:[#allocation5 + $0x80] sm:$0xff]  ;;  %949 = vmatprep.subr.bf16.mxu1 %v2120_v9  ;;  %v2127_v15 = vcombine.low %v147_v8, %v151_v11 }
  0x3e   :  { %v159_v14 = vld [vmem:[#allocation5 + $0xa0] sm:$0xff]  ;;  %950 = vmatpush1.bf16.msra.mxu1 %v2119_v10 }
  0x3f   :  { %76 = vadd.xlane.f32.xlu0 %v75_v5  ;;  %951 = vmatprep.subr.bf16.mxu1 %v2128_v12  ;;  %v2136_v16 = vcombine.high %v155_v13, %v159_v14  ;;  %v163_v17 = vld [vmem:[#allocation5 + $0xc0] sm:$0xff]  ;;  %v2135_v19 = vcombine.low %v155_v13, %v159_v14 }
  0x40   :  { %v167_v18 = vld [vmem:[#allocation5 + $0xe0] sm:$0xff] }
  0x41   :  { %v171_v20 = vld [vmem:[#allocation5 + $0x100] sm:$0xff]  ;;  %v2144_v22 = vcombine.high %v163_v17, %v167_v18  ;;  %v2143_v23 = vcombine.low %v163_v17, %v167_v18 }
  0x42   :  { %952 = vmatpush1.bf16.msra.mxu1 %v2127_v15  ;;  %v175_v21 = vld [vmem:[#allocation5 + $0x120] sm:$0xff] }
  0x43   :  { %953 = vmatprep.subr.bf16.mxu1 %v2136_v16  ;;  %v179_v24 = vld [vmem:[#allocation5 + $0x140] sm:$0xff]  ;;  %v2152_v26 = vcombine.high %v171_v20, %v175_v21  ;;  %v2151_v27 = vcombine.low %v171_v20, %v175_v21  ;;  %v140_v20 = vld [vmem:[#allocation5 + $0x8] sm:$0xff] }
  0x44   :  { %v183_v25 = vld [vmem:[#allocation5 + $0x160] sm:$0xff]  ;;  %v144_v21 = vld [vmem:[#allocation5 + $0x28] sm:$0xff] }
  0x45   :  { %v187_v28 = vld [vmem:[#allocation5 + $0x180] sm:$0xff]  ;;  %v2160_v30 = vcombine.high %v179_v24, %v183_v25  ;;  %v2159_v31 = vcombine.low %v179_v24, %v183_v25 }
  0x46   :  { %954 = vmatpush1.bf16.msra.mxu1 %v2135_v19  ;;  %v191_v29 = vld [vmem:[#allocation5 + $0x1a0] sm:$0xff] }
  0x47   :  { %955 = vmatprep.subr.bf16.mxu1 %v2144_v22  ;;  %v2168_v32 = vcombine.high %v187_v28, %v191_v29  ;;  %v195_v33 = vld [vmem:[#allocation5 + $0x1c0] sm:$0xff]  ;;  %v2167_v35 = vcombine.low %v187_v28, %v191_v29  ;;  %v2122_v22 = vcombine.high %v140_v20, %v144_v21  ;;  %v107_v28 = vlaneseq }
  0x48   :  { %v199_v34 = vld [vmem:[#allocation5 + $0x1e0] sm:$0xff] }
  0x49   :  { %v2176_v36 = vcombine.high %v195_v33, %v199_v34  ;;  %v203_v37 = vld [vmem:[#allocation5 + $0x200] sm:$0xff]  ;;  %v2175_v39 = vcombine.low %v195_v33, %v199_v34 }
  0x4a   :  { %956 = vmatpush1.bf16.msra.mxu1 %v2143_v23  ;;  %v207_v38 = vld [vmem:[#allocation5 + $0x220] sm:$0xff]  ;;  %v2121_v23 = vcombine.low %v140_v20, %v144_v21  ;;  %v208_v20 = vld [vmem:[#allocation5 + $0x228] sm:$0xff] }
  0x4b   :  { %957 = vmatprep.subr.bf16.mxu1 %v2152_v26  ;;  %v2184_v40 = vcombine.high %v203_v37, %v207_v38  ;;  %v211_v41 = vld [vmem:[#allocation5 + $0x240] sm:$0xff]  ;;  %v2183_v43 = vcombine.low %v203_v37, %v207_v38 }
  0x4c   :  { %v215_v42 = vld [vmem:[#allocation5 + $0x260] sm:$0xff] }
  0x4d   :  { %v2192_v44 = vcombine.high %v211_v41, %v215_v42  ;;  %v2191_v59 = vcombine.low %v211_v41, %v215_v42  ;;  %v219_v60 = vld [vmem:[#allocation5 + $0x280] sm:$0xff] }
  0x4e   :  { %958 = vmatpush1.bf16.msra.mxu1 %v2151_v27  ;;  %v223_v61 = vld [vmem:[#allocation5 + $0x2a0] sm:$0xff] }
  0x4f   :  { %959 = vmatprep.subr.bf16.mxu1 %v2160_v30  ;;  %v2200_v62 = vcombine.high %v219_v60, %v223_v61  ;;  %v2199_v63 = vcombine.low %v219_v60, %v223_v61  ;;  %v239_v5 = vld [vmem:[#allocation5 + $0x320] sm:$0xff]  ;;  %v160_v61 = vld [vmem:[#allocation5 + $0xa8] sm:$0xff] }
  0x50   :  { %v243_v8 = vld [vmem:[#allocation5 + $0x340] sm:$0xff] }
  0x51   :  { %v247_v9 = vld [vmem:[#allocation5 + $0x360] sm:$0xff] }
  0x52   :  { %960 = vmatpush1.bf16.msra.mxu1 %v2159_v31  ;;  %v2224_v10 = vcombine.high %v243_v8, %v247_v9  ;;  %v2223_v11 = vcombine.low %v243_v8, %v247_v9  ;;  %v251_v12 = vld [vmem:[#allocation5 + $0x380] sm:$0xff]  ;;  %v2812_v31 = vshrl.u32 %v107_v28, 7  ;;  %v184_v8 = vld [vmem:[#allocation5 + $0x168] sm:$0xff] }
  0x53   :  { %961 = vmatprep.subr.bf16.mxu1 %v2168_v32  ;;  %v255_v13 = vld [vmem:[#allocation5 + $0x3a0] sm:$0xff] }
  0x54   :  { %v2232_v14 = vcombine.high %v251_v12, %v255_v13  ;;  %v2231_v15 = vcombine.low %v251_v12, %v255_v13  ;;  %v259_v16 = vld [vmem:[#allocation5 + $0x3c0] sm:$0xff]  ;;  %v2815_v32 = vsub.s32 1, %v2812_v31  ;;  %v2818_v33 = vsub.s32 0, %v2812_v31  ;;  %v192_v12 = vld [vmem:[#allocation5 + $0x1a8] sm:$0xff] }
  0x55   :  { %v263_v17 = vld [vmem:[#allocation5 + $0x3e0] sm:$0xff] }
  0x56   :  { %962 = vmatpush1.bf16.msra.mxu1 %v2167_v35  ;;  %v2240_v18 = vcombine.high %v259_v16, %v263_v17  ;;  %v2239_v19 = vcombine.low %v259_v16, %v263_v17  ;;  %v105_v34 = vld [vmem:[%s2888_s1] sm:$0x3]  ;;  %v200_v16 = vld [vmem:[#allocation5 + $0x1e8] sm:$0xff] }
  0x57   :  { %963 = vmatprep.subr.bf16.mxu1 %v2176_v36  ;;  %v114_v38 = vrot.slane %v105_v34, %v2815_v32 }
  0x5a   :  { %964 = vmatpush1.bf16.msra.mxu1 %v2175_v39  ;;  %v121_v39 = vld [vmem:[%s2889_s2] sm:$0x3] }
  0x5b   :  { %965 = vmatprep.subr.bf16.mxu1 %v2184_v40  ;;  %v110_v40 = vrot.slane %v105_v34, %v2818_v33  ;;  %v130_v42 = vrot.slane %v121_v39, %v2815_v32  ;;  %v2404_v34 = vld [vmem:[#allocation7 + $0x14] ss:$8 sps:$4 sm:$0xff]  }
  0x5e   :  { %966 = vmatpush1.bf16.msra.mxu1 %v2183_v43  ;;  %v126_v43 = vrot.slane %v121_v39, %v2818_v33  ;;  %v232_v39 = vld [vmem:[#allocation5 + $0x2e8] sm:$0xff] }
  0x5f   :  { %967 = vmatprep.subr.bf16.mxu1 %v2192_v44 }
  0x62   :  { %968 = vmatpush1.bf16.msra.mxu1 %v2191_v59 }
  0x63   :  { %969 = vmatprep.subr.bf16.mxu1 %v2200_v62 }
  0x66   :  { %970 = vmatpush1.bf16.msra.mxu1 %v2199_v63  ;;  %v164_v63 = vld [vmem:[#allocation5 + $0xc8] sm:$0xff] }
  0xc8   :  { %v74_v45 = vpop.xlane.xlu0 %73 }
  0xc9   :  { %v79_v46 = vmul.f32 0.00390625, %v74_v45 }
  0xcb   :  { %v2793_v47 = vsub.f32 %v2780_v0, %v79_v46  ;;  %v2796_v48 = vsub.f32 %v2782_v1, %v79_v46  ;;  %v227_v0 = vld [vmem:[#allocation5 + $0x2c0] sm:$0xff] }
  0xcc   :  { %v77_v49 = vpop.xlane.xlu0 %76  ;;  %v231_v1 = vld [vmem:[#allocation5 + $0x2e0] sm:$0xff] }
  0xcd   :  { %v80_v50 = vmul.f32 0.00390625, %v77_v49  ;;  %v85_v51 = vmul.f32 %v2793_v47, %v2793_v47  ;;  %v86_v52 = vmul.f32 %v2796_v48, %v2796_v48  ;;  %v2207_v3 = vcombine.low %v227_v0, %v231_v1 }
  0xcf   :  { %v2803_v53 = vsub.f32 %v2784_v2, %v80_v50  ;;  %v2806_v54 = vsub.f32 %v2788_v4, %v80_v50  ;;  %v89_v55 = vadd.f32 %v86_v52, %v85_v51  ;;  %v2208_v2 = vcombine.high %v227_v0, %v231_v1  ;;  %v235_v4 = vld [vmem:[#allocation5 + $0x300] sm:$0xff]  ;;  %v168_v0 = vld [vmem:[#allocation5 + $0xe8] sm:$0xff] }
  0xd0   :  { %v2216_v6 = vcombine.high %v235_v4, %v239_v5  ;;  %v2215_v7 = vcombine.low %v235_v4, %v239_v5  ;;  %v176_v4 = vld [vmem:[#allocation5 + $0x128] sm:$0xff]  ;;  %v2145_v5 = vcombine.low %v164_v63, %v168_v0 }
  0xd1   :  { %90 = vadd.xlane.f32.xlu1 %v89_v55  ;;  %v87_v56 = vmul.f32 %v2803_v53, %v2803_v53  ;;  %v88_v57 = vmul.f32 %v2806_v54, %v2806_v54  ;;  %971 = vmatprep.subr.bf16.mxu1 %v2208_v2  ;;  %v2146_v2 = vcombine.high %v164_v63, %v168_v0  ;;  %v260_v0 = vld [vmem:[#allocation5 + $0x3c8] sm:$0xff] }
  0xd2   :  { %972 = vmatpush1.bf16.msra.mxu1 %v2207_v3  ;;  %v172_v3 = vld [vmem:[#allocation5 + $0x108] sm:$0xff] }
  0xd3   :  { %v92_v58 = vadd.f32 %v88_v57, %v87_v56  ;;  %973 = vmatprep.subr.bf16.mxu1 %v2216_v6  ;;  %v148_v56 = vld [vmem:[#allocation5 + $0x48] sm:$0xff]  ;;  %v2154_v6 = vcombine.high %v172_v3, %v176_v4  ;;  %v2153_v9 = vcombine.low %v172_v3, %v176_v4 }
  0xd4   :  { %v152_v57 = vld [vmem:[#allocation5 + $0x68] sm:$0xff] }
  0xd5   :  { %93 = vadd.xlane.f32.xlu1 %v92_v58  ;;  %v2130_v60 = vcombine.high %v148_v56, %v152_v57  ;;  %v2421_v4 = vld [vmem:[#allocation7 + $0x60] ss:$8 sps:$4 sm:$0xff]  }
  0xd6   :  { %974 = vmatpush1.bf16.msra.mxu1 %v2215_v7  ;;  %v180_v7 = vld [vmem:[#allocation5 + $0x148] sm:$0xff] }
  0xd7   :  { %975 = vmatprep.subr.bf16.mxu1 %v2224_v10  ;;  %v2162_v10 = vcombine.high %v180_v7, %v184_v8  ;;  %v2161_v13 = vcombine.low %v180_v7, %v184_v8  ;;  %v145_v7 = vld [vmem:[#allocation5 + $0x30] sm:$0xff] }
  0xd8   :  { %v2422_v8 = vld [vmem:[#allocation7 + $0x74] ss:$8 sps:$4 sm:$0xff]  }
  0xda   :  { %976 = vmatpush1.bf16.msra.mxu1 %v2223_v11  ;;  %v188_v11 = vld [vmem:[#allocation5 + $0x188] sm:$0xff] }
  0xdb   :  { %977 = vmatprep.subr.bf16.mxu1 %v2232_v14  ;;  %v2170_v14 = vcombine.high %v188_v11, %v192_v12  ;;  %v2169_v17 = vcombine.low %v188_v11, %v192_v12  ;;  %v149_v12 = vld [vmem:[#allocation5 + $0x50] sm:$0xff] }
  0xde   :  { %978 = vmatpush1.bf16.msra.mxu1 %v2231_v15  ;;  %v196_v15 = vld [vmem:[#allocation5 + $0x1c8] sm:$0xff] }
  0xdf   :  { %979 = vmatprep.subr.bf16.mxu1 %v2240_v18  ;;  %v2178_v18 = vcombine.high %v196_v15, %v200_v16  ;;  %v2177_v21 = vcombine.low %v196_v15, %v200_v16  ;;  %v2427_v16 = vld [vmem:[#allocation7 + $0x80] ss:$8 sps:$4 sm:$0xff]  }
  0xe2   :  { %980 = vmatpush1.bf16.msra.mxu1 %v2239_v19  ;;  %v204_v19 = vld [vmem:[#allocation5 + $0x208] sm:$0xff] }
  0xe3   :  { %992 = vmatprep.subr.bf16.mxu1 %v2122_v22  ;;  %v2186_v22 = vcombine.high %v204_v19, %v208_v20 }
 0x15e   :  { %v91_v24 = vpop.xlane.xlu1 %90 }
 0x15f   :  { %v95_v25 = vmul.f32 0.00390625, %v91_v24  ;;  %v216_v24 = vld [vmem:[#allocation5 + $0x268] sm:$0xff] }
 0x161   :  { %v97_v26 = vadd.f32 1e-05, %v95_v25  ;;  %v2401_v25 = vld [vmem:[#allocation7 + $0x4] ss:$8 sps:$4 sm:$0xff]  }
 0x162   :  { %v94_v27 = vpop.xlane.xlu1 %93  ;;  %1925 = vmatprep.subr.bf16.mxu0 %v2401_v25  ;;  %v165_v25 = vld [vmem:[#allocation5 + $0xd0] sm:$0xff] }
 0x163   :  { %2593 = vrsqrt.f32 %v97_v26  ;;  %v96_v29 = vmul.f32 0.00390625, %v94_v27  ;;  %v2185_v26 = vcombine.low %v204_v19, %v208_v20  ;;  %v2403_v27 = vld [vmem:[#allocation7] ss:$8 sps:$4 sm:$0xff]   ;;  %v161_v19 = vld [vmem:[#allocation5 + $0xb0] sm:$0xff] }
 0x164   :  { %1926 = vmatpush1.bf16.msra.mxu0 %v2403_v27  ;;  %v2428_v20 = vld [vmem:[#allocation7 + $0x94] ss:$8 sps:$4 sm:$0xff]   ;;  %v2433_v27 = vld [vmem:[#allocation7 + $0xa0] ss:$8 sps:$4 sm:$0xff]  }
 0x165   :  { %v98_v30 = vadd.f32 1e-05, %v96_v29  ;;  %v220_v29 = vld [vmem:[#allocation5 + $0x288] sm:$0xff]  ;;  %1927 = vmatprep.subr.bf16.mxu0 %v2404_v34  ;;  %v173_v34 = vld [vmem:[#allocation5 + $0x110] sm:$0xff] }
 0x167   :  { %2595 = vrsqrt.f32 %v98_v30  ;;  %v224_v30 = vld [vmem:[#allocation5 + $0x2a8] sm:$0xff] }
 0x16d   :  { %v2594_v35 = vpop.eup %2593 }
 0x16e   :  { %v101_v36 = vmul.f32 %v2594_v35, %v2793_v47  ;;  %v102_v37 = vmul.f32 %v2594_v35, %v2796_v48 }
 0x170   :  { %v118_v46 = vmul.f32 %v114_v38, %v102_v37  ;;  %v117_v47 = vmul.f32 %v110_v40, %v101_v36  ;;  %v2406_v36 = vld [vmem:[#allocation7 + $0x10] ss:$8 sps:$4 sm:$0xff]   ;;  %v2202_v37 = vcombine.high %v220_v29, %v224_v30 }
 0x171   :  { %v2596_v41 = vpop.eup %2595  ;;  %1928 = vmatpush1.bf16.msra.mxu0 %v2406_v36  ;;  %v2436_v36 = vld [vmem:[#allocation7 + $0xb0] ss:$8 sps:$4 sm:$0xff]  }
 0x172   :  { %v103_v44 = vmul.f32 %v2596_v41, %v2803_v53  ;;  %v104_v45 = vmul.f32 %v2596_v41, %v2806_v54  ;;  %v134_v50 = vadd.f32 %v130_v42, %v118_v46  ;;  %v133_v52 = vadd.f32 %v126_v43, %v117_v47  ;;  %v156_v53 = vld [vmem:[#allocation5 + $0x88] sm:$0xff]  ;;  %v2410_v46 = vld [vmem:[#allocation7 + $0x34] ss:$8 sps:$4 sm:$0xff]  }
 0x173   :  { %v2129_v54 = vcombine.low %v148_v56, %v152_v57  ;;  %v2138_v62 = vcombine.high %v156_v53, %v160_v61  ;;  %v2137_v1 = vcombine.low %v156_v53, %v160_v61  ;;  %v2201_v41 = vcombine.low %v220_v29, %v224_v30  ;;  %v2415_v56 = vld [vmem:[#allocation7 + $0x40] ss:$8 sps:$4 sm:$0xff]   ;;  %v2416_v61 = vld [vmem:[#allocation7 + $0x54] ss:$8 sps:$4 sm:$0xff]  }
 0x174   :  { %v120_v48 = vmul.f32 %v114_v38, %v104_v45  ;;  %v119_v49 = vmul.f32 %v110_v40, %v103_v44  ;;  %v228_v38 = vld [vmem:[#allocation5 + $0x2c8] sm:$0xff] }
 0x175   :  { %v2407_v40 = vld [vmem:[#allocation7 + $0x24] ss:$8 sps:$4 sm:$0xff]   ;;  %v2209_v47 = vcombine.low %v228_v38, %v232_v39 }
 0x176   :  { %v136_v51 = vadd.f32 %v130_v42, %v120_v48  ;;  %v135_v55 = vadd.f32 %v126_v43, %v119_v49  ;;  %v2409_v42 = vld [vmem:[#allocation7 + $0x20] ss:$8 sps:$4 sm:$0xff]   ;;  %v2210_v43 = vcombine.high %v228_v38, %v232_v39  ;;  %1929 = vmatprep.subr.bf16.mxu0 %v2407_v40  ;;  %v2412_v48 = vld [vmem:[#allocation7 + $0x30] ss:$8 sps:$4 sm:$0xff]  }
 0x177   :  { %v236_v44 = vld [vmem:[#allocation5 + $0x308] sm:$0xff]  ;;  %1930 = vmatpush1.bf16.msra.mxu0 %v2409_v42  ;;  %v181_v40 = vld [vmem:[#allocation5 + $0x150] sm:$0xff] }
 0x178   :  { %v2834_v58 = vpack.c.bf16 %v136_v51, %v134_v50  ;;  %v2836_v59 = vpack.c.bf16 %v135_v55, %v133_v52  ;;  %v240_v45 = vld [vmem:[#allocation5 + $0x328] sm:$0xff]  ;;  %1931 = vmatprep.subr.bf16.mxu0 %v2410_v46  ;;  %v189_v46 = vld [vmem:[#allocation5 + $0x190] sm:$0xff] }
 0x179   :  { %v2218_v49 = vcombine.high %v236_v44, %v240_v45  ;;  %v244_v50 = vld [vmem:[#allocation5 + $0x348] sm:$0xff]  ;;  %v2217_v55 = vcombine.low %v236_v44, %v240_v45 }
 0x17a   :  { %981 = vmatprep.mubr.bf16.mxu1 %v2834_v58  ;;  %v248_v51 = vld [vmem:[#allocation5 + $0x368] sm:$0xff] }
 0x17b   :  { %982 = vmatmul.mubr.bf16.vlgmr.msra.gmra.mrb[0].mxu1 %v2836_v59  ;;  %1932 = vmatpush1.bf16.msra.mxu0 %v2412_v48  ;;  %v2413_v52 = vld [vmem:[#allocation7 + $0x44] ss:$8 sps:$4 sm:$0xff]   ;;  %v2226_v57 = vcombine.high %v244_v50, %v248_v51  ;;  %v2439_v42 = vld [vmem:[#allocation7 + $0xc0] ss:$8 sps:$4 sm:$0xff]   ;;  %v2442_v48 = vld [vmem:[#allocation7 + $0xd0] ss:$8 sps:$4 sm:$0xff]  }
 0x17c   :  { %993 = vmatpush1.bf16.msra.mxu1 %v2121_v23  ;;  %1024 = vmatprep.mubr.bf16.mxu1 %v2834_v58  ;;  %v212_v23 = vld [vmem:[#allocation5 + $0x248] sm:$0xff] }
 0x17d   :  { %994 = vmatprep.subr.bf16.mxu1 %v2130_v60  ;;  %v2194_v28 = vcombine.high %v212_v23, %v216_v24  ;;  %v2193_v35 = vcombine.low %v212_v23, %v216_v24  ;;  %1933 = vmatprep.subr.bf16.mxu0 %v2413_v52  ;;  %v252_v60 = vld [vmem:[#allocation5 + $0x388] sm:$0xff]  ;;  %v201_v52 = vld [vmem:[#allocation5 + $0x1f0] sm:$0xff] }
 0x17e   :  { %v256_v53 = vld [vmem:[#allocation5 + $0x3a8] sm:$0xff] }
 0x17f   :  { %1934 = vmatpush1.bf16.msra.mxu0 %v2415_v56  ;;  %v2234_v63 = vcombine.high %v252_v60, %v256_v53  ;;  %v2233_v3 = vcombine.low %v252_v60, %v256_v53  ;;  %v205_v53 = vld [vmem:[#allocation5 + $0x210] sm:$0xff] }
 0x180   :  { %995 = vmatpush1.bf16.msra.mxu1 %v2129_v54  ;;  %v2225_v54 = vcombine.low %v244_v50, %v248_v51  ;;  %1935 = vmatprep.subr.bf16.mxu0 %v2416_v61  ;;  %v197_v51 = vld [vmem:[#allocation5 + $0x1d0] sm:$0xff] }
 0x181   :  { %996 = vmatprep.subr.bf16.mxu1 %v2138_v62  ;;  %v2418_v62 = vld [vmem:[#allocation7 + $0x50] ss:$8 sps:$4 sm:$0xff]   ;;  %v2180_v60 = vcombine.high %v197_v51, %v201_v52 }
 0x182   :  { %v209_v61 = vld [vmem:[#allocation5 + $0x230] sm:$0xff] }
 0x183   :  { %1936 = vmatpush1.bf16.msra.mxu0 %v2418_v62  ;;  %v2179_v62 = vcombine.low %v197_v51, %v201_v52 }
 0x184   :  { %997 = vmatpush1.bf16.msra.mxu1 %v2137_v1  ;;  %v264_v1 = vld [vmem:[#allocation5 + $0x3e8] sm:$0xff] }
 0x185   :  { %998 = vmatprep.subr.bf16.mxu1 %v2146_v2  ;;  %v2419_v2 = vld [vmem:[#allocation7 + $0x64] ss:$8 sps:$4 sm:$0xff]  }
 0x186   :  { %1937 = vmatprep.subr.bf16.mxu0 %v2419_v2  ;;  %v217_v2 = vld [vmem:[#allocation5 + $0x270] sm:$0xff] }
 0x187   :  { %1938 = vmatpush1.bf16.msra.mxu0 %v2421_v4  ;;  %v2187_v4 = vcombine.low %v205_v53, %v209_v61 }
 0x188   :  { %999 = vmatpush1.bf16.msra.mxu1 %v2145_v5  ;;  %v2242_v5 = vcombine.high %v260_v0, %v264_v1  ;;  %1939 = vmatprep.subr.bf16.mxu0 %v2422_v8 }
 0x189   :  { %1000 = vmatprep.subr.bf16.mxu1 %v2154_v6  ;;  %v141_v6 = vld [vmem:[#allocation5 + $0x10] sm:$0xff] }
 0x18a   :  { %v2124_v11 = vcombine.high %v141_v6, %v145_v7  ;;  %v2123_v15 = vcombine.low %v141_v6, %v145_v7  ;;  %v221_v6 = vld [vmem:[#allocation5 + $0x290] sm:$0xff] }
 0x18b   :  { %v225_v7 = vld [vmem:[#allocation5 + $0x2b0] sm:$0xff] }
 0x18c   :  { %1001 = vmatpush1.bf16.msra.mxu1 %v2153_v9  ;;  %v2241_v9 = vcombine.low %v260_v0, %v264_v1  ;;  %v2188_v0 = vcombine.high %v205_v53, %v209_v61  ;;  %v213_v1 = vld [vmem:[#allocation5 + $0x250] sm:$0xff]  ;;  %v194_v53 = vld [vmem:[#allocation5 + $0x1b8] sm:$0xff] }
 0x18d   :  { %1002 = vmatprep.subr.bf16.mxu1 %v2162_v10  ;;  %v2424_v10 = vld [vmem:[#allocation7 + $0x70] ss:$8 sps:$4 sm:$0xff]   ;;  %v2195_v8 = vcombine.low %v213_v1, %v217_v2 }
 0x18e   :  { %1940 = vmatpush1.bf16.msra.mxu0 %v2424_v10  ;;  %v229_v10 = vld [vmem:[#allocation5 + $0x2d0] sm:$0xff] }
 0x190   :  { %1003 = vmatpush1.bf16.msra.mxu1 %v2161_v13  ;;  %v153_v13 = vld [vmem:[#allocation5 + $0x70] sm:$0xff] }
 0x191   :  { %1004 = vmatprep.subr.bf16.mxu1 %v2170_v14  ;;  %v2425_v14 = vld [vmem:[#allocation7 + $0x84] ss:$8 sps:$4 sm:$0xff]   ;;  %v2131_v23 = vcombine.low %v149_v12, %v153_v13 }
 0x192   :  { %1941 = vmatprep.subr.bf16.mxu0 %v2425_v14  ;;  %v237_v14 = vld [vmem:[#allocation5 + $0x310] sm:$0xff] }
 0x193   :  { %1942 = vmatpush1.bf16.msra.mxu0 %v2427_v16 }
 0x194   :  { %1005 = vmatpush1.bf16.msra.mxu1 %v2169_v17  ;;  %v2132_v17 = vcombine.high %v149_v12, %v153_v13  ;;  %1943 = vmatprep.subr.bf16.mxu0 %v2428_v20  ;;  %v2203_v12 = vcombine.low %v221_v6, %v225_v7 }
 0x195   :  { %1006 = vmatprep.subr.bf16.mxu1 %v2178_v18  ;;  %v157_v18 = vld [vmem:[#allocation5 + $0x90] sm:$0xff] }
 0x196   :  { %v2140_v24 = vcombine.high %v157_v18, %v161_v19  ;;  %v2139_v29 = vcombine.low %v157_v18, %v161_v19  ;;  %v245_v18 = vld [vmem:[#allocation5 + $0x350] sm:$0xff] }
 0x197   :  { %v249_v19 = vld [vmem:[#allocation5 + $0x370] sm:$0xff] }
 0x198   :  { %1007 = vmatpush1.bf16.msra.mxu1 %v2177_v21  ;;  %v2430_v21 = vld [vmem:[#allocation7 + $0x90] ss:$8 sps:$4 sm:$0xff]  }
 0x199   :  { %1008 = vmatprep.subr.bf16.mxu1 %v2186_v22  ;;  %v2431_v22 = vld [vmem:[#allocation7 + $0xa4] ss:$8 sps:$4 sm:$0xff]   ;;  %1944 = vmatpush1.bf16.msra.mxu0 %v2430_v21  ;;  %v2228_v21 = vcombine.high %v245_v18, %v249_v19 }
 0x19a   :  { %1945 = vmatprep.subr.bf16.mxu0 %v2431_v22  ;;  %v253_v22 = vld [vmem:[#allocation5 + $0x390] sm:$0xff] }
 0x19c   :  { %1009 = vmatpush1.bf16.msra.mxu1 %v2185_v26  ;;  %v169_v26 = vld [vmem:[#allocation5 + $0xf0] sm:$0xff] }
 0x19d   :  { %1010 = vmatprep.subr.bf16.mxu1 %v2194_v28  ;;  %v2434_v28 = vld [vmem:[#allocation7 + $0xb4] ss:$8 sps:$4 sm:$0xff]   ;;  %v2148_v30 = vcombine.high %v165_v25, %v169_v26  ;;  %1946 = vmatpush1.bf16.msra.mxu0 %v2433_v27  ;;  %v2147_v38 = vcombine.low %v165_v25, %v169_v26 }
 0x19e   :  { %1947 = vmatprep.subr.bf16.mxu0 %v2434_v28  ;;  %v261_v26 = vld [vmem:[#allocation5 + $0x3d0] sm:$0xff] }
 0x19f   :  { %v265_v27 = vld [vmem:[#allocation5 + $0x3f0] sm:$0xff] }
 0x1a0   :  { %1011 = vmatpush1.bf16.msra.mxu1 %v2193_v35  ;;  %v177_v35 = vld [vmem:[#allocation5 + $0x130] sm:$0xff] }
 0x1a1   :  { %1012 = vmatprep.subr.bf16.mxu1 %v2202_v37  ;;  %v2437_v37 = vld [vmem:[#allocation7 + $0xc4] ss:$8 sps:$4 sm:$0xff]   ;;  %v2156_v39 = vcombine.high %v173_v34, %v177_v35  ;;  %1948 = vmatpush1.bf16.msra.mxu0 %v2436_v36  ;;  %v2155_v44 = vcombine.low %v173_v34, %v177_v35  ;;  %v146_v34 = vld [vmem:[#allocation5 + $0x38] sm:$0xff]  ;;  %v2243_v35 = vcombine.low %v261_v26, %v265_v27 }
 0x1a2   :  { %1949 = vmatprep.subr.bf16.mxu0 %v2437_v37  ;;  %v150_v37 = vld [vmem:[#allocation5 + $0x58] sm:$0xff] }
 0x1a4   :  { %1013 = vmatpush1.bf16.msra.mxu1 %v2201_v41  ;;  %v185_v41 = vld [vmem:[#allocation5 + $0x170] sm:$0xff] }
 0x1a5   :  { %1014 = vmatprep.subr.bf16.mxu1 %v2210_v43  ;;  %v2440_v43 = vld [vmem:[#allocation7 + $0xd4] ss:$8 sps:$4 sm:$0xff]   ;;  %v2164_v45 = vcombine.high %v181_v40, %v185_v41  ;;  %1950 = vmatpush1.bf16.msra.mxu0 %v2439_v42 }
 0x1a6   :  { %1951 = vmatprep.subr.bf16.mxu0 %v2440_v43  ;;  %v162_v42 = vld [vmem:[#allocation5 + $0xb8] sm:$0xff] }
 0x1a8   :  { %1015 = vmatpush1.bf16.msra.mxu1 %v2209_v47  ;;  %v193_v47 = vld [vmem:[#allocation5 + $0x1b0] sm:$0xff] }
 0x1a9   :  { %1016 = vmatprep.subr.bf16.mxu1 %v2218_v49  ;;  %v2163_v49 = vcombine.low %v181_v40, %v185_v41  ;;  %v2172_v50 = vcombine.high %v189_v46, %v193_v47  ;;  %1952 = vmatpush1.bf16.msra.mxu0 %v2442_v48  ;;  %v2171_v56 = vcombine.low %v189_v46, %v193_v47  ;;  %v158_v41 = vld [vmem:[#allocation5 + $0x98] sm:$0xff] }
 0x1aa   :  { %v170_v46 = vld [vmem:[#allocation5 + $0xf8] sm:$0xff]  ;;  %v2141_v47 = vcombine.low %v158_v41, %v162_v42 }
 0x1ac   :  { %1017 = vmatpush1.bf16.msra.mxu1 %v2217_v55  ;;  %v2443_v55 = vld [vmem:[#allocation7 + $0xe4] ss:$8 sps:$4 sm:$0xff]  }
 0x1ad   :  { %1018 = vmatprep.subr.bf16.mxu1 %v2226_v57  ;;  %v2445_v57 = vld [vmem:[#allocation7 + $0xe0] ss:$8 sps:$4 sm:$0xff]   ;;  %1953 = vmatprep.subr.bf16.mxu0 %v2443_v55  ;;  %v182_v55 = vld [vmem:[#allocation5 + $0x158] sm:$0xff] }
 0x1ae   :  { %1954 = vmatpush1.bf16.msra.mxu0 %v2445_v57 }
 0x1b0   :  { %1019 = vmatpush1.bf16.msra.mxu1 %v2225_v54  ;;  %v2446_v54 = vld [vmem:[#allocation7 + $0xf4] ss:$8 sps:$4 sm:$0xff]  }
 0x1b1   :  { %1020 = vmatprep.subr.bf16.mxu1 %v2234_v63  ;;  %v2448_v63 = vld [vmem:[#allocation7 + $0xf0] ss:$8 sps:$4 sm:$0xff]   ;;  %1955 = vmatprep.subr.bf16.mxu0 %v2446_v54 }
 0x1b2   :  { %1956 = vmatpush1.bf16.msra.mxu0 %v2448_v63  ;;  %v202_v63 = vld [vmem:[#allocation5 + $0x1f8] sm:$0xff] }
 0x1b4   :  { %1021 = vmatpush1.bf16.msra.mxu1 %v2233_v3  ;;  %v2451_v3 = vld [vmem:[#allocation7 + $0x104] ss:$8 sps:$4 sm:$0xff]  }
 0x1b5   :  { %1022 = vmatprep.subr.bf16.mxu1 %v2242_v5  ;;  %v2196_v5 = vcombine.high %v213_v1, %v217_v2  ;;  %1968 = vmatprep.subr.bf16.mxu0 %v2451_v3  ;;  %v206_v2 = vld [vmem:[#allocation5 + $0x218] sm:$0xff] }
 0x1b6   :  { %v210_v3 = vld [vmem:[#allocation5 + $0x238] sm:$0xff] }
 0x1b8   :  { %1023 = vmatpush1.bf16.msra.mxu1 %v2241_v9  ;;  %v2204_v9 = vcombine.high %v221_v6, %v225_v7  ;;  %v214_v6 = vld [vmem:[#allocation5 + $0x258] sm:$0xff] }
 0x1b9   :  { %1035 = vmatprep.subr.bf16.mxu1 %v2124_v11  ;;  %v233_v11 = vld [vmem:[#allocation5 + $0x2f0] sm:$0xff]  ;;  %v218_v7 = vld [vmem:[#allocation5 + $0x278] sm:$0xff] }
 0x1ba   :  { %v2212_v13 = vcombine.high %v229_v10, %v233_v11  ;;  %v2211_v16 = vcombine.low %v229_v10, %v233_v11  ;;  %v222_v10 = vld [vmem:[#allocation5 + $0x298] sm:$0xff] }
 0x1bb   :  { %1025 = vmatmul.mubr.bf16.vlgmr.msra.gmra.mrb[4].mxu1 %v2836_v59  ;;  %v226_v11 = vld [vmem:[#allocation5 + $0x2b8] sm:$0xff] }
 0x1bc   :  { %1036 = vmatpush1.bf16.msra.mxu1 %v2123_v15  ;;  %1067 = vmatprep.mubr.bf16.mxu1 %v2834_v58  ;;  %v241_v15 = vld [vmem:[#allocation5 + $0x330] sm:$0xff] }
 0x1bd   :  { %1037 = vmatprep.subr.bf16.mxu1 %v2132_v17  ;;  %v2220_v17 = vcombine.high %v237_v14, %v241_v15  ;;  %v2219_v20 = vcombine.low %v237_v14, %v241_v15  ;;  %v230_v14 = vld [vmem:[#allocation5 + $0x2d8] sm:$0xff] }
 0x1be   :  { %v234_v15 = vld [vmem:[#allocation5 + $0x2f8] sm:$0xff] }
 0x1c0   :  { %1038 = vmatpush1.bf16.msra.mxu1 %v2131_v23  ;;  %v257_v23 = vld [vmem:[#allocation5 + $0x3b0] sm:$0xff] }
 0x1c1   :  { %1039 = vmatprep.subr.bf16.mxu1 %v2140_v24  ;;  %v2227_v24 = vcombine.low %v245_v18, %v249_v19  ;;  %v2236_v25 = vcombine.high %v253_v22, %v257_v23  ;;  %v2235_v28 = vcombine.low %v253_v22, %v257_v23  ;;  %v238_v18 = vld [vmem:[#allocation5 + $0x318] sm:$0xff] }
 0x1c2   :  { %v242_v19 = vld [vmem:[#allocation5 + $0x338] sm:$0xff] }
 0x1c3   :  { %v246_v22 = vld [vmem:[#allocation5 + $0x358] sm:$0xff] }
 0x1c4   :  { %1040 = vmatpush1.bf16.msra.mxu1 %v2139_v29  ;;  %v2244_v29 = vcombine.high %v261_v26, %v265_v27  ;;  %v250_v23 = vld [vmem:[#allocation5 + $0x378] sm:$0xff] }
 0x1c5   :  { %1041 = vmatprep.subr.bf16.mxu1 %v2148_v30  ;;  %v142_v30 = vld [vmem:[#allocation5 + $0x18] sm:$0xff] }
 0x1c6   :  { %v2126_v36 = vcombine.high %v142_v30, %v146_v34  ;;  %v254_v26 = vld [vmem:[#allocation5 + $0x398] sm:$0xff] }
 0x1c7   :  { %v258_v27 = vld [vmem:[#allocation5 + $0x3b8] sm:$0xff] }
 0x1c8   :  { %1042 = vmatpush1.bf16.msra.mxu1 %v2147_v38  ;;  %v154_v38 = vld [vmem:[#allocation5 + $0x78] sm:$0xff] }
 0x1c9   :  { %1043 = vmatprep.subr.bf16.mxu1 %v2156_v39  ;;  %v2125_v39 = vcombine.low %v142_v30, %v146_v34  ;;  %v2134_v40 = vcombine.high %v150_v37, %v154_v38  ;;  %v2133_v43 = vcombine.low %v150_v37, %v154_v38  ;;  %v262_v30 = vld [vmem:[#allocation5 + $0x3d8] sm:$0xff]  ;;  %v2849_v38 = vld [vmem:[%s2891_s4] sm:$0xff] }
 0x1ca   :  { %v266_v34 = vld [vmem:[#allocation5 + $0x3f8] sm:$0xff] }
 0x1cb   :  { %v2245_v37 = vcombine.low %v262_v30, %v266_v34 }
 0x1cc   :  { %1044 = vmatpush1.bf16.msra.mxu1 %v2155_v44  ;;  %v2142_v44 = vcombine.high %v158_v41, %v162_v42 }
 0x1cd   :  { %1045 = vmatprep.subr.bf16.mxu1 %v2164_v45  ;;  %v166_v45 = vld [vmem:[#allocation5 + $0xd8] sm:$0xff] }
 0x1ce   :  { %v2150_v48 = vcombine.high %v166_v45, %v170_v46  ;;  %v2149_v51 = vcombine.low %v166_v45, %v170_v46 }
 0x1d0   :  { %1046 = vmatpush1.bf16.msra.mxu1 %v2163_v49  ;;  %v174_v49 = vld [vmem:[#allocation5 + $0x118] sm:$0xff] }
 0x1d1   :  { %1047 = vmatprep.subr.bf16.mxu1 %v2172_v50  ;;  %v178_v50 = vld [vmem:[#allocation5 + $0x138] sm:$0xff] }
 0x1d2   :  { %v2158_v52 = vcombine.high %v174_v49, %v178_v50  ;;  %v2157_v57 = vcombine.low %v174_v49, %v178_v50 }
 0x1d4   :  { %1048 = vmatpush1.bf16.msra.mxu1 %v2171_v56  ;;  %v186_v56 = vld [vmem:[#allocation5 + $0x178] sm:$0xff] }
 0x1d5   :  { %1049 = vmatprep.subr.bf16.mxu1 %v2180_v60  ;;  %v190_v60 = vld [vmem:[#allocation5 + $0x198] sm:$0xff]  ;;  %v2165_v61 = vcombine.low %v182_v55, %v186_v56 }
 0x1d6   :  { %v2174_v54 = vcombine.high %v190_v60, %v194_v53 }
 0x1d8   :  { %1050 = vmatpush1.bf16.msra.mxu1 %v2179_v62  ;;  %v198_v62 = vld [vmem:[#allocation5 + $0x1d8] sm:$0xff] }
 0x1d9   :  { %1051 = vmatprep.subr.bf16.mxu1 %v2188_v0  ;;  %v2173_v0 = vcombine.low %v190_v60, %v194_v53  ;;  %v2182_v1 = vcombine.high %v198_v62, %v202_v63  ;;  %v2457_v60 = vld [vmem:[#allocation7 + $0x124] ss:$8 sps:$4 sm:$0xff]   ;;  %v2455_v53 = vld [vmem:[#allocation7 + $0x120] ss:$8 sps:$4 sm:$0xff]  }
 0x1dc   :  { %1052 = vmatpush1.bf16.msra.mxu1 %v2187_v4  ;;  %v2181_v4 = vcombine.low %v198_v62, %v202_v63  ;;  %v2463_v62 = vld [vmem:[#allocation7 + $0x144] ss:$8 sps:$4 sm:$0xff]   ;;  %v2461_v63 = vld [vmem:[#allocation7 + $0x140] ss:$8 sps:$4 sm:$0xff]  }
 0x1dd   :  { %1053 = vmatprep.subr.bf16.mxu1 %v2196_v5  ;;  %v2190_v5 = vcombine.high %v206_v2, %v210_v3 }
 0x1e0   :  { %1054 = vmatpush1.bf16.msra.mxu1 %v2195_v8  ;;  %v2189_v8 = vcombine.low %v206_v2, %v210_v3  ;;  %v2469_v2 = vld [vmem:[#allocation7 + $0x164] ss:$8 sps:$4 sm:$0xff]   ;;  %v2467_v3 = vld [vmem:[#allocation7 + $0x160] ss:$8 sps:$4 sm:$0xff]  }
 0x1e1   :  { %1055 = vmatprep.subr.bf16.mxu1 %v2204_v9  ;;  %v2198_v9 = vcombine.high %v214_v6, %v218_v7 }
 0x1e4   :  { %1056 = vmatpush1.bf16.msra.mxu1 %v2203_v12  ;;  %v2197_v12 = vcombine.low %v214_v6, %v218_v7  ;;  %v2475_v6 = vld [vmem:[#allocation7 + $0x184] ss:$8 sps:$4 sm:$0xff]   ;;  %v2473_v7 = vld [vmem:[#allocation7 + $0x180] ss:$8 sps:$4 sm:$0xff]  }
 0x1e5   :  { %1057 = vmatprep.subr.bf16.mxu1 %v2212_v13  ;;  %v2206_v13 = vcombine.high %v222_v10, %v226_v11 }
 0x1e8   :  { %1058 = vmatpush1.bf16.msra.mxu1 %v2211_v16  ;;  %v2205_v16 = vcombine.low %v222_v10, %v226_v11  ;;  %v2481_v10 = vld [vmem:[#allocation7 + $0x1a4] ss:$8 sps:$4 sm:$0xff]   ;;  %v2479_v11 = vld [vmem:[#allocation7 + $0x1a0] ss:$8 sps:$4 sm:$0xff]  }
 0x1e9   :  { %1059 = vmatprep.subr.bf16.mxu1 %v2220_v17  ;;  %v2214_v17 = vcombine.high %v230_v14, %v234_v15 }
 0x1ec   :  { %1060 = vmatpush1.bf16.msra.mxu1 %v2219_v20  ;;  %v2213_v20 = vcombine.low %v230_v14, %v234_v15  ;;  %v2487_v14 = vld [vmem:[#allocation7 + $0x1c4] ss:$8 sps:$4 sm:$0xff]   ;;  %v2485_v15 = vld [vmem:[#allocation7 + $0x1c0] ss:$8 sps:$4 sm:$0xff]  }
 0x1ed   :  { %1061 = vmatprep.subr.bf16.mxu1 %v2228_v21  ;;  %v2222_v21 = vcombine.high %v238_v18, %v242_v19 }
 0x1f0   :  { %1062 = vmatpush1.bf16.msra.mxu1 %v2227_v24  ;;  %v2221_v24 = vcombine.low %v238_v18, %v242_v19  ;;  %v283_v18 = vsub.s32 3, %v2812_v31  ;;  %v2488_v19 = vld [vmem:[#allocation7 + $0x1d0] ss:$8 sps:$4 sm:$0xff]  }
 0x1f1   :  { %1063 = vmatprep.subr.bf16.mxu1 %v2236_v25  ;;  %v2230_v25 = vcombine.high %v246_v22, %v250_v23 }
 0x1f4   :  { %1064 = vmatpush1.bf16.msra.mxu1 %v2235_v28  ;;  %v2229_v28 = vcombine.low %v246_v22, %v250_v23  ;;  %v284_v22 = vrot.slane %v2849_v38, %v283_v18 }
 0x1f5   :  { %1065 = vmatprep.subr.bf16.mxu1 %v2244_v29  ;;  %v2238_v29 = vcombine.high %v254_v26, %v258_v27 }
 0x1f8   :  { %1066 = vmatpush1.bf16.msra.mxu1 %v2243_v35  ;;  %v2237_v35 = vcombine.low %v254_v26, %v258_v27  ;;  %v2496_v27 = vld [vmem:[#allocation7 + $0x1f4] ss:$8 sps:$4 sm:$0xff]  }
 0x1f9   :  { %1078 = vmatprep.subr.bf16.mxu1 %v2126_v36  ;;  %v2246_v36 = vcombine.high %v262_v30, %v266_v34 }
 0x1fb   :  { %1068 = vmatmul.mubr.bf16.vlgmr.msra.gmra.mrb[8].mxu1 %v2836_v59 }
 0x1fc   :  { %1079 = vmatpush1.bf16.msra.mxu1 %v2125_v39  ;;  %1110 = vmatprep.mubr.bf16.mxu1 %v2834_v58  ;;  %v2166_v58 = vcombine.high %v182_v55, %v186_v56  ;;  %v272_v39 = vrot.slane %v2849_v38, %v2818_v33  ;;  %v2449_v56 = vld [vmem:[#allocation7 + $0x100] ss:$8 sps:$4 sm:$0xff]  }
 0x1fd   :  { %1080 = vmatprep.subr.bf16.mxu1 %v2134_v40  ;;  %v276_v40 = vrot.slane %v2849_v38, %v2815_v32 }
 0x200   :  { %1081 = vmatpush1.bf16.msra.mxu1 %v2133_v43 }
 0x201   :  { %1082 = vmatprep.subr.bf16.mxu1 %v2142_v44 }
 0x204   :  { %1083 = vmatpush1.bf16.msra.mxu1 %v2141_v47 }
 0x205   :  { %1084 = vmatprep.subr.bf16.mxu1 %v2150_v48 }
 0x208   :  { %1085 = vmatpush1.bf16.msra.mxu1 %v2149_v51 }
 0x209   :  { %1086 = vmatprep.subr.bf16.mxu1 %v2158_v52 }
 0x20c   :  { %1087 = vmatpush1.bf16.msra.mxu1 %v2157_v57  ;;  %v2454_v57 = vld [vmem:[#allocation7 + $0x114] ss:$8 sps:$4 sm:$0xff]  }
 0x20d   :  { %1088 = vmatprep.subr.bf16.mxu1 %v2166_v58  ;;  %v2452_v58 = vld [vmem:[#allocation7 + $0x110] ss:$8 sps:$4 sm:$0xff]  }
 0x210   :  { %1089 = vmatpush1.bf16.msra.mxu1 %v2165_v61  ;;  %v2460_v61 = vld [vmem:[#allocation7 + $0x134] ss:$8 sps:$4 sm:$0xff]  }
 0x211   :  { %1090 = vmatprep.subr.bf16.mxu1 %v2174_v54  ;;  %v2458_v54 = vld [vmem:[#allocation7 + $0x130] ss:$8 sps:$4 sm:$0xff]  }
 0x214   :  { %1091 = vmatpush1.bf16.msra.mxu1 %v2173_v0  ;;  %v2466_v0 = vld [vmem:[#allocation7 + $0x154] ss:$8 sps:$4 sm:$0xff]  }
 0x215   :  { %1092 = vmatprep.subr.bf16.mxu1 %v2182_v1  ;;  %v2464_v1 = vld [vmem:[#allocation7 + $0x150] ss:$8 sps:$4 sm:$0xff]  }
 0x218   :  { %1093 = vmatpush1.bf16.msra.mxu1 %v2181_v4  ;;  %v2472_v4 = vld [vmem:[#allocation7 + $0x174] ss:$8 sps:$4 sm:$0xff]  }
 0x219   :  { %1094 = vmatprep.subr.bf16.mxu1 %v2190_v5  ;;  %v2470_v5 = vld [vmem:[#allocation7 + $0x170] ss:$8 sps:$4 sm:$0xff]  }
 0x21c   :  { %1095 = vmatpush1.bf16.msra.mxu1 %v2189_v8  ;;  %v2478_v8 = vld [vmem:[#allocation7 + $0x194] ss:$8 sps:$4 sm:$0xff]  }
 0x21d   :  { %1096 = vmatprep.subr.bf16.mxu1 %v2198_v9  ;;  %v2476_v9 = vld [vmem:[#allocation7 + $0x190] ss:$8 sps:$4 sm:$0xff]  }
 0x220   :  { %1097 = vmatpush1.bf16.msra.mxu1 %v2197_v12  ;;  %v2484_v12 = vld [vmem:[#allocation7 + $0x1b4] ss:$8 sps:$4 sm:$0xff]  }
 0x221   :  { %1098 = vmatprep.subr.bf16.mxu1 %v2206_v13  ;;  %v2482_v13 = vld [vmem:[#allocation7 + $0x1b0] ss:$8 sps:$4 sm:$0xff]  }
 0x224   :  { %1099 = vmatpush1.bf16.msra.mxu1 %v2205_v16  ;;  %v2490_v16 = vld [vmem:[#allocation7 + $0x1d4] ss:$8 sps:$4 sm:$0xff]  }
 0x225   :  { %1100 = vmatprep.subr.bf16.mxu1 %v2214_v17  ;;  %v279_v17 = vsub.s32 2, %v2812_v31 }
 0x228   :  { %1101 = vmatpush1.bf16.msra.mxu1 %v2213_v20  ;;  %v280_v20 = vrot.slane %v2849_v38, %v279_v17  ;;  %v2544_v17 = vld [vmem:[#allocation7 + $0x2f4] ss:$8 sps:$4 sm:$0xff]  }
 0x229   :  { %1102 = vmatprep.subr.bf16.mxu1 %v2222_v21  ;;  %v2493_v21 = vld [vmem:[#allocation7 + $0x1e4] ss:$8 sps:$4 sm:$0xff]  }
 0x22c   :  { %1103 = vmatpush1.bf16.msra.mxu1 %v2221_v24  ;;  %v2491_v24 = vld [vmem:[#allocation7 + $0x1e0] ss:$8 sps:$4 sm:$0xff]  }
 0x22d   :  { %1104 = vmatprep.subr.bf16.mxu1 %v2230_v25 }
 0x230   :  { %1105 = vmatpush1.bf16.msra.mxu1 %v2229_v28 }
 0x231   :  { %1106 = vmatprep.subr.bf16.mxu1 %v2238_v29 }
 0x234   :  { %1107 = vmatpush1.bf16.msra.mxu1 %v2237_v35 }
 0x235   :  { %1108 = vmatprep.subr.bf16.mxu1 %v2246_v36  ;;  %v2494_v36 = vld [vmem:[#allocation7 + $0x1f0] ss:$8 sps:$4 sm:$0xff]  }
 0x238   :  { %1109 = vmatpush1.bf16.msra.mxu1 %v2245_v37 }
 0x23b   :  { %1111 = vmatmul.mubr.bf16.vlgmr.msra.gmra.mrb[12].mxu1 %v2836_v59 }
 0x24e   :  { %v983_v41 = vpop.f32.mrb[0].mxu1 }
 0x24f   :  { %v984_v42 = vadd.f32 %v983_v41, %v272_v39  ;;  %v985_v43 = vpop.f32.mrb[1].mxu1 }
 0x250   :  { %v986_v44 = vadd.f32 %v985_v43, %v276_v40  ;;  %v987_v45 = vpop.f32.mrb[2].mxu1 }
 0x251   :  { %v988_v46 = vadd.f32 %v987_v45, %v272_v39  ;;  %v989_v47 = vpop.f32.mrb[3].mxu1  ;;  %v1121_v59 = vmax.f32 %v984_v42, 0.0  ;;  %v2497_v45 = vld [vmem:[#allocation7 + $0x200] ss:$8 sps:$4 sm:$0xff]  }
 0x252   :  { %v990_v48 = vadd.f32 %v989_v47, %v276_v40  ;;  %v1122_v50 = vmax.f32 %v986_v44, 0.0  ;;  %v2499_v40 = vld [vmem:[#allocation7 + $0x204] ss:$8 sps:$4 sm:$0xff]   ;;  %v2500_v47 = vld [vmem:[#allocation7 + $0x210] ss:$8 sps:$4 sm:$0xff]  }
 0x253   :  { %v1129_v49 = vmax.f32 %v988_v46, 0.0  ;;  %v2502_v46 = vld [vmem:[#allocation7 + $0x214] ss:$8 sps:$4 sm:$0xff]  }
 0x254   :  { %v1130_v51 = vmax.f32 %v990_v48, 0.0  ;;  %v2505_v48 = vld [vmem:[#allocation7 + $0x224] ss:$8 sps:$4 sm:$0xff]  }
 0x255   :  { %v1137_v52 = vpack.c.bf16 %v1129_v49, %v1121_v59  ;;  %v2503_v59 = vld [vmem:[#allocation7 + $0x220] ss:$8 sps:$4 sm:$0xff]   ;;  %v2508_v49 = vld [vmem:[#allocation7 + $0x234] ss:$8 sps:$4 sm:$0xff]  }
 0x256   :  { %v1138_v55 = vpack.c.bf16 %v1130_v51, %v1122_v50  ;;  %v2506_v50 = vld [vmem:[#allocation7 + $0x230] ss:$8 sps:$4 sm:$0xff]   ;;  %v2511_v51 = vld [vmem:[#allocation7 + $0x244] ss:$8 sps:$4 sm:$0xff]  }
 0x258   :  { %1957 = vmatprep.mubr.bf16.mxu0 %v1138_v55  ;;  %v2514_v55 = vld [vmem:[#allocation7 + $0x254] ss:$8 sps:$4 sm:$0xff]  }
 0x259   :  { %1958 = vmatmul.mubr.bf16.vlgmr.msra.gmra.mrb[0].mxu0 %v1137_v52  ;;  %v2509_v52 = vld [vmem:[#allocation7 + $0x240] ss:$8 sps:$4 sm:$0xff]  }
 0x25a   :  { %1969 = vmatpush1.bf16.msra.mxu0 %v2449_v56  ;;  %v2512_v56 = vld [vmem:[#allocation7 + $0x250] ss:$8 sps:$4 sm:$0xff]  }
 0x25b   :  { %1970 = vmatprep.subr.bf16.mxu0 %v2454_v57  ;;  %v2517_v57 = vld [vmem:[#allocation7 + $0x264] ss:$8 sps:$4 sm:$0xff]  }
 0x25e   :  { %1971 = vmatpush1.bf16.msra.mxu0 %v2452_v58  ;;  %v2515_v58 = vld [vmem:[#allocation7 + $0x260] ss:$8 sps:$4 sm:$0xff]  }
 0x25f   :  { %1972 = vmatprep.subr.bf16.mxu0 %v2457_v60  ;;  %v2520_v60 = vld [vmem:[#allocation7 + $0x274] ss:$8 sps:$4 sm:$0xff]  }
 0x262   :  { %1973 = vmatpush1.bf16.msra.mxu0 %v2455_v53  ;;  %v2518_v53 = vld [vmem:[#allocation7 + $0x270] ss:$8 sps:$4 sm:$0xff]  }
 0x263   :  { %1974 = vmatprep.subr.bf16.mxu0 %v2460_v61  ;;  %v2523_v61 = vld [vmem:[#allocation7 + $0x284] ss:$8 sps:$4 sm:$0xff]  }
 0x266   :  { %1975 = vmatpush1.bf16.msra.mxu0 %v2458_v54  ;;  %v2521_v54 = vld [vmem:[#allocation7 + $0x280] ss:$8 sps:$4 sm:$0xff]  }
 0x267   :  { %1976 = vmatprep.subr.bf16.mxu0 %v2463_v62  ;;  %v2526_v62 = vld [vmem:[#allocation7 + $0x294] ss:$8 sps:$4 sm:$0xff]  }
 0x26a   :  { %1977 = vmatpush1.bf16.msra.mxu0 %v2461_v63  ;;  %v2524_v63 = vld [vmem:[#allocation7 + $0x290] ss:$8 sps:$4 sm:$0xff]  }
 0x26b   :  { %1978 = vmatprep.subr.bf16.mxu0 %v2466_v0  ;;  %v2529_v0 = vld [vmem:[#allocation7 + $0x2a4] ss:$8 sps:$4 sm:$0xff]  }
 0x26e   :  { %1979 = vmatpush1.bf16.msra.mxu0 %v2464_v1  ;;  %v2527_v1 = vld [vmem:[#allocation7 + $0x2a0] ss:$8 sps:$4 sm:$0xff]  }
 0x26f   :  { %1980 = vmatprep.subr.bf16.mxu0 %v2469_v2  ;;  %v2532_v2 = vld [vmem:[#allocation7 + $0x2b4] ss:$8 sps:$4 sm:$0xff]  }
 0x272   :  { %1981 = vmatpush1.bf16.msra.mxu0 %v2467_v3  ;;  %v2530_v3 = vld [vmem:[#allocation7 + $0x2b0] ss:$8 sps:$4 sm:$0xff]  }
 0x273   :  { %1982 = vmatprep.subr.bf16.mxu0 %v2472_v4  ;;  %v2535_v4 = vld [vmem:[#allocation7 + $0x2c4] ss:$8 sps:$4 sm:$0xff]  }
 0x276   :  { %1983 = vmatpush1.bf16.msra.mxu0 %v2470_v5  ;;  %v2533_v5 = vld [vmem:[#allocation7 + $0x2c0] ss:$8 sps:$4 sm:$0xff]  }
 0x277   :  { %1984 = vmatprep.subr.bf16.mxu0 %v2475_v6  ;;  %v2538_v6 = vld [vmem:[#allocation7 + $0x2d4] ss:$8 sps:$4 sm:$0xff]  }
 0x27a   :  { %1985 = vmatpush1.bf16.msra.mxu0 %v2473_v7  ;;  %v287_v7 = vsub.s32 4, %v2812_v31 }
 0x27b   :  { %1986 = vmatprep.subr.bf16.mxu0 %v2478_v8  ;;  %v291_v8 = vsub.s32 5, %v2812_v31 }
 0x27e   :  { %1987 = vmatpush1.bf16.msra.mxu0 %v2476_v9  ;;  %v2536_v9 = vld [vmem:[#allocation7 + $0x2d0] ss:$8 sps:$4 sm:$0xff]  }
 0x27f   :  { %1988 = vmatprep.subr.bf16.mxu0 %v2481_v10  ;;  %v288_v10 = vrot.slane %v2849_v38, %v287_v7  ;;  %v2592_v7 = vld [vmem:[#allocation7 + $0x3f4] ss:$8 sps:$4 sm:$0xff]  }
 0x282   :  { %1989 = vmatpush1.bf16.msra.mxu0 %v2479_v11  ;;  %v2541_v11 = vld [vmem:[#allocation7 + $0x2e4] ss:$8 sps:$4 sm:$0xff]  }
 0x283   :  { %1990 = vmatprep.subr.bf16.mxu0 %v2484_v12  ;;  %v292_v12 = vrot.slane %v2849_v38, %v291_v8 }
 0x286   :  { %1991 = vmatpush1.bf16.msra.mxu0 %v2482_v13 }
 0x287   :  { %1992 = vmatprep.subr.bf16.mxu0 %v2487_v14  ;;  %v2539_v14 = vld [vmem:[#allocation7 + $0x2e0] ss:$8 sps:$4 sm:$0xff]  }
 0x28a   :  { %1993 = vmatpush1.bf16.msra.mxu0 %v2485_v15 }
 0x28b   :  { %1994 = vmatprep.subr.bf16.mxu0 %v2490_v16 }
 0x28e   :  { %v1026_v23 = vpop.f32.mrb[4].mxu1  ;;  %1995 = vmatpush1.bf16.msra.mxu0 %v2488_v19 }
 0x28f   :  { %v1027_v25 = vadd.f32 %v1026_v23, %v280_v20  ;;  %v1028_v26 = vpop.f32.mrb[5].mxu1  ;;  %1996 = vmatprep.subr.bf16.mxu0 %v2493_v21  ;;  %v2542_v23 = vld [vmem:[#allocation7 + $0x2f0] ss:$8 sps:$4 sm:$0xff]  }
 0x290   :  { %v1029_v28 = vadd.f32 %v1028_v26, %v284_v22  ;;  %v1030_v29 = vpop.f32.mrb[6].mxu1  ;;  %v2547_v26 = vld [vmem:[#allocation7 + $0x304] ss:$8 sps:$4 sm:$0xff]  }
 0x291   :  { %v1031_v30 = vadd.f32 %v1030_v29, %v280_v20  ;;  %v1032_v34 = vpop.f32.mrb[7].mxu1  ;;  %v1123_v37 = vmax.f32 %v1027_v25, 0.0 }
 0x292   :  { %v1033_v35 = vadd.f32 %v1032_v34, %v284_v22  ;;  %1997 = vmatpush1.bf16.msra.mxu0 %v2491_v24  ;;  %v1124_v41 = vmax.f32 %v1029_v28, 0.0  ;;  %v2545_v34 = vld [vmem:[#allocation7 + $0x300] ss:$8 sps:$4 sm:$0xff]  }
 0x293   :  { %v1131_v39 = vmax.f32 %v1031_v30, 0.0  ;;  %1998 = vmatprep.subr.bf16.mxu0 %v2496_v27 }
 0x294   :  { %v1132_v42 = vmax.f32 %v1033_v35, 0.0  ;;  %v2550_v35 = vld [vmem:[#allocation7 + $0x314] ss:$8 sps:$4 sm:$0xff]  }
 0x295   :  { %v1139_v43 = vpack.c.bf16 %v1131_v39, %v1123_v37  ;;  %v2553_v37 = vld [vmem:[#allocation7 + $0x324] ss:$8 sps:$4 sm:$0xff]   ;;  %v2551_v39 = vld [vmem:[#allocation7 + $0x320] ss:$8 sps:$4 sm:$0xff]  }
 0x296   :  { %v1140_v44 = vpack.c.bf16 %v1132_v42, %v1124_v41  ;;  %1999 = vmatpush1.bf16.msra.mxu0 %v2494_v36  ;;  %v2548_v36 = vld [vmem:[#allocation7 + $0x310] ss:$8 sps:$4 sm:$0xff]   ;;  %v2559_v42 = vld [vmem:[#allocation7 + $0x344] ss:$8 sps:$4 sm:$0xff]  }
 0x297   :  { %2011 = vmatprep.subr.bf16.mxu0 %v2499_v40  ;;  %v2556_v40 = vld [vmem:[#allocation7 + $0x334] ss:$8 sps:$4 sm:$0xff]   ;;  %v2554_v41 = vld [vmem:[#allocation7 + $0x330] ss:$8 sps:$4 sm:$0xff]  }
 0x298   :  { %2000 = vmatprep.mubr.bf16.mxu0 %v1140_v44  ;;  %v2562_v44 = vld [vmem:[#allocation7 + $0x354] ss:$8 sps:$4 sm:$0xff]  }
 0x299   :  { %2001 = vmatmul.mubr.bf16.vlgmr.msra.gmra.mrb[0].mxu0 %v1139_v43  ;;  %v2557_v43 = vld [vmem:[#allocation7 + $0x340] ss:$8 sps:$4 sm:$0xff]  }
 0x29a   :  { %2012 = vmatpush1.bf16.msra.mxu0 %v2497_v45  ;;  %v2560_v45 = vld [vmem:[#allocation7 + $0x350] ss:$8 sps:$4 sm:$0xff]  }
 0x29b   :  { %2013 = vmatprep.subr.bf16.mxu0 %v2502_v46  ;;  %v2565_v46 = vld [vmem:[#allocation7 + $0x364] ss:$8 sps:$4 sm:$0xff]  }
 0x29e   :  { %2014 = vmatpush1.bf16.msra.mxu0 %v2500_v47  ;;  %v2563_v47 = vld [vmem:[#allocation7 + $0x360] ss:$8 sps:$4 sm:$0xff]  }
 0x29f   :  { %2015 = vmatprep.subr.bf16.mxu0 %v2505_v48  ;;  %v2568_v48 = vld [vmem:[#allocation7 + $0x374] ss:$8 sps:$4 sm:$0xff]  }
 0x2a2   :  { %2016 = vmatpush1.bf16.msra.mxu0 %v2503_v59  ;;  %v2566_v59 = vld [vmem:[#allocation7 + $0x370] ss:$8 sps:$4 sm:$0xff]  }
 0x2a3   :  { %2017 = vmatprep.subr.bf16.mxu0 %v2508_v49  ;;  %v2571_v49 = vld [vmem:[#allocation7 + $0x384] ss:$8 sps:$4 sm:$0xff]  }
 0x2a6   :  { %2018 = vmatpush1.bf16.msra.mxu0 %v2506_v50  ;;  %v2569_v50 = vld [vmem:[#allocation7 + $0x380] ss:$8 sps:$4 sm:$0xff]  }
 0x2a7   :  { %2019 = vmatprep.subr.bf16.mxu0 %v2511_v51  ;;  %v2574_v51 = vld [vmem:[#allocation7 + $0x394] ss:$8 sps:$4 sm:$0xff]  }
 0x2aa   :  { %2020 = vmatpush1.bf16.msra.mxu0 %v2509_v52  ;;  %v2572_v52 = vld [vmem:[#allocation7 + $0x390] ss:$8 sps:$4 sm:$0xff]  }
 0x2ab   :  { %2021 = vmatprep.subr.bf16.mxu0 %v2514_v55  ;;  %v2577_v55 = vld [vmem:[#allocation7 + $0x3a4] ss:$8 sps:$4 sm:$0xff]  }
 0x2ae   :  { %2022 = vmatpush1.bf16.msra.mxu0 %v2512_v56  ;;  %v2575_v56 = vld [vmem:[#allocation7 + $0x3a0] ss:$8 sps:$4 sm:$0xff]  }
 0x2af   :  { %2023 = vmatprep.subr.bf16.mxu0 %v2517_v57  ;;  %v2580_v57 = vld [vmem:[#allocation7 + $0x3b4] ss:$8 sps:$4 sm:$0xff]  }
 0x2b2   :  { %2024 = vmatpush1.bf16.msra.mxu0 %v2515_v58  ;;  %v2578_v58 = vld [vmem:[#allocation7 + $0x3b0] ss:$8 sps:$4 sm:$0xff]  }
 0x2b3   :  { %2025 = vmatprep.subr.bf16.mxu0 %v2520_v60  ;;  %v2583_v60 = vld [vmem:[#allocation7 + $0x3c4] ss:$8 sps:$4 sm:$0xff]  }
 0x2b6   :  { %2026 = vmatpush1.bf16.msra.mxu0 %v2518_v53  ;;  %v2581_v53 = vld [vmem:[#allocation7 + $0x3c0] ss:$8 sps:$4 sm:$0xff]  }
 0x2b7   :  { %2027 = vmatprep.subr.bf16.mxu0 %v2523_v61  ;;  %v2586_v61 = vld [vmem:[#allocation7 + $0x3d4] ss:$8 sps:$4 sm:$0xff]  }
 0x2ba   :  { %2028 = vmatpush1.bf16.msra.mxu0 %v2521_v54  ;;  %v295_v54 = vsub.s32 6, %v2812_v31 }
 0x2bb   :  { %2029 = vmatprep.subr.bf16.mxu0 %v2526_v62  ;;  %v299_v62 = vsub.s32 7, %v2812_v31 }
 0x2be   :  { %2030 = vmatpush1.bf16.msra.mxu0 %v2524_v63  ;;  %v2584_v63 = vld [vmem:[#allocation7 + $0x3d0] ss:$8 sps:$4 sm:$0xff]  }
 0x2bf   :  { %2031 = vmatprep.subr.bf16.mxu0 %v2529_v0  ;;  %v296_v0 = vrot.slane %v2849_v38, %v295_v54 }
 0x2c2   :  { %2032 = vmatpush1.bf16.msra.mxu0 %v2527_v1  ;;  %v2589_v1 = vld [vmem:[#allocation7 + $0x3e4] ss:$8 sps:$4 sm:$0xff]  }
 0x2c3   :  { %2033 = vmatprep.subr.bf16.mxu0 %v2532_v2  ;;  %v300_v2 = vrot.slane %v2849_v38, %v299_v62 }
 0x2c6   :  { %2034 = vmatpush1.bf16.msra.mxu0 %v2530_v3 }
 0x2c7   :  { %2035 = vmatprep.subr.bf16.mxu0 %v2535_v4  ;;  %v2587_v4 = vld [vmem:[#allocation7 + $0x3e0] ss:$8 sps:$4 sm:$0xff]  }
 0x2ca   :  { %2036 = vmatpush1.bf16.msra.mxu0 %v2533_v5 }
 0x2cb   :  { %2037 = vmatprep.subr.bf16.mxu0 %v2538_v6 }
 0x2ce   :  { %v1069_v13 = vpop.f32.mrb[8].mxu1  ;;  %2038 = vmatpush1.bf16.msra.mxu0 %v2536_v9 }
 0x2cf   :  { %v1070_v15 = vadd.f32 %v1069_v13, %v288_v10  ;;  %v1071_v16 = vpop.f32.mrb[9].mxu1  ;;  %2039 = vmatprep.subr.bf16.mxu0 %v2541_v11 }
 0x2d0   :  { %v1072_v18 = vadd.f32 %v1071_v16, %v292_v12  ;;  %v1073_v19 = vpop.f32.mrb[10].mxu1 }
 0x2d1   :  { %v1074_v20 = vadd.f32 %v1073_v19, %v288_v10  ;;  %v1075_v21 = vpop.f32.mrb[11].mxu1  ;;  %v1125_v24 = vmax.f32 %v1070_v15, 0.0 }
 0x2d2   :  { %v1076_v22 = vadd.f32 %v1075_v21, %v292_v12  ;;  %2040 = vmatpush1.bf16.msra.mxu0 %v2539_v14  ;;  %v1126_v27 = vmax.f32 %v1072_v18, 0.0  ;;  %v2590_v12 = vld [vmem:[#allocation7 + $0x3f0] ss:$8 sps:$4 sm:$0xff]   ;;  %v1273_v18 = vld [vmem:[%s2893_s6] sm:$0x3]  ;;  %s2663_s6 = scalar_lea.vmem %s2107_s23, 512 }
 0x2d3   :  { %v1133_v25 = vmax.f32 %v1074_v20, 0.0  ;;  %2041 = vmatprep.subr.bf16.mxu0 %v2544_v17  ;;  %v1278_v19 = vrot.slane %v1273_v18, %v2818_v33  ;;  %v1282_v20 = vrot.slane %v1273_v18, %v2815_v32  ;;  %p2664_p10 = scmp.ne.s32.totalorder %s2107_s23, %s2663_s6  ;;  %p2669_p12 = scmp.lt.s32.totalorder %s2663_s6, %s2663_s6 }
 0x2d4   :  { %v1134_v28 = vmax.f32 %v1076_v22, 0.0 }
 0x2d5   :  { %v1141_v29 = vpack.c.bf16 %v1133_v25, %v1125_v24  ;;  %p2670_p13 = por %p2669_p12, %p2668_p11 }
 0x2d6   :  { %v1142_v30 = vpack.c.bf16 %v1134_v28, %v1126_v27  ;;  %2042 = vmatpush1.bf16.msra.mxu0 %v2542_v23 }
 0x2d7   :  { %2054 = vmatprep.subr.bf16.mxu0 %v2547_v26  ;;  %p2671_p0 = pnand %p2670_p13, %p2664_p10 }
 0x2d8   :  { %2043 = vmatprep.mubr.bf16.mxu0 %v1142_v30 }
 0x2d9   :  { %2044 = vmatmul.mubr.bf16.vlgmr.msra.gmra.mrb[0].mxu0 %v1141_v29 }
 0x2da   :  { %2055 = vmatpush1.bf16.msra.mxu0 %v2545_v34 }
 0x2db   :  { %2056 = vmatprep.subr.bf16.mxu0 %v2550_v35 }
 0x2de   :  { %2057 = vmatpush1.bf16.msra.mxu0 %v2548_v36 }
 0x2df   :  { %2058 = vmatprep.subr.bf16.mxu0 %v2553_v37 }
 0x2e2   :  { %2059 = vmatpush1.bf16.msra.mxu0 %v2551_v39 }
 0x2e3   :  { %2060 = vmatprep.subr.bf16.mxu0 %v2556_v40 }
 0x2e6   :  { %2061 = vmatpush1.bf16.msra.mxu0 %v2554_v41 }
 0x2e7   :  { %2062 = vmatprep.subr.bf16.mxu0 %v2559_v42 }
 0x2ea   :  { %2063 = vmatpush1.bf16.msra.mxu0 %v2557_v43 }
 0x2eb   :  { %2064 = vmatprep.subr.bf16.mxu0 %v2562_v44 }
 0x2ee   :  { %2065 = vmatpush1.bf16.msra.mxu0 %v2560_v45 }
 0x2ef   :  { %2066 = vmatprep.subr.bf16.mxu0 %v2565_v46 }
 0x2f2   :  { %2067 = vmatpush1.bf16.msra.mxu0 %v2563_v47 }
 0x2f3   :  { %2068 = vmatprep.subr.bf16.mxu0 %v2568_v48 }
 0x2f6   :  { %2069 = vmatpush1.bf16.msra.mxu0 %v2566_v59 }
 0x2f7   :  { %2070 = vmatprep.subr.bf16.mxu0 %v2571_v49 }
 0x2fa   :  { %2071 = vmatpush1.bf16.msra.mxu0 %v2569_v50 }
 0x2fb   :  { %2072 = vmatprep.subr.bf16.mxu0 %v2574_v51 }
 0x2fe   :  { %2073 = vmatpush1.bf16.msra.mxu0 %v2572_v52 }
 0x2ff   :  { %2074 = vmatprep.subr.bf16.mxu0 %v2577_v55 }
 0x302   :  { %2075 = vmatpush1.bf16.msra.mxu0 %v2575_v56 }
 0x303   :  { %2076 = vmatprep.subr.bf16.mxu0 %v2580_v57 }
 0x306   :  { %2077 = vmatpush1.bf16.msra.mxu0 %v2578_v58 }
 0x307   :  { %2078 = vmatprep.subr.bf16.mxu0 %v2583_v60 }
 0x30a   :  { %2079 = vmatpush1.bf16.msra.mxu0 %v2581_v53 }
 0x30b   :  { %2080 = vmatprep.subr.bf16.mxu0 %v2586_v61 }
 0x30e   :  { %v1112_v3 = vpop.f32.mrb[12].mxu1  ;;  %2081 = vmatpush1.bf16.msra.mxu0 %v2584_v63 }
 0x30f   :  { %v1113_v5 = vadd.f32 %v1112_v3, %v296_v0  ;;  %v1114_v6 = vpop.f32.mrb[13].mxu1  ;;  %2082 = vmatprep.subr.bf16.mxu0 %v2589_v1 }
 0x310   :  { %v1115_v8 = vadd.f32 %v1114_v6, %v300_v2  ;;  %v1116_v9 = vpop.f32.mrb[14].mxu1 }
 0x311   :  { %v1117_v10 = vadd.f32 %v1116_v9, %v296_v0  ;;  %v1118_v11 = vpop.f32.mrb[15].mxu1  ;;  %v1127_v13 = vmax.f32 %v1113_v5, 0.0 }
 0x312   :  { %v1119_v31 = vadd.f32 %v1118_v11, %v300_v2  ;;  %2083 = vmatpush1.bf16.msra.mxu0 %v2587_v4  ;;  %v1128_v15 = vmax.f32 %v1115_v8, 0.0 }
 0x313   :  { %v1135_v14 = vmax.f32 %v1117_v10, 0.0  ;;  %2084 = vmatprep.subr.bf16.mxu0 %v2592_v7 }
 0x314   :  { %v1136_v16 = vmax.f32 %v1119_v31, 0.0 }
 0x315   :  { %v1143_v38 = vpack.c.bf16 %v1135_v14, %v1127_v13 }
 0x316   :  { %v1144_v17 = vpack.c.bf16 %v1136_v16, %v1128_v15  ;;  %2085 = vmatpush1.bf16.msra.mxu0 %v2590_v12 }
 0x318   :  { %2086 = vmatprep.mubr.bf16.mxu0 %v1144_v17 }
 0x319   :  { %2087 = vmatmul.mubr.bf16.vlgmr.msra.gmra.mrb[0].mxu0 %v1143_v38 }
 0x3ec   :  { %v2088_v21 = vpop.f32.mrb[0].mxu0 }
 0x3ed   :  { %v2375_v22 = vadd.f32 %v2088_v21, %v1278_v19  ;;  %v2090_v23 = vpop.f32.mrb[1].mxu0 }
 0x3ee   :  { %v2376_v24 = vadd.f32 %v2090_v23, %v1282_v20  ;;  %v2092_v25 = vpop.f32.mrb[2].mxu0 }
 0x3ef   :  { %2097 = vst [vmem:[#allocation8] sm:$0xff] %v2375_v22  ;;  %v2377_v26 = vadd.f32 %v2092_v25, %v1278_v19  ;;  %v2094_v27 = vpop.f32.mrb[3].mxu0 }
 0x3f0   :  { %2098 = vst [vmem:[#allocation8 + $0x8] sm:$0xff] %v2376_v24  ;;  %v2378_v28 = vadd.f32 %v2094_v27, %v1282_v20 }
 0x3f1   :  { %2099 = vst [vmem:[#allocation8 + $0x10] sm:$0xff] %v2377_v26 }
 0x3f2   :  { %2100 = vst [vmem:[#allocation8 + $0x18] sm:$0xff] %v2378_v28 }
 0x3f3   :  { %2674 = shalt.err (!%p2671_p0)
}
 0x3f4   :  { %s2675_s27 = scalar_lea.hbm %s2894_s7, 512 }
 0x3f5   :  { %p2676_p1 = scmp.ne.s32.totalorder %s2894_s7, %s2675_s27  ;;  %p2679_p2 = scmp.lt.u32.totalorder %s2675_s27, %s2894_s7 }
 0x3f7   :  { %p2681_p3 = pnand %p2679_p2, %p2676_p1 }
 0x3f9   :  { %2684 = shalt.err (!%p2681_p3)
}
 0x3fa   :  { %2112 = dma.vmem_to_hbm [thread:$0]  %s2107_s23, 512, %s2894_s7, [#allocation4], %s2695_s3, %s2695_s3, %s2696_s25  }
 0x3fb   :  { %2689 = dma.done.wait [#allocation4], 512  }
 0x3fc   :  { %2690 = vsyncadd [#allocation4], 4294966784 }
 0x3fd   :  { %2116 = vsyncpa [#allocation3], 1 }
 0x3fe   :  { %2117 = vsyncpa [#allocation6], 1 }
 0x3ff   :  { %2118 = vsyncpa [#allocation4], 1 }

// kernel: tpu_custom_call.1
= control target key start
LH: loop header
LB: loop body
LE: loop exit
PB: predicated region body
PF: predicated region fallthrough
CT: control target
= control target key end

     0   :  { %12 = vsyncpa [#allocation3], 0  ;;  %s2887_s0 = inlined_call_operand.hbm [shape: f32[16,256], index: 0, kind: input, shape index: {}]   ;;  %s2888_s1 = inlined_call_operand.vmem [shape: f32[1,256], index: 1, kind: input, shape index: {}]   ;;  %s2889_s2 = inlined_call_operand.vmem [shape: f32[1,256], index: 2, kind: input, shape index: {}]   ;;  %s2890_s3 = inlined_call_operand.hbm [shape: bf16[256,1024], index: 3, kind: input, shape index: {}]   ;;  %s2891_s4 = inlined_call_operand.vmem [shape: f32[1,1024], index: 4, kind: input, shape index: {}]   ;;  %s2892_s5 = inlined_call_operand.hbm [shape: bf16[1024,256], index: 5, kind: input, shape index: {}]   ;;  %s2893_s6 = inlined_call_operand.vmem [shape: f32[1,256], index: 6, kind: input, shape index: {}]   ;;  %s2894_s7 = inlined_call_operand.hbm [shape: f32[16,256], index: 7, kind: output, shape index: {}]  }
   0x1   :  { %13 = vsyncpa [#allocation6], 0 }
   0x2   :  { %14 = vsyncpa [#allocation4], 0  ;;  %s2691_s24 = smov [#allocation5]   ;;  %s2597_s28 = scalar_lea.hbm %s2890_s3, 16384 }
   0x3   :  { %s36_s25 = sshll.u32 %s2691_s24, 4  ;;  %p2598_p0 = scmp.ne.s32.totalorder %s2890_s3, %s2597_s28  ;;  %s37_s25 = int_to_ptr.vmem [resolvable:$true] %s36_s25 }
   0x4   :  { %p2601_p1 = scmp.lt.u32.totalorder %s2597_s28, %s2890_s3 }
   0x6   :  { %p2603_p2 = pnand %p2601_p1, %p2598_p0 }
   0x8   :  { %2606 = shalt.err (!%p2603_p2)
}
   0x9   :  { %s2607_s10 = scalar_lea.vmem %s37_s25, 16384  ;;  %p2612_p4 = scmp.lt.s32.totalorder %s37_s25, %s37_s25 }
   0xa   :  { %p2608_p3 = scmp.ne.s32.totalorder %s37_s25, %s2607_s10  ;;  %p2613_p5 = scmp.lt.s32.totalorder %s2607_s10, %s2607_s10 }
   0xc   :  { %p2614_p6 = por %p2613_p5, %p2612_p4 }
   0xe   :  { %p2615_p7 = pnand %p2614_p6, %p2608_p3 }
  0x10   :  { %2618 = shalt.err (!%p2615_p7)
}
  0x11   :  { %s2692_s11 = smov 512   ;;  %s2693_s12 = smov 32  }
  0x12   :  { %42 = dma.hbm_to_vmem [thread:$0]  %s2890_s3, 16384, %s37_s25, [#allocation6], %s2692_s11, %s2692_s11, %s2693_s12  }
  0x13   :  { %s2694_s15 = smov [#allocation2]   ;;  %s2619_s19 = scalar_lea.hbm %s2887_s0, 512 }
  0x14   :  { %s20_s16 = sshll.u32 %s2694_s15, 4  ;;  %p2620_p8 = scmp.ne.s32.totalorder %s2887_s0, %s2619_s19  ;;  %s21_s16 = int_to_ptr.vmem [resolvable:$true] %s20_s16 }
  0x15   :  { %p2623_p9 = scmp.lt.u32.totalorder %s2619_s19, %s2887_s0 }
  0x17   :  { %p2625_p10 = pnand %p2623_p9, %p2620_p8 }
  0x19   :  { %2628 = shalt.err (!%p2625_p10)
}
  0x1a   :  { %s2629_s24 = scalar_lea.vmem %s21_s16, 512  ;;  %p2634_p12 = scmp.lt.s32.totalorder %s21_s16, %s21_s16 }
  0x1b   :  { %p2630_p11 = scmp.ne.s32.totalorder %s21_s16, %s2629_s24  ;;  %p2635_p13 = scmp.lt.s32.totalorder %s2629_s24, %s2629_s24 }
  0x1d   :  { %p2636_p0 = por %p2635_p13, %p2634_p12 }
  0x1f   :  { %p2637_p1 = pnand %p2636_p0, %p2630_p11 }
  0x21   :  { %2640 = shalt.err (!%p2637_p1)
}
  0x22   :  { %s2695_s3 = smov 256   ;;  %s2696_s25 = smov 16  }
  0x23   :  { %26 = dma.hbm_to_vmem [thread:$0]  %s2887_s0, 512, %s21_s16, [#allocation3], %s2695_s3, %s2695_s3, %s2696_s25  }
  0x24   :  { %s2697_s28 = smov [#allocation7]   ;;  %s2641_s9 = scalar_lea.hbm %s2892_s5, 16384 }
  0x25   :  { %s50_s29 = sshll.u32 %s2697_s28, 4  ;;  %p2642_p2 = scmp.ne.s32.totalorder %s2892_s5, %s2641_s9  ;;  %s51_s29 = int_to_ptr.vmem [resolvable:$true] %s50_s29 }
  0x26   :  { %p2645_p3 = scmp.lt.u32.totalorder %s2641_s9, %s2892_s5 }
  0x28   :  { %p2647_p4 = pnand %p2645_p3, %p2642_p2 }
  0x2a   :  { %2650 = shalt.err (!%p2647_p4)
}
  0x2b   :  { %s2651_s14 = scalar_lea.vmem %s51_s29, 16384  ;;  %p2656_p6 = scmp.lt.s32.totalorder %s51_s29, %s51_s29 }
  0x2c   :  { %p2652_p5 = scmp.ne.s32.totalorder %s51_s29, %s2651_s14  ;;  %p2657_p7 = scmp.lt.s32.totalorder %s2651_s14, %s2651_s14 }
  0x2e   :  { %p2658_p8 = por %p2657_p7, %p2656_p6 }
  0x30   :  { %p2659_p9 = pnand %p2658_p8, %p2652_p5 }
  0x32   :  { %2662 = shalt.err (!%p2659_p9)
}
  0x33   :  { %s2698_s0 = smov 128   ;;  %s2699_s15 = smov 8  }
  0x34   :  { %56 = dma.hbm_to_vmem [thread:$0]  %s2892_s5, 16384, %s51_s29, [#allocation6], %s2698_s0, %s2698_s0, %s2699_s15  }
  0x35   :  { %2685 = dma.done.wait [#allocation3], 512  }
  0x36   :  { %2686 = vsyncadd [#allocation3], 4294966784 }
  0x37   :  { %2687 = dma.done.wait [#allocation6], 32768  }
  0x38   :  { %2688 = vsyncadd [#allocation6], 4294934528  ;;  %v2780_v0 = vld [vmem:[#allocation2] sm:$0xff]  ;;  %v2782_v1 = vld [vmem:[#allocation2 + $0x8] sm:$0xff]  ;;  %s2700_s22 = smov [#allocation8]  }
  0x39   :  { %v2784_v2 = vld [vmem:[#allocation2 + $0x10] sm:$0xff]  ;;  %v72_v3 = vadd.f32 %v2782_v1, %v2780_v0  ;;  %v2788_v4 = vld [vmem:[#allocation2 + $0x18] sm:$0xff]  ;;  %v139_v6 = vld [vmem:[#allocation5] sm:$0xff]  ;;  %s2106_s23 = sshll.u32 %s2700_s22, 4  ;;  %s2107_s23 = int_to_ptr.vmem [resolvable:$true] %s2106_s23 }
  0x3a   :  { %v75_v5 = vadd.f32 %v2788_v4, %v2784_v2  ;;  %v143_v7 = vld [vmem:[#allocation5 + $0x20] sm:$0xff]  ;;  %p2668_p11 = scmp.lt.s32.totalorder %s2107_s23, %s2107_s23 }
  0x3b   :  { %73 = vadd.xlane.f32.xlu0 %v72_v3  ;;  %v147_v8 = vld [vmem:[#allocation5 + $0x40] sm:$0xff]  ;;  %v2120_v9 = vcombine.high %v139_v6, %v143_v7  ;;  %v2119_v10 = vcombine.low %v139_v6, %v143_v7 }
  0x3c   :  { %v151_v11 = vld [vmem:[#allocation5 + $0x60] sm:$0xff] }
  0x3d   :  { %v2128_v12 = vcombine.high %v147_v8, %v151_v11  ;;  %v155_v13 = vld [vmem:[#allocation5 + $0x80] sm:$0xff]  ;;  %949 = vmatprep.subr.bf16.mxu1 %v2120_v9  ;;  %v2127_v15 = vcombine.low %v147_v8, %v151_v11 }
  0x3e   :  { %v159_v14 = vld [vmem:[#allocation5 + $0xa0] sm:$0xff]  ;;  %950 = vmatpush1.bf16.msra.mxu1 %v2119_v10 }
  0x3f   :  { %76 = vadd.xlane.f32.xlu0 %v75_v5  ;;  %951 = vmatprep.subr.bf16.mxu1 %v2128_v12  ;;  %v2136_v16 = vcombine.high %v155_v13, %v159_v14  ;;  %v163_v17 = vld [vmem:[#allocation5 + $0xc0] sm:$0xff]  ;;  %v2135_v19 = vcombine.low %v155_v13, %v159_v14 }
  0x40   :  { %v167_v18 = vld [vmem:[#allocation5 + $0xe0] sm:$0xff] }
  0x41   :  { %v171_v20 = vld [vmem:[#allocation5 + $0x100] sm:$0xff]  ;;  %v2144_v22 = vcombine.high %v163_v17, %v167_v18  ;;  %v2143_v23 = vcombine.low %v163_v17, %v167_v18 }
  0x42   :  { %952 = vmatpush1.bf16.msra.mxu1 %v2127_v15  ;;  %v175_v21 = vld [vmem:[#allocation5 + $0x120] sm:$0xff] }
  0x43   :  { %953 = vmatprep.subr.bf16.mxu1 %v2136_v16  ;;  %v179_v24 = vld [vmem:[#allocation5 + $0x140] sm:$0xff]  ;;  %v2152_v26 = vcombine.high %v171_v20, %v175_v21  ;;  %v2151_v27 = vcombine.low %v171_v20, %v175_v21  ;;  %v140_v20 = vld [vmem:[#allocation5 + $0x8] sm:$0xff] }
  0x44   :  { %v183_v25 = vld [vmem:[#allocation5 + $0x160] sm:$0xff]  ;;  %v144_v21 = vld [vmem:[#allocation5 + $0x28] sm:$0xff] }
  0x45   :  { %v187_v28 = vld [vmem:[#allocation5 + $0x180] sm:$0xff]  ;;  %v2160_v30 = vcombine.high %v179_v24, %v183_v25  ;;  %v2159_v31 = vcombine.low %v179_v24, %v183_v25 }
  0x46   :  { %954 = vmatpush1.bf16.msra.mxu1 %v2135_v19  ;;  %v191_v29 = vld [vmem:[#allocation5 + $0x1a0] sm:$0xff] }
  0x47   :  { %955 = vmatprep.subr.bf16.mxu1 %v2144_v22  ;;  %v2168_v32 = vcombine.high %v187_v28, %v191_v29  ;;  %v195_v33 = vld [vmem:[#allocation5 + $0x1c0] sm:$0xff]  ;;  %v2167_v35 = vcombine.low %v187_v28, %v191_v29  ;;  %v2122_v22 = vcombine.high %v140_v20, %v144_v21  ;;  %v107_v28 = vlaneseq }
  0x48   :  { %v199_v34 = vld [vmem:[#allocation5 + $0x1e0] sm:$0xff] }
  0x49   :  { %v2176_v36 = vcombine.high %v195_v33, %v199_v34  ;;  %v203_v37 = vld [vmem:[#allocation5 + $0x200] sm:$0xff]  ;;  %v2175_v39 = vcombine.low %v195_v33, %v199_v34 }
  0x4a   :  { %956 = vmatpush1.bf16.msra.mxu1 %v2143_v23  ;;  %v207_v38 = vld [vmem:[#allocation5 + $0x220] sm:$0xff]  ;;  %v2121_v23 = vcombine.low %v140_v20, %v144_v21  ;;  %v208_v20 = vld [vmem:[#allocation5 + $0x228] sm:$0xff] }
  0x4b   :  { %957 = vmatprep.subr.bf16.mxu1 %v2152_v26  ;;  %v2184_v40 = vcombine.high %v203_v37, %v207_v38  ;;  %v211_v41 = vld [vmem:[#allocation5 + $0x240] sm:$0xff]  ;;  %v2183_v43 = vcombine.low %v203_v37, %v207_v38 }
  0x4c   :  { %v215_v42 = vld [vmem:[#allocation5 + $0x260] sm:$0xff] }
  0x4d   :  { %v2192_v44 = vcombine.high %v211_v41, %v215_v42  ;;  %v2191_v59 = vcombine.low %v211_v41, %v215_v42  ;;  %v219_v60 = vld [vmem:[#allocation5 + $0x280] sm:$0xff] }
  0x4e   :  { %958 = vmatpush1.bf16.msra.mxu1 %v2151_v27  ;;  %v223_v61 = vld [vmem:[#allocation5 + $0x2a0] sm:$0xff] }
  0x4f   :  { %959 = vmatprep.subr.bf16.mxu1 %v2160_v30  ;;  %v2200_v62 = vcombine.high %v219_v60, %v223_v61  ;;  %v2199_v63 = vcombine.low %v219_v60, %v223_v61  ;;  %v239_v5 = vld [vmem:[#allocation5 + $0x320] sm:$0xff]  ;;  %v160_v61 = vld [vmem:[#allocation5 + $0xa8] sm:$0xff] }
  0x50   :  { %v243_v8 = vld [vmem:[#allocation5 + $0x340] sm:$0xff] }
  0x51   :  { %v247_v9 = vld [vmem:[#allocation5 + $0x360] sm:$0xff] }
  0x52   :  { %960 = vmatpush1.bf16.msra.mxu1 %v2159_v31  ;;  %v2224_v10 = vcombine.high %v243_v8, %v247_v9  ;;  %v2223_v11 = vcombine.low %v243_v8, %v247_v9  ;;  %v251_v12 = vld [vmem:[#allocation5 + $0x380] sm:$0xff]  ;;  %v2812_v31 = vshrl.u32 %v107_v28, 7  ;;  %v184_v8 = vld [vmem:[#allocation5 + $0x168] sm:$0xff] }
  0x53   :  { %961 = vmatprep.subr.bf16.mxu1 %v2168_v32  ;;  %v255_v13 = vld [vmem:[#allocation5 + $0x3a0] sm:$0xff] }
  0x54   :  { %v2232_v14 = vcombine.high %v251_v12, %v255_v13  ;;  %v2231_v15 = vcombine.low %v251_v12, %v255_v13  ;;  %v259_v16 = vld [vmem:[#allocation5 + $0x3c0] sm:$0xff]  ;;  %v2815_v32 = vsub.s32 1, %v2812_v31  ;;  %v2818_v33 = vsub.s32 0, %v2812_v31  ;;  %v192_v12 = vld [vmem:[#allocation5 + $0x1a8] sm:$0xff] }
  0x55   :  { %v263_v17 = vld [vmem:[#allocation5 + $0x3e0] sm:$0xff] }
  0x56   :  { %962 = vmatpush1.bf16.msra.mxu1 %v2167_v35  ;;  %v2240_v18 = vcombine.high %v259_v16, %v263_v17  ;;  %v2239_v19 = vcombine.low %v259_v16, %v263_v17  ;;  %v105_v34 = vld [vmem:[%s2888_s1] sm:$0x3]  ;;  %v200_v16 = vld [vmem:[#allocation5 + $0x1e8] sm:$0xff] }
  0x57   :  { %963 = vmatprep.subr.bf16.mxu1 %v2176_v36  ;;  %v114_v38 = vrot.slane %v105_v34, %v2815_v32 }
  0x5a   :  { %964 = vmatpush1.bf16.msra.mxu1 %v2175_v39  ;;  %v121_v39 = vld [vmem:[%s2889_s2] sm:$0x3] }
  0x5b   :  { %965 = vmatprep.subr.bf16.mxu1 %v2184_v40  ;;  %v110_v40 = vrot.slane %v105_v34, %v2818_v33  ;;  %v130_v42 = vrot.slane %v121_v39, %v2815_v32  ;;  %v2404_v34 = vld [vmem:[#allocation7 + $0x14] ss:$8 sps:$4 sm:$0xff]  }
  0x5e   :  { %966 = vmatpush1.bf16.msra.mxu1 %v2183_v43  ;;  %v126_v43 = vrot.slane %v121_v39, %v2818_v33  ;;  %v232_v39 = vld [vmem:[#allocation5 + $0x2e8] sm:$0xff] }
  0x5f   :  { %967 = vmatprep.subr.bf16.mxu1 %v2192_v44 }
  0x62   :  { %968 = vmatpush1.bf16.msra.mxu1 %v2191_v59 }
  0x63   :  { %969 = vmatprep.subr.bf16.mxu1 %v2200_v62 }
  0x66   :  { %970 = vmatpush1.bf16.msra.mxu1 %v2199_v63  ;;  %v164_v63 = vld [vmem:[#allocation5 + $0xc8] sm:$0xff] }
  0xc8   :  { %v74_v45 = vpop.xlane.xlu0 %73 }
  0xc9   :  { %v79_v46 = vmul.f32 0.00390625, %v74_v45 }
  0xcb   :  { %v2793_v47 = vsub.f32 %v2780_v0, %v79_v46  ;;  %v2796_v48 = vsub.f32 %v2782_v1, %v79_v46  ;;  %v227_v0 = vld [vmem:[#allocation5 + $0x2c0] sm:$0xff] }
  0xcc   :  { %v77_v49 = vpop.xlane.xlu0 %76  ;;  %v231_v1 = vld [vmem:[#allocation5 + $0x2e0] sm:$0xff] }
  0xcd   :  { %v80_v50 = vmul.f32 0.00390625, %v77_v49  ;;  %v85_v51 = vmul.f32 %v2793_v47, %v2793_v47  ;;  %v86_v52 = vmul.f32 %v2796_v48, %v2796_v48  ;;  %v2207_v3 = vcombine.low %v227_v0, %v231_v1 }
  0xcf   :  { %v2803_v53 = vsub.f32 %v2784_v2, %v80_v50  ;;  %v2806_v54 = vsub.f32 %v2788_v4, %v80_v50  ;;  %v89_v55 = vadd.f32 %v86_v52, %v85_v51  ;;  %v2208_v2 = vcombine.high %v227_v0, %v231_v1  ;;  %v235_v4 = vld [vmem:[#allocation5 + $0x300] sm:$0xff]  ;;  %v168_v0 = vld [vmem:[#allocation5 + $0xe8] sm:$0xff] }
  0xd0   :  { %v2216_v6 = vcombine.high %v235_v4, %v239_v5  ;;  %v2215_v7 = vcombine.low %v235_v4, %v239_v5  ;;  %v176_v4 = vld [vmem:[#allocation5 + $0x128] sm:$0xff]  ;;  %v2145_v5 = vcombine.low %v164_v63, %v168_v0 }
  0xd1   :  { %90 = vadd.xlane.f32.xlu1 %v89_v55  ;;  %v87_v56 = vmul.f32 %v2803_v53, %v2803_v53  ;;  %v88_v57 = vmul.f32 %v2806_v54, %v2806_v54  ;;  %971 = vmatprep.subr.bf16.mxu1 %v2208_v2  ;;  %v2146_v2 = vcombine.high %v164_v63, %v168_v0  ;;  %v260_v0 = vld [vmem:[#allocation5 + $0x3c8] sm:$0xff] }
  0xd2   :  { %972 = vmatpush1.bf16.msra.mxu1 %v2207_v3  ;;  %v172_v3 = vld [vmem:[#allocation5 + $0x108] sm:$0xff] }
  0xd3   :  { %v92_v58 = vadd.f32 %v88_v57, %v87_v56  ;;  %973 = vmatprep.subr.bf16.mxu1 %v2216_v6  ;;  %v148_v56 = vld [vmem:[#allocation5 + $0x48] sm:$0xff]  ;;  %v2154_v6 = vcombine.high %v172_v3, %v176_v4  ;;  %v2153_v9 = vcombine.low %v172_v3, %v176_v4 }
  0xd4   :  { %v152_v57 = vld [vmem:[#allocation5 + $0x68] sm:$0xff] }
  0xd5   :  { %93 = vadd.xlane.f32.xlu1 %v92_v58  ;;  %v2130_v60 = vcombine.high %v148_v56, %v152_v57  ;;  %v2421_v4 = vld [vmem:[#allocation7 + $0x60] ss:$8 sps:$4 sm:$0xff]  }
  0xd6   :  { %974 = vmatpush1.bf16.msra.mxu1 %v2215_v7  ;;  %v180_v7 = vld [vmem:[#allocation5 + $0x148] sm:$0xff] }
  0xd7   :  { %975 = vmatprep.subr.bf16.mxu1 %v2224_v10  ;;  %v2162_v10 = vcombine.high %v180_v7, %v184_v8  ;;  %v2161_v13 = vcombine.low %v180_v7, %v184_v8  ;;  %v145_v7 = vld [vmem:[#allocation5 + $0x30] sm:$0xff] }
  0xd8   :  { %v2422_v8 = vld [vmem:[#allocation7 + $0x74] ss:$8 sps:$4 sm:$0xff]  }
  0xda   :  { %976 = vmatpush1.bf16.msra.mxu1 %v2223_v11  ;;  %v188_v11 = vld [vmem:[#allocation5 + $0x188] sm:$0xff] }
  0xdb   :  { %977 = vmatprep.subr.bf16.mxu1 %v2232_v14  ;;  %v2170_v14 = vcombine.high %v188_v11, %v192_v12  ;;  %v2169_v17 = vcombine.low %v188_v11, %v192_v12  ;;  %v149_v12 = vld [vmem:[#allocation5 + $0x50] sm:$0xff] }
  0xde   :  { %978 = vmatpush1.bf16.msra.mxu1 %v2231_v15  ;;  %v196_v15 = vld [vmem:[#allocation5 + $0x1c8] sm:$0xff] }
  0xdf   :  { %979 = vmatprep.subr.bf16.mxu1 %v2240_v18  ;;  %v2178_v18 = vcombine.high %v196_v15, %v200_v16  ;;  %v2177_v21 = vcombine.low %v196_v15, %v200_v16  ;;  %v2427_v16 = vld [vmem:[#allocation7 + $0x80] ss:$8 sps:$4 sm:$0xff]  }
  0xe2   :  { %980 = vmatpush1.bf16.msra.mxu1 %v2239_v19  ;;  %v204_v19 = vld [vmem:[#allocation5 + $0x208] sm:$0xff] }
  0xe3   :  { %992 = vmatprep.subr.bf16.mxu1 %v2122_v22  ;;  %v2186_v22 = vcombine.high %v204_v19, %v208_v20 }
 0x15e   :  { %v91_v24 = vpop.xlane.xlu1 %90 }
 0x15f   :  { %v95_v25 = vmul.f32 0.00390625, %v91_v24  ;;  %v216_v24 = vld [vmem:[#allocation5 + $0x268] sm:$0xff] }
 0x161   :  { %v97_v26 = vadd.f32 1e-05, %v95_v25  ;;  %v2401_v25 = vld [vmem:[#allocation7 + $0x4] ss:$8 sps:$4 sm:$0xff]  }
 0x162   :  { %v94_v27 = vpop.xlane.xlu1 %93  ;;  %1925 = vmatprep.subr.bf16.mxu0 %v2401_v25  ;;  %v165_v25 = vld [vmem:[#allocation5 + $0xd0] sm:$0xff] }
 0x163   :  { %2593 = vrsqrt.f32 %v97_v26  ;;  %v96_v29 = vmul.f32 0.00390625, %v94_v27  ;;  %v2185_v26 = vcombine.low %v204_v19, %v208_v20  ;;  %v2403_v27 = vld [vmem:[#allocation7] ss:$8 sps:$4 sm:$0xff]   ;;  %v161_v19 = vld [vmem:[#allocation5 + $0xb0] sm:$0xff] }
 0x164   :  { %1926 = vmatpush1.bf16.msra.mxu0 %v2403_v27  ;;  %v2428_v20 = vld [vmem:[#allocation7 + $0x94] ss:$8 sps:$4 sm:$0xff]   ;;  %v2433_v27 = vld [vmem:[#allocation7 + $0xa0] ss:$8 sps:$4 sm:$0xff]  }
 0x165   :  { %v98_v30 = vadd.f32 1e-05, %v96_v29  ;;  %v220_v29 = vld [vmem:[#allocation5 + $0x288] sm:$0xff]  ;;  %1927 = vmatprep.subr.bf16.mxu0 %v2404_v34  ;;  %v173_v34 = vld [vmem:[#allocation5 + $0x110] sm:$0xff] }
 0x167   :  { %2595 = vrsqrt.f32 %v98_v30  ;;  %v224_v30 = vld [vmem:[#allocation5 + $0x2a8] sm:$0xff] }
 0x16d   :  { %v2594_v35 = vpop.eup %2593 }
 0x16e   :  { %v101_v36 = vmul.f32 %v2594_v35, %v2793_v47  ;;  %v102_v37 = vmul.f32 %v2594_v35, %v2796_v48 }
 0x170   :  { %v118_v46 = vmul.f32 %v114_v38, %v102_v37  ;;  %v117_v47 = vmul.f32 %v110_v40, %v101_v36  ;;  %v2406_v36 = vld [vmem:[#allocation7 + $0x10] ss:$8 sps:$4 sm:$0xff]   ;;  %v2202_v37 = vcombine.high %v220_v29, %v224_v30 }
 0x171   :  { %v2596_v41 = vpop.eup %2595  ;;  %1928 = vmatpush1.bf16.msra.mxu0 %v2406_v36  ;;  %v2436_v36 = vld [vmem:[#allocation7 + $0xb0] ss:$8 sps:$4 sm:$0xff]  }
 0x172   :  { %v103_v44 = vmul.f32 %v2596_v41, %v2803_v53  ;;  %v104_v45 = vmul.f32 %v2596_v41, %v2806_v54  ;;  %v134_v50 = vadd.f32 %v130_v42, %v118_v46  ;;  %v133_v52 = vadd.f32 %v126_v43, %v117_v47  ;;  %v156_v53 = vld [vmem:[#allocation5 + $0x88] sm:$0xff]  ;;  %v2410_v46 = vld [vmem:[#allocation7 + $0x34] ss:$8 sps:$4 sm:$0xff]  }
 0x173   :  { %v2129_v54 = vcombine.low %v148_v56, %v152_v57  ;;  %v2138_v62 = vcombine.high %v156_v53, %v160_v61  ;;  %v2137_v1 = vcombine.low %v156_v53, %v160_v61  ;;  %v2201_v41 = vcombine.low %v220_v29, %v224_v30  ;;  %v2415_v56 = vld [vmem:[#allocation7 + $0x40] ss:$8 sps:$4 sm:$0xff]   ;;  %v2416_v61 = vld [vmem:[#allocation7 + $0x54] ss:$8 sps:$4 sm:$0xff]  }
 0x174   :  { %v120_v48 = vmul.f32 %v114_v38, %v104_v45  ;;  %v119_v49 = vmul.f32 %v110_v40, %v103_v44  ;;  %v228_v38 = vld [vmem:[#allocation5 + $0x2c8] sm:$0xff] }
 0x175   :  { %v2407_v40 = vld [vmem:[#allocation7 + $0x24] ss:$8 sps:$4 sm:$0xff]   ;;  %v2209_v47 = vcombine.low %v228_v38, %v232_v39 }
 0x176   :  { %v136_v51 = vadd.f32 %v130_v42, %v120_v48  ;;  %v135_v55 = vadd.f32 %v126_v43, %v119_v49  ;;  %v2409_v42 = vld [vmem:[#allocation7 + $0x20] ss:$8 sps:$4 sm:$0xff]   ;;  %v2210_v43 = vcombine.high %v228_v38, %v232_v39  ;;  %1929 = vmatprep.subr.bf16.mxu0 %v2407_v40  ;;  %v2412_v48 = vld [vmem:[#allocation7 + $0x30] ss:$8 sps:$4 sm:$0xff]  }
 0x177   :  { %v236_v44 = vld [vmem:[#allocation5 + $0x308] sm:$0xff]  ;;  %1930 = vmatpush1.bf16.msra.mxu0 %v2409_v42  ;;  %v181_v40 = vld [vmem:[#allocation5 + $0x150] sm:$0xff] }
 0x178   :  { %v2834_v58 = vpack.c.bf16 %v136_v51, %v134_v50  ;;  %v2836_v59 = vpack.c.bf16 %v135_v55, %v133_v52  ;;  %v240_v45 = vld [vmem:[#allocation5 + $0x328] sm:$0xff]  ;;  %1931 = vmatprep.subr.bf16.mxu0 %v2410_v46  ;;  %v189_v46 = vld [vmem:[#allocation5 + $0x190] sm:$0xff] }
 0x179   :  { %v2218_v49 = vcombine.high %v236_v44, %v240_v45  ;;  %v244_v50 = vld [vmem:[#allocation5 + $0x348] sm:$0xff]  ;;  %v2217_v55 = vcombine.low %v236_v44, %v240_v45 }
 0x17a   :  { %981 = vmatprep.mubr.bf16.mxu1 %v2834_v58  ;;  %v248_v51 = vld [vmem:[#allocation5 + $0x368] sm:$0xff] }
 0x17b   :  { %982 = vmatmul.mubr.bf16.vlgmr.msra.gmra.mrb[0].mxu1 %v2836_v59  ;;  %1932 = vmatpush1.bf16.msra.mxu0 %v2412_v48  ;;  %v2413_v52 = vld [vmem:[#allocation7 + $0x44] ss:$8 sps:$4 sm:$0xff]   ;;  %v2226_v57 = vcombine.high %v244_v50, %v248_v51  ;;  %v2439_v42 = vld [vmem:[#allocation7 + $0xc0] ss:$8 sps:$4 sm:$0xff]   ;;  %v2442_v48 = vld [vmem:[#allocation7 + $0xd0] ss:$8 sps:$4 sm:$0xff]  }
 0x17c   :  { %993 = vmatpush1.bf16.msra.mxu1 %v2121_v23  ;;  %1024 = vmatprep.mubr.bf16.mxu1 %v2834_v58  ;;  %v212_v23 = vld [vmem:[#allocation5 + $0x248] sm:$0xff] }
 0x17d   :  { %994 = vmatprep.subr.bf16.mxu1 %v2130_v60  ;;  %v2194_v28 = vcombine.high %v212_v23, %v216_v24  ;;  %v2193_v35 = vcombine.low %v212_v23, %v216_v24  ;;  %1933 = vmatprep.subr.bf16.mxu0 %v2413_v52  ;;  %v252_v60 = vld [vmem:[#allocation5 + $0x388] sm:$0xff]  ;;  %v201_v52 = vld [vmem:[#allocation5 + $0x1f0] sm:$0xff] }
 0x17e   :  { %v256_v53 = vld [vmem:[#allocation5 + $0x3a8] sm:$0xff] }
 0x17f   :  { %1934 = vmatpush1.bf16.msra.mxu0 %v2415_v56  ;;  %v2234_v63 = vcombine.high %v252_v60, %v256_v53  ;;  %v2233_v3 = vcombine.low %v252_v60, %v256_v53  ;;  %v205_v53 = vld [vmem:[#allocation5 + $0x210] sm:$0xff] }
 0x180   :  { %995 = vmatpush1.bf16.msra.mxu1 %v2129_v54  ;;  %v2225_v54 = vcombine.low %v244_v50, %v248_v51  ;;  %1935 = vmatprep.subr.bf16.mxu0 %v2416_v61  ;;  %v197_v51 = vld [vmem:[#allocation5 + $0x1d0] sm:$0xff] }
 0x181   :  { %996 = vmatprep.subr.bf16.mxu1 %v2138_v62  ;;  %v2418_v62 = vld [vmem:[#allocation7 + $0x50] ss:$8 sps:$4 sm:$0xff]   ;;  %v2180_v60 = vcombine.high %v197_v51, %v201_v52 }
 0x182   :  { %v209_v61 = vld [vmem:[#allocation5 + $0x230] sm:$0xff] }
 0x183   :  { %1936 = vmatpush1.bf16.msra.mxu0 %v2418_v62  ;;  %v2179_v62 = vcombine.low %v197_v51, %v201_v52 }
 0x184   :  { %997 = vmatpush1.bf16.msra.mxu1 %v2137_v1  ;;  %v264_v1 = vld [vmem:[#allocation5 + $0x3e8] sm:$0xff] }
 0x185   :  { %998 = vmatprep.subr.bf16.mxu1 %v2146_v2  ;;  %v2419_v2 = vld [vmem:[#allocation7 + $0x64] ss:$8 sps:$4 sm:$0xff]  }
 0x186   :  { %1937 = vmatprep.subr.bf16.mxu0 %v2419_v2  ;;  %v217_v2 = vld [vmem:[#allocation5 + $0x270] sm:$0xff] }
 0x187   :  { %1938 = vmatpush1.bf16.msra.mxu0 %v2421_v4  ;;  %v2187_v4 = vcombine.low %v205_v53, %v209_v61 }
 0x188   :  { %999 = vmatpush1.bf16.msra.mxu1 %v2145_v5  ;;  %v2242_v5 = vcombine.high %v260_v0, %v264_v1  ;;  %1939 = vmatprep.subr.bf16.mxu0 %v2422_v8 }
 0x189   :  { %1000 = vmatprep.subr.bf16.mxu1 %v2154_v6  ;;  %v141_v6 = vld [vmem:[#allocation5 + $0x10] sm:$0xff] }
 0x18a   :  { %v2124_v11 = vcombine.high %v141_v6, %v145_v7  ;;  %v2123_v15 = vcombine.low %v141_v6, %v145_v7  ;;  %v221_v6 = vld [vmem:[#allocation5 + $0x290] sm:$0xff] }
 0x18b   :  { %v225_v7 = vld [vmem:[#allocation5 + $0x2b0] sm:$0xff] }
 0x18c   :  { %1001 = vmatpush1.bf16.msra.mxu1 %v2153_v9  ;;  %v2241_v9 = vcombine.low %v260_v0, %v264_v1  ;;  %v2188_v0 = vcombine.high %v205_v53, %v209_v61  ;;  %v213_v1 = vld [vmem:[#allocation5 + $0x250] sm:$0xff]  ;;  %v194_v53 = vld [vmem:[#allocation5 + $0x1b8] sm:$0xff] }
 0x18d   :  { %1002 = vmatprep.subr.bf16.mxu1 %v2162_v10  ;;  %v2424_v10 = vld [vmem:[#allocation7 + $0x70] ss:$8 sps:$4 sm:$0xff]   ;;  %v2195_v8 = vcombine.low %v213_v1, %v217_v2 }
 0x18e   :  { %1940 = vmatpush1.bf16.msra.mxu0 %v2424_v10  ;;  %v229_v10 = vld [vmem:[#allocation5 + $0x2d0] sm:$0xff] }
 0x190   :  { %1003 = vmatpush1.bf16.msra.mxu1 %v2161_v13  ;;  %v153_v13 = vld [vmem:[#allocation5 + $0x70] sm:$0xff] }
 0x191   :  { %1004 = vmatprep.subr.bf16.mxu1 %v2170_v14  ;;  %v2425_v14 = vld [vmem:[#allocation7 + $0x84] ss:$8 sps:$4 sm:$0xff]   ;;  %v2131_v23 = vcombine.low %v149_v12, %v153_v13 }
 0x192   :  { %1941 = vmatprep.subr.bf16.mxu0 %v2425_v14  ;;  %v237_v14 = vld [vmem:[#allocation5 + $0x310] sm:$0xff] }
 0x193   :  { %1942 = vmatpush1.bf16.msra.mxu0 %v2427_v16 }
 0x194   :  { %1005 = vmatpush1.bf16.msra.mxu1 %v2169_v17  ;;  %v2132_v17 = vcombine.high %v149_v12, %v153_v13  ;;  %1943 = vmatprep.subr.bf16.mxu0 %v2428_v20  ;;  %v2203_v12 = vcombine.low %v221_v6, %v225_v7 }
 0x195   :  { %1006 = vmatprep.subr.bf16.mxu1 %v2178_v18  ;;  %v157_v18 = vld [vmem:[#allocation5 + $0x90] sm:$0xff] }
 0x196   :  { %v2140_v24 = vcombine.high %v157_v18, %v161_v19  ;;  %v2139_v29 = vcombine.low %v157_v18, %v161_v19  ;;  %v245_v18 = vld [vmem:[#allocation5 + $0x350] sm:$0xff] }
 0x197   :  { %v249_v19 = vld [vmem:[#allocation5 + $0x370] sm:$0xff] }
 0x198   :  { %1007 = vmatpush1.bf16.msra.mxu1 %v2177_v21  ;;  %v2430_v21 = vld [vmem:[#allocation7 + $0x90] ss:$8 sps:$4 sm:$0xff]  }
 0x199   :  { %1008 = vmatprep.subr.bf16.mxu1 %v2186_v22  ;;  %v2431_v22 = vld [vmem:[#allocation7 + $0xa4] ss:$8 sps:$4 sm:$0xff]   ;;  %1944 = vmatpush1.bf16.msra.mxu0 %v2430_v21  ;;  %v2228_v21 = vcombine.high %v245_v18, %v249_v19 }
 0x19a   :  { %1945 = vmatprep.subr.bf16.mxu0 %v2431_v22  ;;  %v253_v22 = vld [vmem:[#allocation5 + $0x390] sm:$0xff] }
 0x19c   :  { %1009 = vmatpush1.bf16.msra.mxu1 %v2185_v26  ;;  %v169_v26 = vld [vmem:[#allocation5 + $0xf0] sm:$0xff] }
 0x19d   :  { %1010 = vmatprep.subr.bf16.mxu1 %v2194_v28  ;;  %v2434_v28 = vld [vmem:[#allocation7 + $0xb4] ss:$8 sps:$4 sm:$0xff]   ;;  %v2148_v30 = vcombine.high %v165_v25, %v169_v26  ;;  %1946 = vmatpush1.bf16.msra.mxu0 %v2433_v27  ;;  %v2147_v38 = vcombine.low %v165_v25, %v169_v26 }
 0x19e   :  { %1947 = vmatprep.subr.bf16.mxu0 %v2434_v28  ;;  %v261_v26 = vld [vmem:[#allocation5 + $0x3d0] sm:$0xff] }
 0x19f   :  { %v265_v27 = vld [vmem:[#allocation5 + $0x3f0] sm:$0xff] }
 0x1a0   :  { %1011 = vmatpush1.bf16.msra.mxu1 %v2193_v35  ;;  %v177_v35 = vld [vmem:[#allocation5 + $0x130] sm:$0xff] }
 0x1a1   :  { %1012 = vmatprep.subr.bf16.mxu1 %v2202_v37  ;;  %v2437_v37 = vld [vmem:[#allocation7 + $0xc4] ss:$8 sps:$4 sm:$0xff]   ;;  %v2156_v39 = vcombine.high %v173_v34, %v177_v35  ;;  %1948 = vmatpush1.bf16.msra.mxu0 %v2436_v36  ;;  %v2155_v44 = vcombine.low %v173_v34, %v177_v35  ;;  %v146_v34 = vld [vmem:[#allocation5 + $0x38] sm:$0xff]  ;;  %v2243_v35 = vcombine.low %v261_v26, %v265_v27 }
 0x1a2   :  { %1949 = vmatprep.subr.bf16.mxu0 %v2437_v37  ;;  %v150_v37 = vld [vmem:[#allocation5 + $0x58] sm:$0xff] }
 0x1a4   :  { %1013 = vmatpush1.bf16.msra.mxu1 %v2201_v41  ;;  %v185_v41 = vld [vmem:[#allocation5 + $0x170] sm:$0xff] }
 0x1a5   :  { %1014 = vmatprep.subr.bf16.mxu1 %v2210_v43  ;;  %v2440_v43 = vld [vmem:[#allocation7 + $0xd4] ss:$8 sps:$4 sm:$0xff]   ;;  %v2164_v45 = vcombine.high %v181_v40, %v185_v41  ;;  %1950 = vmatpush1.bf16.msra.mxu0 %v2439_v42 }
 0x1a6   :  { %1951 = vmatprep.subr.bf16.mxu0 %v2440_v43  ;;  %v162_v42 = vld [vmem:[#allocation5 + $0xb8] sm:$0xff] }
 0x1a8   :  { %1015 = vmatpush1.bf16.msra.mxu1 %v2209_v47  ;;  %v193_v47 = vld [vmem:[#allocation5 + $0x1b0] sm:$0xff] }
 0x1a9   :  { %1016 = vmatprep.subr.bf16.mxu1 %v2218_v49  ;;  %v2163_v49 = vcombine.low %v181_v40, %v185_v41  ;;  %v2172_v50 = vcombine.high %v189_v46, %v193_v47  ;;  %1952 = vmatpush1.bf16.msra.mxu0 %v2442_v48  ;;  %v2171_v56 = vcombine.low %v189_v46, %v193_v47  ;;  %v158_v41 = vld [vmem:[#allocation5 + $0x98] sm:$0xff] }
 0x1aa   :  { %v170_v46 = vld [vmem:[#allocation5 + $0xf8] sm:$0xff]  ;;  %v2141_v47 = vcombine.low %v158_v41, %v162_v42 }
 0x1ac   :  { %1017 = vmatpush1.bf16.msra.mxu1 %v2217_v55  ;;  %v2443_v55 = vld [vmem:[#allocation7 + $0xe4] ss:$8 sps:$4 sm:$0xff]  }
 0x1ad   :  { %1018 = vmatprep.subr.bf16.mxu1 %v2226_v57  ;;  %v2445_v57 = vld [vmem:[#allocation7 + $0xe0] ss:$8 sps:$4 sm:$0xff]   ;;  %1953 = vmatprep.subr.bf16.mxu0 %v2443_v55  ;;  %v182_v55 = vld [vmem:[#allocation5 + $0x158] sm:$0xff] }
 0x1ae   :  { %1954 = vmatpush1.bf16.msra.mxu0 %v2445_v57 }
 0x1b0   :  { %1019 = vmatpush1.bf16.msra.mxu1 %v2225_v54  ;;  %v2446_v54 = vld [vmem:[#allocation7 + $0xf4] ss:$8 sps:$4 sm:$0xff]  }
 0x1b1   :  { %1020 = vmatprep.subr.bf16.mxu1 %v2234_v63  ;;  %v2448_v63 = vld [vmem:[#allocation7 + $0xf0] ss:$8 sps:$4 sm:$0xff]   ;;  %1955 = vmatprep.subr.bf16.mxu0 %v2446_v54 }
 0x1b2   :  { %1956 = vmatpush1.bf16.msra.mxu0 %v2448_v63  ;;  %v202_v63 = vld [vmem:[#allocation5 + $0x1f8] sm:$0xff] }
 0x1b4   :  { %1021 = vmatpush1.bf16.msra.mxu1 %v2233_v3  ;;  %v2451_v3 = vld [vmem:[#allocation7 + $0x104] ss:$8 sps:$4 sm:$0xff]  }
 0x1b5   :  { %1022 = vmatprep.subr.bf16.mxu1 %v2242_v5  ;;  %v2196_v5 = vcombine.high %v213_v1, %v217_v2  ;;  %1968 = vmatprep.subr.bf16.mxu0 %v2451_v3  ;;  %v206_v2 = vld [vmem:[#allocation5 + $0x218] sm:$0xff] }
 0x1b6   :  { %v210_v3 = vld [vmem:[#allocation5 + $0x238] sm:$0xff] }
 0x1b8   :  { %1023 = vmatpush1.bf16.msra.mxu1 %v2241_v9  ;;  %v2204_v9 = vcombine.high %v221_v6, %v225_v7  ;;  %v214_v6 = vld [vmem:[#allocation5 + $0x258] sm:$0xff] }
 0x1b9   :  { %1035 = vmatprep.subr.bf16.mxu1 %v2124_v11  ;;  %v233_v11 = vld [vmem:[#allocation5 + $0x2f0] sm:$0xff]  ;;  %v218_v7 = vld [vmem:[#allocation5 + $0x278] sm:$0xff] }
 0x1ba   :  { %v2212_v13 = vcombine.high %v229_v10, %v233_v11  ;;  %v2211_v16 = vcombine.low %v229_v10, %v233_v11  ;;  %v222_v10 = vld [vmem:[#allocation5 + $0x298] sm:$0xff] }
 0x1bb   :  { %1025 = vmatmul.mubr.bf16.vlgmr.msra.gmra.mrb[4].mxu1 %v2836_v59  ;;  %v226_v11 = vld [vmem:[#allocation5 + $0x2b8] sm:$0xff] }
 0x1bc   :  { %1036 = vmatpush1.bf16.msra.mxu1 %v2123_v15  ;;  %1067 = vmatprep.mubr.bf16.mxu1 %v2834_v58  ;;  %v241_v15 = vld [vmem:[#allocation5 + $0x330] sm:$0xff] }
 0x1bd   :  { %1037 = vmatprep.subr.bf16.mxu1 %v2132_v17  ;;  %v2220_v17 = vcombine.high %v237_v14, %v241_v15  ;;  %v2219_v20 = vcombine.low %v237_v14, %v241_v15  ;;  %v230_v14 = vld [vmem:[#allocation5 + $0x2d8] sm:$0xff] }
 0x1be   :  { %v234_v15 = vld [vmem:[#allocation5 + $0x2f8] sm:$0xff] }
 0x1c0   :  { %1038 = vmatpush1.bf16.msra.mxu1 %v2131_v23  ;;  %v257_v23 = vld [vmem:[#allocation5 + $0x3b0] sm:$0xff] }
 0x1c1   :  { %1039 = vmatprep.subr.bf16.mxu1 %v2140_v24  ;;  %v2227_v24 = vcombine.low %v245_v18, %v249_v19  ;;  %v2236_v25 = vcombine.high %v253_v22, %v257_v23  ;;  %v2235_v28 = vcombine.low %v253_v22, %v257_v23  ;;  %v238_v18 = vld [vmem:[#allocation5 + $0x318] sm:$0xff] }
 0x1c2   :  { %v242_v19 = vld [vmem:[#allocation5 + $0x338] sm:$0xff] }
 0x1c3   :  { %v246_v22 = vld [vmem:[#allocation5 + $0x358] sm:$0xff] }
 0x1c4   :  { %1040 = vmatpush1.bf16.msra.mxu1 %v2139_v29  ;;  %v2244_v29 = vcombine.high %v261_v26, %v265_v27  ;;  %v250_v23 = vld [vmem:[#allocation5 + $0x378] sm:$0xff] }
 0x1c5   :  { %1041 = vmatprep.subr.bf16.mxu1 %v2148_v30  ;;  %v142_v30 = vld [vmem:[#allocation5 + $0x18] sm:$0xff] }
 0x1c6   :  { %v2126_v36 = vcombine.high %v142_v30, %v146_v34  ;;  %v254_v26 = vld [vmem:[#allocation5 + $0x398] sm:$0xff] }
 0x1c7   :  { %v258_v27 = vld [vmem:[#allocation5 + $0x3b8] sm:$0xff] }
 0x1c8   :  { %1042 = vmatpush1.bf16.msra.mxu1 %v2147_v38  ;;  %v154_v38 = vld [vmem:[#allocation5 + $0x78] sm:$0xff] }
 0x1c9   :  { %1043 = vmatprep.subr.bf16.mxu1 %v2156_v39  ;;  %v2125_v39 = vcombine.low %v142_v30, %v146_v34  ;;  %v2134_v40 = vcombine.high %v150_v37, %v154_v38  ;;  %v2133_v43 = vcombine.low %v150_v37, %v154_v38  ;;  %v262_v30 = vld [vmem:[#allocation5 + $0x3d8] sm:$0xff]  ;;  %v2849_v38 = vld [vmem:[%s2891_s4] sm:$0xff] }
 0x1ca   :  { %v266_v34 = vld [vmem:[#allocation5 + $0x3f8] sm:$0xff] }
 0x1cb   :  { %v2245_v37 = vcombine.low %v262_v30, %v266_v34 }
 0x1cc   :  { %1044 = vmatpush1.bf16.msra.mxu1 %v2155_v44  ;;  %v2142_v44 = vcombine.high %v158_v41, %v162_v42 }
 0x1cd   :  { %1045 = vmatprep.subr.bf16.mxu1 %v2164_v45  ;;  %v166_v45 = vld [vmem:[#allocation5 + $0xd8] sm:$0xff] }
 0x1ce   :  { %v2150_v48 = vcombine.high %v166_v45, %v170_v46  ;;  %v2149_v51 = vcombine.low %v166_v45, %v170_v46 }
 0x1d0   :  { %1046 = vmatpush1.bf16.msra.mxu1 %v2163_v49  ;;  %v174_v49 = vld [vmem:[#allocation5 + $0x118] sm:$0xff] }
 0x1d1   :  { %1047 = vmatprep.subr.bf16.mxu1 %v2172_v50  ;;  %v178_v50 = vld [vmem:[#allocation5 + $0x138] sm:$0xff] }
 0x1d2   :  { %v2158_v52 = vcombine.high %v174_v49, %v178_v50  ;;  %v2157_v57 = vcombine.low %v174_v49, %v178_v50 }
 0x1d4   :  { %1048 = vmatpush1.bf16.msra.mxu1 %v2171_v56  ;;  %v186_v56 = vld [vmem:[#allocation5 + $0x178] sm:$0xff] }
 0x1d5   :  { %1049 = vmatprep.subr.bf16.mxu1 %v2180_v60  ;;  %v190_v60 = vld [vmem:[#allocation5 + $0x198] sm:$0xff]  ;;  %v2165_v61 = vcombine.low %v182_v55, %v186_v56 }
 0x1d6   :  { %v2174_v54 = vcombine.high %v190_v60, %v194_v53 }
 0x1d8   :  { %1050 = vmatpush1.bf16.msra.mxu1 %v2179_v62  ;;  %v198_v62 = vld [vmem:[#allocation5 + $0x1d8] sm:$0xff] }
 0x1d9   :  { %1051 = vmatprep.subr.bf16.mxu1 %v2188_v0  ;;  %v2173_v0 = vcombine.low %v190_v60, %v194_v53  ;;  %v2182_v1 = vcombine.high %v198_v62, %v202_v63  ;;  %v2457_v60 = vld [vmem:[#allocation7 + $0x124] ss:$8 sps:$4 sm:$0xff]   ;;  %v2455_v53 = vld [vmem:[#allocation7 + $0x120] ss:$8 sps:$4 sm:$0xff]  }
 0x1dc   :  { %1052 = vmatpush1.bf16.msra.mxu1 %v2187_v4  ;;  %v2181_v4 = vcombine.low %v198_v62, %v202_v63  ;;  %v2463_v62 = vld [vmem:[#allocation7 + $0x144] ss:$8 sps:$4 sm:$0xff]   ;;  %v2461_v63 = vld [vmem:[#allocation7 + $0x140] ss:$8 sps:$4 sm:$0xff]  }
 0x1dd   :  { %1053 = vmatprep.subr.bf16.mxu1 %v2196_v5  ;;  %v2190_v5 = vcombine.high %v206_v2, %v210_v3 }
 0x1e0   :  { %1054 = vmatpush1.bf16.msra.mxu1 %v2195_v8  ;;  %v2189_v8 = vcombine.low %v206_v2, %v210_v3  ;;  %v2469_v2 = vld [vmem:[#allocation7 + $0x164] ss:$8 sps:$4 sm:$0xff]   ;;  %v2467_v3 = vld [vmem:[#allocation7 + $0x160] ss:$8 sps:$4 sm:$0xff]  }
 0x1e1   :  { %1055 = vmatprep.subr.bf16.mxu1 %v2204_v9  ;;  %v2198_v9 = vcombine.high %v214_v6, %v218_v7 }
 0x1e4   :  { %1056 = vmatpush1.bf16.msra.mxu1 %v2203_v12  ;;  %v2197_v12 = vcombine.low %v214_v6, %v218_v7  ;;  %v2475_v6 = vld [vmem:[#allocation7 + $0x184] ss:$8 sps:$4 sm:$0xff]   ;;  %v2473_v7 = vld [vmem:[#allocation7 + $0x180] ss:$8 sps:$4 sm:$0xff]  }
 0x1e5   :  { %1057 = vmatprep.subr.bf16.mxu1 %v2212_v13  ;;  %v2206_v13 = vcombine.high %v222_v10, %v226_v11 }
 0x1e8   :  { %1058 = vmatpush1.bf16.msra.mxu1 %v2211_v16  ;;  %v2205_v16 = vcombine.low %v222_v10, %v226_v11  ;;  %v2481_v10 = vld [vmem:[#allocation7 + $0x1a4] ss:$8 sps:$4 sm:$0xff]   ;;  %v2479_v11 = vld [vmem:[#allocation7 + $0x1a0] ss:$8 sps:$4 sm:$0xff]  }
 0x1e9   :  { %1059 = vmatprep.subr.bf16.mxu1 %v2220_v17  ;;  %v2214_v17 = vcombine.high %v230_v14, %v234_v15 }
 0x1ec   :  { %1060 = vmatpush1.bf16.msra.mxu1 %v2219_v20  ;;  %v2213_v20 = vcombine.low %v230_v14, %v234_v15  ;;  %v2487_v14 = vld [vmem:[#allocation7 + $0x1c4] ss:$8 sps:$4 sm:$0xff]   ;;  %v2485_v15 = vld [vmem:[#allocation7 + $0x1c0] ss:$8 sps:$4 sm:$0xff]  }
 0x1ed   :  { %1061 = vmatprep.subr.bf16.mxu1 %v2228_v21  ;;  %v2222_v21 = vcombine.high %v238_v18, %v242_v19 }
 0x1f0   :  { %1062 = vmatpush1.bf16.msra.mxu1 %v2227_v24  ;;  %v2221_v24 = vcombine.low %v238_v18, %v242_v19  ;;  %v283_v18 = vsub.s32 3, %v2812_v31  ;;  %v2488_v19 = vld [vmem:[#allocation7 + $0x1d0] ss:$8 sps:$4 sm:$0xff]  }
 0x1f1   :  { %1063 = vmatprep.subr.bf16.mxu1 %v2236_v25  ;;  %v2230_v25 = vcombine.high %v246_v22, %v250_v23 }
 0x1f4   :  { %1064 = vmatpush1.bf16.msra.mxu1 %v2235_v28  ;;  %v2229_v28 = vcombine.low %v246_v22, %v250_v23  ;;  %v284_v22 = vrot.slane %v2849_v38, %v283_v18 }
 0x1f5   :  { %1065 = vmatprep.subr.bf16.mxu1 %v2244_v29  ;;  %v2238_v29 = vcombine.high %v254_v26, %v258_v27 }
 0x1f8   :  { %1066 = vmatpush1.bf16.msra.mxu1 %v2243_v35  ;;  %v2237_v35 = vcombine.low %v254_v26, %v258_v27  ;;  %v2496_v27 = vld [vmem:[#allocation7 + $0x1f4] ss:$8 sps:$4 sm:$0xff]  }
 0x1f9   :  { %1078 = vmatprep.subr.bf16.mxu1 %v2126_v36  ;;  %v2246_v36 = vcombine.high %v262_v30, %v266_v34 }
 0x1fb   :  { %1068 = vmatmul.mubr.bf16.vlgmr.msra.gmra.mrb[8].mxu1 %v2836_v59 }
 0x1fc   :  { %1079 = vmatpush1.bf16.msra.mxu1 %v2125_v39  ;;  %1110 = vmatprep.mubr.bf16.mxu1 %v2834_v58  ;;  %v2166_v58 = vcombine.high %v182_v55, %v186_v56  ;;  %v272_v39 = vrot.slane %v2849_v38, %v2818_v33  ;;  %v2449_v56 = vld [vmem:[#allocation7 + $0x100] ss:$8 sps:$4 sm:$0xff]  }
 0x1fd   :  { %1080 = vmatprep.subr.bf16.mxu1 %v2134_v40  ;;  %v276_v40 = vrot.slane %v2849_v38, %v2815_v32 }
 0x200   :  { %1081 = vmatpush1.bf16.msra.mxu1 %v2133_v43 }
 0x201   :  { %1082 = vmatprep.subr.bf16.mxu1 %v2142_v44 }
 0x204   :  { %1083 = vmatpush1.bf16.msra.mxu1 %v2141_v47 }
 0x205   :  { %1084 = vmatprep.subr.bf16.mxu1 %v2150_v48 }
 0x208   :  { %1085 = vmatpush1.bf16.msra.mxu1 %v2149_v51 }
 0x209   :  { %1086 = vmatprep.subr.bf16.mxu1 %v2158_v52 }
 0x20c   :  { %1087 = vmatpush1.bf16.msra.mxu1 %v2157_v57  ;;  %v2454_v57 = vld [vmem:[#allocation7 + $0x114] ss:$8 sps:$4 sm:$0xff]  }
 0x20d   :  { %1088 = vmatprep.subr.bf16.mxu1 %v2166_v58  ;;  %v2452_v58 = vld [vmem:[#allocation7 + $0x110] ss:$8 sps:$4 sm:$0xff]  }
 0x210   :  { %1089 = vmatpush1.bf16.msra.mxu1 %v2165_v61  ;;  %v2460_v61 = vld [vmem:[#allocation7 + $0x134] ss:$8 sps:$4 sm:$0xff]  }
 0x211   :  { %1090 = vmatprep.subr.bf16.mxu1 %v2174_v54  ;;  %v2458_v54 = vld [vmem:[#allocation7 + $0x130] ss:$8 sps:$4 sm:$0xff]  }
 0x214   :  { %1091 = vmatpush1.bf16.msra.mxu1 %v2173_v0  ;;  %v2466_v0 = vld [vmem:[#allocation7 + $0x154] ss:$8 sps:$4 sm:$0xff]  }
 0x215   :  { %1092 = vmatprep.subr.bf16.mxu1 %v2182_v1  ;;  %v2464_v1 = vld [vmem:[#allocation7 + $0x150] ss:$8 sps:$4 sm:$0xff]  }
 0x218   :  { %1093 = vmatpush1.bf16.msra.mxu1 %v2181_v4  ;;  %v2472_v4 = vld [vmem:[#allocation7 + $0x174] ss:$8 sps:$4 sm:$0xff]  }
 0x219   :  { %1094 = vmatprep.subr.bf16.mxu1 %v2190_v5  ;;  %v2470_v5 = vld [vmem:[#allocation7 + $0x170] ss:$8 sps:$4 sm:$0xff]  }
 0x21c   :  { %1095 = vmatpush1.bf16.msra.mxu1 %v2189_v8  ;;  %v2478_v8 = vld [vmem:[#allocation7 + $0x194] ss:$8 sps:$4 sm:$0xff]  }
 0x21d   :  { %1096 = vmatprep.subr.bf16.mxu1 %v2198_v9  ;;  %v2476_v9 = vld [vmem:[#allocation7 + $0x190] ss:$8 sps:$4 sm:$0xff]  }
 0x220   :  { %1097 = vmatpush1.bf16.msra.mxu1 %v2197_v12  ;;  %v2484_v12 = vld [vmem:[#allocation7 + $0x1b4] ss:$8 sps:$4 sm:$0xff]  }
 0x221   :  { %1098 = vmatprep.subr.bf16.mxu1 %v2206_v13  ;;  %v2482_v13 = vld [vmem:[#allocation7 + $0x1b0] ss:$8 sps:$4 sm:$0xff]  }
 0x224   :  { %1099 = vmatpush1.bf16.msra.mxu1 %v2205_v16  ;;  %v2490_v16 = vld [vmem:[#allocation7 + $0x1d4] ss:$8 sps:$4 sm:$0xff]  }
 0x225   :  { %1100 = vmatprep.subr.bf16.mxu1 %v2214_v17  ;;  %v279_v17 = vsub.s32 2, %v2812_v31 }
 0x228   :  { %1101 = vmatpush1.bf16.msra.mxu1 %v2213_v20  ;;  %v280_v20 = vrot.slane %v2849_v38, %v279_v17  ;;  %v2544_v17 = vld [vmem:[#allocation7 + $0x2f4] ss:$8 sps:$4 sm:$0xff]  }
 0x229   :  { %1102 = vmatprep.subr.bf16.mxu1 %v2222_v21  ;;  %v2493_v21 = vld [vmem:[#allocation7 + $0x1e4] ss:$8 sps:$4 sm:$0xff]  }
 0x22c   :  { %1103 = vmatpush1.bf16.msra.mxu1 %v2221_v24  ;;  %v2491_v24 = vld [vmem:[#allocation7 + $0x1e0] ss:$8 sps:$4 sm:$0xff]  }
 0x22d   :  { %1104 = vmatprep.subr.bf16.mxu1 %v2230_v25 }
 0x230   :  { %1105 = vmatpush1.bf16.msra.mxu1 %v2229_v28 }
 0x231   :  { %1106 = vmatprep.subr.bf16.mxu1 %v2238_v29 }
 0x234   :  { %1107 = vmatpush1.bf16.msra.mxu1 %v2237_v35 }
 0x235   :  { %1108 = vmatprep.subr.bf16.mxu1 %v2246_v36  ;;  %v2494_v36 = vld [vmem:[#allocation7 + $0x1f0] ss:$8 sps:$4 sm:$0xff]  }
 0x238   :  { %1109 = vmatpush1.bf16.msra.mxu1 %v2245_v37 }
 0x23b   :  { %1111 = vmatmul.mubr.bf16.vlgmr.msra.gmra.mrb[12].mxu1 %v2836_v59 }
 0x24e   :  { %v983_v41 = vpop.f32.mrb[0].mxu1 }
 0x24f   :  { %v984_v42 = vadd.f32 %v983_v41, %v272_v39  ;;  %v985_v43 = vpop.f32.mrb[1].mxu1 }
 0x250   :  { %v986_v44 = vadd.f32 %v985_v43, %v276_v40  ;;  %v987_v45 = vpop.f32.mrb[2].mxu1 }
 0x251   :  { %v988_v46 = vadd.f32 %v987_v45, %v272_v39  ;;  %v989_v47 = vpop.f32.mrb[3].mxu1  ;;  %v1121_v59 = vmax.f32 %v984_v42, 0.0  ;;  %v2497_v45 = vld [vmem:[#allocation7 + $0x200] ss:$8 sps:$4 sm:$0xff]  }
 0x252   :  { %v990_v48 = vadd.f32 %v989_v47, %v276_v40  ;;  %v1122_v50 = vmax.f32 %v986_v44, 0.0  ;;  %v2499_v40 = vld [vmem:[#allocation7 + $0x204] ss:$8 sps:$4 sm:$0xff]   ;;  %v2500_v47 = vld [vmem:[#allocation7 + $0x210] ss:$8 sps:$4 sm:$0xff]  }
 0x253   :  { %v1129_v49 = vmax.f32 %v988_v46, 0.0  ;;  %v2502_v46 = vld [vmem:[#allocation7 + $0x214] ss:$8 sps:$4 sm:$0xff]  }
 0x254   :  { %v1130_v51 = vmax.f32 %v990_v48, 0.0  ;;  %v2505_v48 = vld [vmem:[#allocation7 + $0x224] ss:$8 sps:$4 sm:$0xff]  }
 0x255   :  { %v1137_v52 = vpack.c.bf16 %v1129_v49, %v1121_v59  ;;  %v2503_v59 = vld [vmem:[#allocation7 + $0x220] ss:$8 sps:$4 sm:$0xff]   ;;  %v2508_v49 = vld [vmem:[#allocation7 + $0x234] ss:$8 sps:$4 sm:$0xff]  }
 0x256   :  { %v1138_v55 = vpack.c.bf16 %v1130_v51, %v1122_v50  ;;  %v2506_v50 = vld [vmem:[#allocation7 + $0x230] ss:$8 sps:$4 sm:$0xff]   ;;  %v2511_v51 = vld [vmem:[#allocation7 + $0x244] ss:$8 sps:$4 sm:$0xff]  }
 0x258   :  { %1957 = vmatprep.mubr.bf16.mxu0 %v1138_v55  ;;  %v2514_v55 = vld [vmem:[#allocation7 + $0x254] ss:$8 sps:$4 sm:$0xff]  }
 0x259   :  { %1958 = vmatmul.mubr.bf16.vlgmr.msra.gmra.mrb[0].mxu0 %v1137_v52  ;;  %v2509_v52 = vld [vmem:[#allocation7 + $0x240] ss:$8 sps:$4 sm:$0xff]  }
 0x25a   :  { %1969 = vmatpush1.bf16.msra.mxu0 %v2449_v56  ;;  %v2512_v56 = vld [vmem:[#allocation7 + $0x250] ss:$8 sps:$4 sm:$0xff]  }
 0x25b   :  { %1970 = vmatprep.subr.bf16.mxu0 %v2454_v57  ;;  %v2517_v57 = vld [vmem:[#allocation7 + $0x264] ss:$8 sps:$4 sm:$0xff]  }
 0x25e   :  { %1971 = vmatpush1.bf16.msra.mxu0 %v2452_v58  ;;  %v2515_v58 = vld [vmem:[#allocation7 + $0x260] ss:$8 sps:$4 sm:$0xff]  }
 0x25f   :  { %1972 = vmatprep.subr.bf16.mxu0 %v2457_v60  ;;  %v2520_v60 = vld [vmem:[#allocation7 + $0x274] ss:$8 sps:$4 sm:$0xff]  }
 0x262   :  { %1973 = vmatpush1.bf16.msra.mxu0 %v2455_v53  ;;  %v2518_v53 = vld [vmem:[#allocation7 + $0x270] ss:$8 sps:$4 sm:$0xff]  }
 0x263   :  { %1974 = vmatprep.subr.bf16.mxu0 %v2460_v61  ;;  %v2523_v61 = vld [vmem:[#allocation7 + $0x284] ss:$8 sps:$4 sm:$0xff]  }
 0x266   :  { %1975 = vmatpush1.bf16.msra.mxu0 %v2458_v54  ;;  %v2521_v54 = vld [vmem:[#allocation7 + $0x280] ss:$8 sps:$4 sm:$0xff]  }
 0x267   :  { %1976 = vmatprep.subr.bf16.mxu0 %v2463_v62  ;;  %v2526_v62 = vld [vmem:[#allocation7 + $0x294] ss:$8 sps:$4 sm:$0xff]  }
 0x26a   :  { %1977 = vmatpush1.bf16.msra.mxu0 %v2461_v63  ;;  %v2524_v63 = vld [vmem:[#allocation7 + $0x290] ss:$8 sps:$4 sm:$0xff]  }
 0x26b   :  { %1978 = vmatprep.subr.bf16.mxu0 %v2466_v0  ;;  %v2529_v0 = vld [vmem:[#allocation7 + $0x2a4] ss:$8 sps:$4 sm:$0xff]  }
 0x26e   :  { %1979 = vmatpush1.bf16.msra.mxu0 %v2464_v1  ;;  %v2527_v1 = vld [vmem:[#allocation7 + $0x2a0] ss:$8 sps:$4 sm:$0xff]  }
 0x26f   :  { %1980 = vmatprep.subr.bf16.mxu0 %v2469_v2  ;;  %v2532_v2 = vld [vmem:[#allocation7 + $0x2b4] ss:$8 sps:$4 sm:$0xff]  }
 0x272   :  { %1981 = vmatpush1.bf16.msra.mxu0 %v2467_v3  ;;  %v2530_v3 = vld [vmem:[#allocation7 + $0x2b0] ss:$8 sps:$4 sm:$0xff]  }
 0x273   :  { %1982 = vmatprep.subr.bf16.mxu0 %v2472_v4  ;;  %v2535_v4 = vld [vmem:[#allocation7 + $0x2c4] ss:$8 sps:$4 sm:$0xff]  }
 0x276   :  { %1983 = vmatpush1.bf16.msra.mxu0 %v2470_v5  ;;  %v2533_v5 = vld [vmem:[#allocation7 + $0x2c0] ss:$8 sps:$4 sm:$0xff]  }
 0x277   :  { %1984 = vmatprep.subr.bf16.mxu0 %v2475_v6  ;;  %v2538_v6 = vld [vmem:[#allocation7 + $0x2d4] ss:$8 sps:$4 sm:$0xff]  }
 0x27a   :  { %1985 = vmatpush1.bf16.msra.mxu0 %v2473_v7  ;;  %v287_v7 = vsub.s32 4, %v2812_v31 }
 0x27b   :  { %1986 = vmatprep.subr.bf16.mxu0 %v2478_v8  ;;  %v291_v8 = vsub.s32 5, %v2812_v31 }
 0x27e   :  { %1987 = vmatpush1.bf16.msra.mxu0 %v2476_v9  ;;  %v2536_v9 = vld [vmem:[#allocation7 + $0x2d0] ss:$8 sps:$4 sm:$0xff]  }
 0x27f   :  { %1988 = vmatprep.subr.bf16.mxu0 %v2481_v10  ;;  %v288_v10 = vrot.slane %v2849_v38, %v287_v7  ;;  %v2592_v7 = vld [vmem:[#allocation7 + $0x3f4] ss:$8 sps:$4 sm:$0xff]  }
 0x282   :  { %1989 = vmatpush1.bf16.msra.mxu0 %v2479_v11  ;;  %v2541_v11 = vld [vmem:[#allocation7 + $0x2e4] ss:$8 sps:$4 sm:$0xff]  }
 0x283   :  { %1990 = vmatprep.subr.bf16.mxu0 %v2484_v12  ;;  %v292_v12 = vrot.slane %v2849_v38, %v291_v8 }
 0x286   :  { %1991 = vmatpush1.bf16.msra.mxu0 %v2482_v13 }
 0x287   :  { %1992 = vmatprep.subr.bf16.mxu0 %v2487_v14  ;;  %v2539_v14 = vld [vmem:[#allocation7 + $0x2e0] ss:$8 sps:$4 sm:$0xff]  }
 0x28a   :  { %1993 = vmatpush1.bf16.msra.mxu0 %v2485_v15 }
 0x28b   :  { %1994 = vmatprep.subr.bf16.mxu0 %v2490_v16 }
 0x28e   :  { %v1026_v23 = vpop.f32.mrb[4].mxu1  ;;  %1995 = vmatpush1.bf16.msra.mxu0 %v2488_v19 }
 0x28f   :  { %v1027_v25 = vadd.f32 %v1026_v23, %v280_v20  ;;  %v1028_v26 = vpop.f32.mrb[5].mxu1  ;;  %1996 = vmatprep.subr.bf16.mxu0 %v2493_v21  ;;  %v2542_v23 = vld [vmem:[#allocation7 + $0x2f0] ss:$8 sps:$4 sm:$0xff]  }
 0x290   :  { %v1029_v28 = vadd.f32 %v1028_v26, %v284_v22  ;;  %v1030_v29 = vpop.f32.mrb[6].mxu1  ;;  %v2547_v26 = vld [vmem:[#allocation7 + $0x304] ss:$8 sps:$4 sm:$0xff]  }
 0x291   :  { %v1031_v30 = vadd.f32 %v1030_v29, %v280_v20  ;;  %v1032_v34 = vpop.f32.mrb[7].mxu1  ;;  %v1123_v37 = vmax.f32 %v1027_v25, 0.0 }
 0x292   :  { %v1033_v35 = vadd.f32 %v1032_v34, %v284_v22  ;;  %1997 = vmatpush1.bf16.msra.mxu0 %v2491_v24  ;;  %v1124_v41 = vmax.f32 %v1029_v28, 0.0  ;;  %v2545_v34 = vld [vmem:[#allocation7 + $0x300] ss:$8 sps:$4 sm:$0xff]  }
 0x293   :  { %v1131_v39 = vmax.f32 %v1031_v30, 0.0  ;;  %1998 = vmatprep.subr.bf16.mxu0 %v2496_v27 }
 0x294   :  { %v1132_v42 = vmax.f32 %v1033_v35, 0.0  ;;  %v2550_v35 = vld [vmem:[#allocation7 + $0x314] ss:$8 sps:$4 sm:$0xff]  }
 0x295   :  { %v1139_v43 = vpack.c.bf16 %v1131_v39, %v1123_v37  ;;  %v2553_v37 = vld [vmem:[#allocation7 + $0x324] ss:$8 sps:$4 sm:$0xff]   ;;  %v2551_v39 = vld [vmem:[#allocation7 + $0x320] ss:$8 sps:$4 sm:$0xff]  }
 0x296   :  { %v1140_v44 = vpack.c.bf16 %v1132_v42, %v1124_v41  ;;  %1999 = vmatpush1.bf16.msra.mxu0 %v2494_v36  ;;  %v2548_v36 = vld [vmem:[#allocation7 + $0x310] ss:$8 sps:$4 sm:$0xff]   ;;  %v2559_v42 = vld [vmem:[#allocation7 + $0x344] ss:$8 sps:$4 sm:$0xff]  }
 0x297   :  { %2011 = vmatprep.subr.bf16.mxu0 %v2499_v40  ;;  %v2556_v40 = vld [vmem:[#allocation7 + $0x334] ss:$8 sps:$4 sm:$0xff]   ;;  %v2554_v41 = vld [vmem:[#allocation7 + $0x330] ss:$8 sps:$4 sm:$0xff]  }
 0x298   :  { %2000 = vmatprep.mubr.bf16.mxu0 %v1140_v44  ;;  %v2562_v44 = vld [vmem:[#allocation7 + $0x354] ss:$8 sps:$4 sm:$0xff]  }
 0x299   :  { %2001 = vmatmul.mubr.bf16.vlgmr.msra.gmra.mrb[0].mxu0 %v1139_v43  ;;  %v2557_v43 = vld [vmem:[#allocation7 + $0x340] ss:$8 sps:$4 sm:$0xff]  }
 0x29a   :  { %2012 = vmatpush1.bf16.msra.mxu0 %v2497_v45  ;;  %v2560_v45 = vld [vmem:[#allocation7 + $0x350] ss:$8 sps:$4 sm:$0xff]  }
 0x29b   :  { %2013 = vmatprep.subr.bf16.mxu0 %v2502_v46  ;;  %v2565_v46 = vld [vmem:[#allocation7 + $0x364] ss:$8 sps:$4 sm:$0xff]  }
 0x29e   :  { %2014 = vmatpush1.bf16.msra.mxu0 %v2500_v47  ;;  %v2563_v47 = vld [vmem:[#allocation7 + $0x360] ss:$8 sps:$4 sm:$0xff]  }
 0x29f   :  { %2015 = vmatprep.subr.bf16.mxu0 %v2505_v48  ;;  %v2568_v48 = vld [vmem:[#allocation7 + $0x374] ss:$8 sps:$4 sm:$0xff]  }
 0x2a2   :  { %2016 = vmatpush1.bf16.msra.mxu0 %v2503_v59  ;;  %v2566_v59 = vld [vmem:[#allocation7 + $0x370] ss:$8 sps:$4 sm:$0xff]  }
 0x2a3   :  { %2017 = vmatprep.subr.bf16.mxu0 %v2508_v49  ;;  %v2571_v49 = vld [vmem:[#allocation7 + $0x384] ss:$8 sps:$4 sm:$0xff]  }
 0x2a6   :  { %2018 = vmatpush1.bf16.msra.mxu0 %v2506_v50  ;;  %v2569_v50 = vld [vmem:[#allocation7 + $0x380] ss:$8 sps:$4 sm:$0xff]  }
 0x2a7   :  { %2019 = vmatprep.subr.bf16.mxu0 %v2511_v51  ;;  %v2574_v51 = vld [vmem:[#allocation7 + $0x394] ss:$8 sps:$4 sm:$0xff]  }
 0x2aa   :  { %2020 = vmatpush1.bf16.msra.mxu0 %v2509_v52  ;;  %v2572_v52 = vld [vmem:[#allocation7 + $0x390] ss:$8 sps:$4 sm:$0xff]  }
 0x2ab   :  { %2021 = vmatprep.subr.bf16.mxu0 %v2514_v55  ;;  %v2577_v55 = vld [vmem:[#allocation7 + $0x3a4] ss:$8 sps:$4 sm:$0xff]  }
 0x2ae   :  { %2022 = vmatpush1.bf16.msra.mxu0 %v2512_v56  ;;  %v2575_v56 = vld [vmem:[#allocation7 + $0x3a0] ss:$8 sps:$4 sm:$0xff]  }
 0x2af   :  { %2023 = vmatprep.subr.bf16.mxu0 %v2517_v57  ;;  %v2580_v57 = vld [vmem:[#allocation7 + $0x3b4] ss:$8 sps:$4 sm:$0xff]  }
 0x2b2   :  { %2024 = vmatpush1.bf16.msra.mxu0 %v2515_v58  ;;  %v2578_v58 = vld [vmem:[#allocation7 + $0x3b0] ss:$8 sps:$4 sm:$0xff]  }
 0x2b3   :  { %2025 = vmatprep.subr.bf16.mxu0 %v2520_v60  ;;  %v2583_v60 = vld [vmem:[#allocation7 + $0x3c4] ss:$8 sps:$4 sm:$0xff]  }
 0x2b6   :  { %2026 = vmatpush1.bf16.msra.mxu0 %v2518_v53  ;;  %v2581_v53 = vld [vmem:[#allocation7 + $0x3c0] ss:$8 sps:$4 sm:$0xff]  }
 0x2b7   :  { %2027 = vmatprep.subr.bf16.mxu0 %v2523_v61  ;;  %v2586_v61 = vld [vmem:[#allocation7 + $0x3d4] ss:$8 sps:$4 sm:$0xff]  }
 0x2ba   :  { %2028 = vmatpush1.bf16.msra.mxu0 %v2521_v54  ;;  %v295_v54 = vsub.s32 6, %v2812_v31 }
 0x2bb   :  { %2029 = vmatprep.subr.bf16.mxu0 %v2526_v62  ;;  %v299_v62 = vsub.s32 7, %v2812_v31 }
 0x2be   :  { %2030 = vmatpush1.bf16.msra.mxu0 %v2524_v63  ;;  %v2584_v63 = vld [vmem:[#allocation7 + $0x3d0] ss:$8 sps:$4 sm:$0xff]  }
 0x2bf   :  { %2031 = vmatprep.subr.bf16.mxu0 %v2529_v0  ;;  %v296_v0 = vrot.slane %v2849_v38, %v295_v54 }
 0x2c2   :  { %2032 = vmatpush1.bf16.msra.mxu0 %v2527_v1  ;;  %v2589_v1 = vld [vmem:[#allocation7 + $0x3e4] ss:$8 sps:$4 sm:$0xff]  }
 0x2c3   :  { %2033 = vmatprep.subr.bf16.mxu0 %v2532_v2  ;;  %v300_v2 = vrot.slane %v2849_v38, %v299_v62 }
 0x2c6   :  { %2034 = vmatpush1.bf16.msra.mxu0 %v2530_v3 }
 0x2c7   :  { %2035 = vmatprep.subr.bf16.mxu0 %v2535_v4  ;;  %v2587_v4 = vld [vmem:[#allocation7 + $0x3e0] ss:$8 sps:$4 sm:$0xff]  }
 0x2ca   :  { %2036 = vmatpush1.bf16.msra.mxu0 %v2533_v5 }
 0x2cb   :  { %2037 = vmatprep.subr.bf16.mxu0 %v2538_v6 }
 0x2ce   :  { %v1069_v13 = vpop.f32.mrb[8].mxu1  ;;  %2038 = vmatpush1.bf16.msra.mxu0 %v2536_v9 }
 0x2cf   :  { %v1070_v15 = vadd.f32 %v1069_v13, %v288_v10  ;;  %v1071_v16 = vpop.f32.mrb[9].mxu1  ;;  %2039 = vmatprep.subr.bf16.mxu0 %v2541_v11 }
 0x2d0   :  { %v1072_v18 = vadd.f32 %v1071_v16, %v292_v12  ;;  %v1073_v19 = vpop.f32.mrb[10].mxu1 }
 0x2d1   :  { %v1074_v20 = vadd.f32 %v1073_v19, %v288_v10  ;;  %v1075_v21 = vpop.f32.mrb[11].mxu1  ;;  %v1125_v24 = vmax.f32 %v1070_v15, 0.0 }
 0x2d2   :  { %v1076_v22 = vadd.f32 %v1075_v21, %v292_v12  ;;  %2040 = vmatpush1.bf16.msra.mxu0 %v2539_v14  ;;  %v1126_v27 = vmax.f32 %v1072_v18, 0.0  ;;  %v2590_v12 = vld [vmem:[#allocation7 + $0x3f0] ss:$8 sps:$4 sm:$0xff]   ;;  %v1273_v18 = vld [vmem:[%s2893_s6] sm:$0x3]  ;;  %s2663_s6 = scalar_lea.vmem %s2107_s23, 512 }
 0x2d3   :  { %v1133_v25 = vmax.f32 %v1074_v20, 0.0  ;;  %2041 = vmatprep.subr.bf16.mxu0 %v2544_v17  ;;  %v1278_v19 = vrot.slane %v1273_v18, %v2818_v33  ;;  %v1282_v20 = vrot.slane %v1273_v18, %v2815_v32  ;;  %p2664_p10 = scmp.ne.s32.totalorder %s2107_s23, %s2663_s6  ;;  %p2669_p12 = scmp.lt.s32.totalorder %s2663_s6, %s2663_s6 }
 0x2d4   :  { %v1134_v28 = vmax.f32 %v1076_v22, 0.0 }
 0x2d5   :  { %v1141_v29 = vpack.c.bf16 %v1133_v25, %v1125_v24  ;;  %p2670_p13 = por %p2669_p12, %p2668_p11 }
 0x2d6   :  { %v1142_v30 = vpack.c.bf16 %v1134_v28, %v1126_v27  ;;  %2042 = vmatpush1.bf16.msra.mxu0 %v2542_v23 }
 0x2d7   :  { %2054 = vmatprep.subr.bf16.mxu0 %v2547_v26  ;;  %p2671_p0 = pnand %p2670_p13, %p2664_p10 }
 0x2d8   :  { %2043 = vmatprep.mubr.bf16.mxu0 %v1142_v30 }
 0x2d9   :  { %2044 = vmatmul.mubr.bf16.vlgmr.msra.gmra.mrb[0].mxu0 %v1141_v29 }
 0x2da   :  { %2055 = vmatpush1.bf16.msra.mxu0 %v2545_v34 }
 0x2db   :  { %2056 = vmatprep.subr.bf16.mxu0 %v2550_v35 }
 0x2de   :  { %2057 = vmatpush1.bf16.msra.mxu0 %v2548_v36 }
 0x2df   :  { %2058 = vmatprep.subr.bf16.mxu0 %v2553_v37 }
 0x2e2   :  { %2059 = vmatpush1.bf16.msra.mxu0 %v2551_v39 }
 0x2e3   :  { %2060 = vmatprep.subr.bf16.mxu0 %v2556_v40 }
 0x2e6   :  { %2061 = vmatpush1.bf16.msra.mxu0 %v2554_v41 }
 0x2e7   :  { %2062 = vmatprep.subr.bf16.mxu0 %v2559_v42 }
 0x2ea   :  { %2063 = vmatpush1.bf16.msra.mxu0 %v2557_v43 }
 0x2eb   :  { %2064 = vmatprep.subr.bf16.mxu0 %v2562_v44 }
 0x2ee   :  { %2065 = vmatpush1.bf16.msra.mxu0 %v2560_v45 }
 0x2ef   :  { %2066 = vmatprep.subr.bf16.mxu0 %v2565_v46 }
 0x2f2   :  { %2067 = vmatpush1.bf16.msra.mxu0 %v2563_v47 }
 0x2f3   :  { %2068 = vmatprep.subr.bf16.mxu0 %v2568_v48 }
 0x2f6   :  { %2069 = vmatpush1.bf16.msra.mxu0 %v2566_v59 }
 0x2f7   :  { %2070 = vmatprep.subr.bf16.mxu0 %v2571_v49 }
 0x2fa   :  { %2071 = vmatpush1.bf16.msra.mxu0 %v2569_v50 }
 0x2fb   :  { %2072 = vmatprep.subr.bf16.mxu0 %v2574_v51 }
 0x2fe   :  { %2073 = vmatpush1.bf16.msra.mxu0 %v2572_v52 }
 0x2ff   :  { %2074 = vmatprep.subr.bf16.mxu0 %v2577_v55 }
 0x302   :  { %2075 = vmatpush1.bf16.msra.mxu0 %v2575_v56 }
 0x303   :  { %2076 = vmatprep.subr.bf16.mxu0 %v2580_v57 }
 0x306   :  { %2077 = vmatpush1.bf16.msra.mxu0 %v2578_v58 }
 0x307   :  { %2078 = vmatprep.subr.bf16.mxu0 %v2583_v60 }
 0x30a   :  { %2079 = vmatpush1.bf16.msra.mxu0 %v2581_v53 }
 0x30b   :  { %2080 = vmatprep.subr.bf16.mxu0 %v2586_v61 }
 0x30e   :  { %v1112_v3 = vpop.f32.mrb[12].mxu1  ;;  %2081 = vmatpush1.bf16.msra.mxu0 %v2584_v63 }
 0x30f   :  { %v1113_v5 = vadd.f32 %v1112_v3, %v296_v0  ;;  %v1114_v6 = vpop.f32.mrb[13].mxu1  ;;  %2082 = vmatprep.subr.bf16.mxu0 %v2589_v1 }
 0x310   :  { %v1115_v8 = vadd.f32 %v1114_v6, %v300_v2  ;;  %v1116_v9 = vpop.f32.mrb[14].mxu1 }
 0x311   :  { %v1117_v10 = vadd.f32 %v1116_v9, %v296_v0  ;;  %v1118_v11 = vpop.f32.mrb[15].mxu1  ;;  %v1127_v13 = vmax.f32 %v1113_v5, 0.0 }
 0x312   :  { %v1119_v31 = vadd.f32 %v1118_v11, %v300_v2  ;;  %2083 = vmatpush1.bf16.msra.mxu0 %v2587_v4  ;;  %v1128_v15 = vmax.f32 %v1115_v8, 0.0 }
 0x313   :  { %v1135_v14 = vmax.f32 %v1117_v10, 0.0  ;;  %2084 = vmatprep.subr.bf16.mxu0 %v2592_v7 }
 0x314   :  { %v1136_v16 = vmax.f32 %v1119_v31, 0.0 }
 0x315   :  { %v1143_v38 = vpack.c.bf16 %v1135_v14, %v1127_v13 }
 0x316   :  { %v1144_v17 = vpack.c.bf16 %v1136_v16, %v1128_v15  ;;  %2085 = vmatpush1.bf16.msra.mxu0 %v2590_v12 }
 0x318   :  { %2086 = vmatprep.mubr.bf16.mxu0 %v1144_v17 }
 0x319   :  { %2087 = vmatmul.mubr.bf16.vlgmr.msra.gmra.mrb[0].mxu0 %v1143_v38 }
 0x3ec   :  { %v2088_v21 = vpop.f32.mrb[0].mxu0 }
 0x3ed   :  { %v2375_v22 = vadd.f32 %v2088_v21, %v1278_v19  ;;  %v2090_v23 = vpop.f32.mrb[1].mxu0 }
 0x3ee   :  { %v2376_v24 = vadd.f32 %v2090_v23, %v1282_v20  ;;  %v2092_v25 = vpop.f32.mrb[2].mxu0 }
 0x3ef   :  { %2097 = vst [vmem:[#allocation8] sm:$0xff] %v2375_v22  ;;  %v2377_v26 = vadd.f32 %v2092_v25, %v1278_v19  ;;  %v2094_v27 = vpop.f32.mrb[3].mxu0 }
 0x3f0   :  { %2098 = vst [vmem:[#allocation8 + $0x8] sm:$0xff] %v2376_v24  ;;  %v2378_v28 = vadd.f32 %v2094_v27, %v1282_v20 }
 0x3f1   :  { %2099 = vst [vmem:[#allocation8 + $0x10] sm:$0xff] %v2377_v26 }
 0x3f2   :  { %2100 = vst [vmem:[#allocation8 + $0x18] sm:$0xff] %v2378_v28 }
 0x3f3   :  { %2674 = shalt.err (!%p2671_p0)
}
 0x3f4   :  { %s2675_s27 = scalar_lea.hbm %s2894_s7, 512 }
 0x3f5   :  { %p2676_p1 = scmp.ne.s32.totalorder %s2894_s7, %s2675_s27  ;;  %p2679_p2 = scmp.lt.u32.totalorder %s2675_s27, %s2894_s7 }
 0x3f7   :  { %p2681_p3 = pnand %p2679_p2, %p2676_p1 }
 0x3f9   :  { %2684 = shalt.err (!%p2681_p3)
}
 0x3fa   :  { %2112 = dma.vmem_to_hbm [thread:$0]  %s2107_s23, 512, %s2894_s7, [#allocation4], %s2695_s3, %s2695_s3, %s2696_s25  }
 0x3fb   :  { %2689 = dma.done.wait [#allocation4], 512  }
 0x3fc   :  { %2690 = vsyncadd [#allocation4], 4294966784 }
 0x3fd   :  { %2116 = vsyncpa [#allocation3], 1 }
 0x3fe   :  { %2117 = vsyncpa [#allocation6], 1 }
 0x3ff   :  { %2118 = vsyncpa [#allocation4], 1 }

</bundles_post_ra>
